<compile_context>
chip_gen: v7x
topology: tpu7x:2x2x1
jax: 0.10.0
libtpu: 0.0.40
codegen_flags: <defaults>
</compile_context>

<pallas_src>
import numpy as np
import jax
import jax.numpy as jnp
from jax import lax
from jax.experimental import pallas as pl
from jax.experimental.pallas import tpu as pltpu

LEAKY_SLOPE = 0.2


# ----------------------------------------------------------------------------
# Host-side helpers (numpy, trace-time constants)
# ----------------------------------------------------------------------------
def _bilinear_matrix(out_size: int, in_size: int) -> np.ndarray:
    """1-D bilinear resize matrix matching F.interpolate(align_corners=True)."""
    A = np.zeros((out_size, in_size), dtype=np.float32)
    if out_size == 1 or in_size == 1:
        A[:, 0] = 1.0
        return A
    scale = (in_size - 1) / (out_size - 1)
    for o in range(out_size):
        src = o * scale
        i0 = min(int(np.floor(src)), in_size - 1)
        i1 = min(i0 + 1, in_size - 1)
        f = src - i0
        A[o, i0] += 1.0 - f
        A[o, i1] += f
    return A


def _pick_row_tile(hout: int, wout: int, cin: int, k: int) -> int:
    """Largest row tile whose im2col patches stay <= ~8 MiB (per-gen VMEM headroom)."""
    budget = 8 * 1024 * 1024
    for th in (64, 32, 16, 8):
        if hout % th == 0 and th * wout * k * k * cin * 4 <= budget:
            return th
    return 8 if hout % 8 == 0 else hout


# ----------------------------------------------------------------------------
# Fused Pallas kernel: resize (+halo/zero-pad) -> im2col 3x3 conv -> LeakyReLU
# ----------------------------------------------------------------------------
def _make_kernel(k: int, th: int):
    def kernel(x_ref, ah_ref, awt_ref, w9_ref, b_ref, o_ref):
        # x_ref  : (1, Hin, Cin, Win)   full (small, pre-resize) input image
        # ah_ref : (1, R, Hin)          per-tile height-resize rows (R = TH + 2*pad),
        #                               zero rows where the conv halo leaves the image
        # awt_ref: (Win, Q)             width-resize matrix^T (Q = Wout + 2*pad),
        #                               zero columns implement left/right zero padding
        # w9_ref : (k*k*Cin, Cout)      conv weight in im2col layout
        # b_ref  : (1, 1, Cout)
        # o_ref  : (1, Cout, TH, Wout)  NCHW output tile (lane axis = Wout)
        wout = o_ref.shape[3]

        # 1) height resize + conv row halo:  (R, Hin) @ (Hin, Cin, Win) -> (R, Cin, Win)
        hres = lax.dot_general(ah_ref[0], x_ref[0], (((1,), (0,)), ((), ())),
                               preferred_element_type=jnp.float32)

        # 2) width resize + zero pad columns: (R, Cin, Win) . (Win, Q) -> (R, Cin, Q)
        u = lax.dot_general(hres, awt_ref[...], (((2,), (0,)), ((), ())),
                            preferred_element_type=jnp.float32)

        # 3) channels -> lane axis for the conv contraction (single transpose)
        u_hwc = jnp.transpose(u, (0, 2, 1))                      # (R, Q, Cin)

        # 4) im2col: stack the k*k shifted windows along the contraction axis
        patches = jnp.concatenate(
            [u_hwc[dh:dh + th, dw:dw + wout, :]
             for dh in range(k) for dw in range(k)],
            axis=-1)                                             # (TH, Wout, k*k*Cin)

        # 5) one MXU contraction (K = k*k*Cin) + bias + LeakyReLU(0.2)
        y = lax.dot_general(patches, w9_ref[...], (((2,), (0,)), ((), ())),
                            preferred_element_type=jnp.float32)  # (TH, Wout, Cout)
        y = y + b_ref[...]
        y = jnp.where(y >= 0, y, LEAKY_SLOPE * y)

        # 6) store the tile directly in NCHW block layout (lane axis = Wout)
        o_ref[0] = jnp.transpose(y, (2, 0, 1)).astype(o_ref.dtype)

    return kernel


# ----------------------------------------------------------------------------
# Wrapper
# ----------------------------------------------------------------------------
def synthesis_layer(x_nchw, weight, bias, *, resolution, up=1, row_tile=None):
    """Pallas forward of SynthesisLayer. x: (N, Cin, Hin, Win) -> (N, Cout, Hout, Wout)."""
    n, cin, hin, win = x_nchw.shape
    cout, cin_w, kh, kw = weight.shape
    assert cin_w == cin and kh == kw and kh % 2 == 1
    k = kh
    pad = k // 2

    if up > 1:
        hout = wout = int(resolution)
    else:
        hout, wout = hin, win

    th = row_tile if row_tile is not None else _pick_row_tile(hout, wout, cin, k)
    assert hout % th == 0 and (th % 8 == 0 or th == hout), (th, hout)
    t_tiles = hout // th
    r = th + 2 * pad
    q = wout + 2 * pad

    # --- precompute resize operators (zero rows/cols implement conv zero-padding) ---
    if up > 1:
        ah = _bilinear_matrix(hout, hin)
        aw = _bilinear_matrix(wout, win)
    else:
        ah = np.eye(hout, hin, dtype=np.float32)
        aw = np.eye(wout, win, dtype=np.float32)

    ah_halo = np.zeros((t_tiles, r, hin), np.float32)
    for t in range(t_tiles):
        for rr in range(r):
            g = t * th - pad + rr            # global resized row (halo may be off-image)
            if 0 <= g < hout:
                ah_halo[t, rr, :] = ah[g]
    awt = np.zeros((win, q), np.float32)
    awt[:, pad:pad + wout] = aw.T

    # conv weight in im2col layout: index (dh*k + dw)*Cin + ci
    w9 = jnp.transpose(weight, (2, 3, 1, 0)).reshape(k * k * cin, cout).astype(jnp.float32)
    b3 = bias.reshape(1, 1, cout).astype(jnp.float32)
    # NCHW -> (N, Hin, Cin, Win): cheap relayout of the small pre-resize tensor
    x_hcw = jnp.transpose(x_nchw.astype(jnp.float32), (0, 2, 1, 3))

    kernel = _make_kernel(k, th)
    return pl.pallas_call(
        kernel,
        out_shape=jax.ShapeDtypeStruct((n, cout, hout, wout), jnp.float32),
        grid=(n, t_tiles),
        in_specs=[
            pl.BlockSpec((1, hin, cin, win), lambda i, t: (i, 0, 0, 0)),
            pl.BlockSpec((1, r, hin), lambda i, t: (t, 0, 0)),
            pl.BlockSpec((win, q), lambda i, t: (0, 0)),
            pl.BlockSpec((k * k * cin, cout), lambda i, t: (0, 0)),
            pl.BlockSpec((1, 1, cout), lambda i, t: (0, 0, 0)),
        ],
        out_specs=pl.BlockSpec((1, cout, th, wout), lambda i, t: (i, 0, t, 0)),
        compiler_params=pltpu.CompilerParams(
            dimension_semantics=("parallel", "parallel")),
    )(x_hcw, jnp.asarray(ah_halo), jnp.asarray(awt), w9, b3)


# ----------------------------------------------------------------------------
# Pure-JAX reference (correctness check only)
# ----------------------------------------------------------------------------
def _ref_forward(x_nchw, weight, bias, resolution, up):
    x = x_nchw.astype(jnp.float32)
    k = weight.shape[2]
    pad = k // 2
    if up > 1:
        _, _, h, w = x.shape
        ah = jnp.asarray(_bilinear_matrix(resolution, h))
        aw = jnp.asarray(_bilinear_matrix(resolution, w))
        x = jnp.einsum("oh,nchw->ncow", ah, x)
        x = jnp.einsum("pw,ncow->ncop", aw, x)
    y = lax.conv_general_dilated(
        x, weight.astype(jnp.float32), (1, 1), [(pad, pad), (pad, pad)],
        dimension_numbers=("NCHW", "OIHW", "NCHW"))
    y = y + bias.astype(jnp.float32)[None, :, None, None]
    return jnp.where(y >= 0, y, LEAKY_SLOPE * y)


# ----------------------------------------------------------------------------
if __name__ == "__main__":
    N, CIN, COUT, R_IN, UP = 2, 8, 16, 16, 2
    RES = UP * R_IN  # SynthesisLayer(resolution=32, up=2)

    key = jax.random.PRNGKey(0)
    k1, k2, k3 = jax.random.split(key, 3)
    fan_in = CIN * 3 * 3
    weight = jax.random.normal(k1, (COUT, CIN, 3, 3), jnp.float32) / np.sqrt(fan_in)
    bias = jax.random.normal(k2, (COUT,), jnp.float32) * 0.1
    x = jax.random.normal(k3, (N, CIN, R_IN, R_IN), jnp.float32)

    # up > 1 branch (bilinear upsample + conv + LeakyReLU), 4 row tiles per image
    fwd = jax.jit(lambda xx: synthesis_layer(xx, weight, bias,
                                             resolution=RES, up=UP, row_tile=8))
    out = jax.block_until_ready(fwd(x))
    assert out.shape == (N, COUT, RES, RES), out.shape
    ref = jax.block_until_ready(_ref_forward(x, weight, bias, RES, UP))
    np.testing.assert_allclose(np.asarray(out), np.asarray(ref), rtol=5e-3, atol=5e-3)

    # up == 1 branch (no interpolate), same fused kernel with identity resize
    fwd1 = jax.jit(lambda xx: synthesis_layer(xx, weight, bias,
                                              resolution=R_IN, up=1, row_tile=8))
    out1 = jax.block_until_ready(fwd1(x))
    ref1 = jax.block_until_ready(_ref_forward(x, weight, bias, R_IN, 1))
    np.testing.assert_allclose(np.asarray(out1), np.asarray(ref1), rtol=5e-3, atol=5e-3)

    print("KERNEL_OK")
</pallas_src>

<mosaic_0001>
module attributes {stable_mosaic.version = 11 : i64} {
  func.func @kernel(%arg0: i32, %arg1: i32, %arg2: memref<1x16x8x16xf32, #tpu.memory_space<vmem>>, %arg3: memref<1x10x16xf32, #tpu.memory_space<vmem>>, %arg4: memref<16x34xf32, #tpu.memory_space<vmem>>, %arg5: memref<72x16xf32, #tpu.memory_space<vmem>>, %arg6: memref<1x1x16xf32, #tpu.memory_space<vmem>>, %arg7: memref<1x16x8x32xf32, #tpu.memory_space<vmem>>) attributes {dimension_semantics = [#tpu.dimension_semantics<parallel>, #tpu.dimension_semantics<parallel>], iteration_bounds = array<i64: 2, 4>, scalar_prefetch = 0 : i64, scratch_operands = 0 : i64, tpu.core_type = #tpu.core_type<tc>, window_params = [{transform_indices = @transform_0, window_bounds = array<i64: 1, 16, 8, 16>}, {transform_indices = @transform_1, window_bounds = array<i64: 1, 10, 16>}, {pipeline_mode = #tpu.pipeline_mode<synchronous>, transform_indices = @transform_2, window_bounds = array<i64: 16, 34>}, {pipeline_mode = #tpu.pipeline_mode<synchronous>, transform_indices = @transform_3, window_bounds = array<i64: 72, 16>}, {pipeline_mode = #tpu.pipeline_mode<synchronous>, transform_indices = @transform_4, window_bounds = array<i64: 1, 1, 16>}, {transform_indices = @transform_5, window_bounds = array<i64: 1, 16, 8, 32>}]} {
    %c0 = arith.constant 0 : index
    %c0_0 = arith.constant 0 : index
    %c0_1 = arith.constant 0 : index
    %0 = vector.load %arg3[%c0, %c0_0, %c0_1] : memref<1x10x16xf32, #tpu.memory_space<vmem>>, vector<1x10x16xf32>
    %1 = vector.shape_cast %0 : vector<1x10x16xf32> to vector<10x16xf32>
    %c0_2 = arith.constant 0 : index
    %c0_3 = arith.constant 0 : index
    %c0_4 = arith.constant 0 : index
    %c0_5 = arith.constant 0 : index
    %2 = vector.load %arg2[%c0_2, %c0_3, %c0_4, %c0_5] : memref<1x16x8x16xf32, #tpu.memory_space<vmem>>, vector<1x16x8x16xf32>
    %3 = vector.shape_cast %2 : vector<1x16x8x16xf32> to vector<16x8x16xf32>
    %cst = arith.constant dense<0.000000e+00> : vector<10x8x16xf32>
    %4 = tpu.matmul %1, %3, %cst {dimension_numbers = #tpu.dot_dimension_numbers<[1], [0], [0], [1, 2], [0, 0, 1, 1, 1, 2], [], []>} : vector<10x16xf32>, vector<16x8x16xf32>, vector<10x8x16xf32> -> vector<10x8x16xf32>
    %c0_6 = arith.constant 0 : index
    %c0_7 = arith.constant 0 : index
    %5 = vector.load %arg4[%c0_6, %c0_7] : memref<16x34xf32, #tpu.memory_space<vmem>>, vector<16x34xf32>
    %cst_8 = arith.constant dense<0.000000e+00> : vector<10x8x34xf32>
    %6 = tpu.matmul %4, %5, %cst_8 {dimension_numbers = #tpu.dot_dimension_numbers<[2], [0], [0, 1], [1], [0, 0, 0, 1, 1, 1], [], []>} : vector<10x8x16xf32>, vector<16x34xf32>, vector<10x8x34xf32> -> vector<10x8x34xf32>
    %7 = tpu.transpose %6, [0, 2, 1] : vector<10x8x34xf32> -> vector<10x34x8xf32>
    %8 = vector.extract_strided_slice %7 {offsets = [0, 0, 0], sizes = [8, 32, 8], strides = [1, 1, 1]} : vector<10x34x8xf32> to vector<8x32x8xf32>
    %9 = vector.extract_strided_slice %7 {offsets = [0, 1, 0], sizes = [8, 32, 8], strides = [1, 1, 1]} : vector<10x34x8xf32> to vector<8x32x8xf32>
    %10 = vector.extract_strided_slice %7 {offsets = [0, 2, 0], sizes = [8, 32, 8], strides = [1, 1, 1]} : vector<10x34x8xf32> to vector<8x32x8xf32>
    %11 = vector.extract_strided_slice %7 {offsets = [1, 0, 0], sizes = [8, 32, 8], strides = [1, 1, 1]} : vector<10x34x8xf32> to vector<8x32x8xf32>
    %12 = vector.extract_strided_slice %7 {offsets = [1, 1, 0], sizes = [8, 32, 8], strides = [1, 1, 1]} : vector<10x34x8xf32> to vector<8x32x8xf32>
    %13 = vector.extract_strided_slice %7 {offsets = [1, 2, 0], sizes = [8, 32, 8], strides = [1, 1, 1]} : vector<10x34x8xf32> to vector<8x32x8xf32>
    %14 = vector.extract_strided_slice %7 {offsets = [2, 0, 0], sizes = [8, 32, 8], strides = [1, 1, 1]} : vector<10x34x8xf32> to vector<8x32x8xf32>
    %15 = vector.extract_strided_slice %7 {offsets = [2, 1, 0], sizes = [8, 32, 8], strides = [1, 1, 1]} : vector<10x34x8xf32> to vector<8x32x8xf32>
    %16 = vector.extract_strided_slice %7 {offsets = [2, 2, 0], sizes = [8, 32, 8], strides = [1, 1, 1]} : vector<10x34x8xf32> to vector<8x32x8xf32>
    %17 = tpu.concatenate %8, %9, %10, %11, %12, %13, %14, %15, %16 in 2 : vector<8x32x8xf32>, vector<8x32x8xf32>, vector<8x32x8xf32>, vector<8x32x8xf32>, vector<8x32x8xf32>, vector<8x32x8xf32>, vector<8x32x8xf32>, vector<8x32x8xf32>, vector<8x32x8xf32> -> vector<8x32x72xf32>
    %c0_9 = arith.constant 0 : index
    %c0_10 = arith.constant 0 : index
    %18 = vector.load %arg5[%c0_9, %c0_10] : memref<72x16xf32, #tpu.memory_space<vmem>>, vector<72x16xf32>
    %cst_11 = arith.constant dense<0.000000e+00> : vector<8x32x16xf32>
    %19 = tpu.matmul %17, %18, %cst_11 {dimension_numbers = #tpu.dot_dimension_numbers<[2], [0], [0, 1], [1], [0, 0, 0, 1, 1, 1], [], []>} : vector<8x32x72xf32>, vector<72x16xf32>, vector<8x32x16xf32> -> vector<8x32x16xf32>
    %c0_12 = arith.constant 0 : index
    %c0_13 = arith.constant 0 : index
    %c0_14 = arith.constant 0 : index
    %20 = vector.load %arg6[%c0_12, %c0_13, %c0_14] : memref<1x1x16xf32, #tpu.memory_space<vmem>>, vector<1x1x16xf32>
    %21 = vector.broadcast %20 : vector<1x1x16xf32> to vector<8x32x16xf32>
    %22 = arith.addf %19, %21 : vector<8x32x16xf32>
    %cst_15 = arith.constant 0.000000e+00 : f32
    %23 = vector.broadcast %cst_15 : f32 to vector<8x32x16xf32>
    %24 = arith.cmpf oge, %22, %23 : vector<8x32x16xf32>
    %cst_16 = arith.constant 2.000000e-01 : f32
    %25 = vector.broadcast %cst_16 : f32 to vector<8x32x16xf32>
    %26 = arith.mulf %25, %22 : vector<8x32x16xf32>
    %27 = arith.select %24, %22, %26 : vector<8x32x16xi1>, vector<8x32x16xf32>
    %28 = tpu.transpose %27, [2, 0, 1] : vector<8x32x16xf32> -> vector<16x8x32xf32>
    %c0_17 = arith.constant 0 : index
    %c0_18 = arith.constant 0 : index
    %c0_19 = arith.constant 0 : index
    %c0_20 = arith.constant 0 : index
    %29 = vector.load %arg7[%c0_17, %c0_18, %c0_19, %c0_20] : memref<1x16x8x32xf32, #tpu.memory_space<vmem>>, vector<1x16x8x32xf32>
    %30 = vector.shape_cast %29 : vector<1x16x8x32xf32> to vector<16x8x32xf32>
    %31 = vector.shape_cast %28 : vector<16x8x32xf32> to vector<1x16x8x32xf32>
    tpu.vector_store %arg7[%c0_17, %c0_18, %c0_19, %c0_20], %31 {strides = array<i32>} : memref<1x16x8x32xf32, #tpu.memory_space<vmem>>, vector<1x16x8x32xf32>,
    return
  }
  func.func @transform_0(%arg0: i32, %arg1: i32) -> (i32, i32, i32, i32) {
    %c0_i32 = arith.constant 0 : i32
    %c0_i32_0 = arith.constant 0 : i32
    %c0_i32_1 = arith.constant 0 : i32
    %c0_i32_2 = arith.constant 0 : i32
    return %arg0, %c0_i32, %c0_i32_0, %c0_i32_1 : i32, i32, i32, i32
  }
  func.func @transform_1(%arg0: i32, %arg1: i32) -> (i32, i32, i32) {
    %c0_i32 = arith.constant 0 : i32
    %c0_i32_0 = arith.constant 0 : i32
    %c0_i32_1 = arith.constant 0 : i32
    return %arg1, %c0_i32, %c0_i32_0 : i32, i32, i32
  }
  func.func @transform_2(%arg0: i32, %arg1: i32) -> (i32, i32) {
    %c0_i32 = arith.constant 0 : i32
    %c0_i32_0 = arith.constant 0 : i32
    %c0_i32_1 = arith.constant 0 : i32
    return %c0_i32, %c0_i32_0 : i32, i32
  }
  func.func @transform_3(%arg0: i32, %arg1: i32) -> (i32, i32) {
    %c0_i32 = arith.constant 0 : i32
    %c0_i32_0 = arith.constant 0 : i32
    %c0_i32_1 = arith.constant 0 : i32
    return %c0_i32, %c0_i32_0 : i32, i32
  }
  func.func @transform_4(%arg0: i32, %arg1: i32) -> (i32, i32, i32) {
    %c0_i32 = arith.constant 0 : i32
    %c0_i32_0 = arith.constant 0 : i32
    %c0_i32_1 = arith.constant 0 : i32
    %c0_i32_2 = arith.constant 0 : i32
    return %c0_i32, %c0_i32_0, %c0_i32_1 : i32, i32, i32
  }
  func.func @transform_5(%arg0: i32, %arg1: i32) -> (i32, i32, i32, i32) {
    %c0_i32 = arith.constant 0 : i32
    %c0_i32_0 = arith.constant 0 : i32
    %c0_i32_1 = arith.constant 0 : i32
    return %arg0, %c0_i32, %arg1, %c0_i32_0 : i32, i32, i32, i32
  }
}

</mosaic_0001>

<bundles_post_ra>
// kernel: _lambda_.1
= control target key start
LH: loop header
LB: loop body
LE: loop exit
PB: predicated region body
PF: predicated region fallthrough
CT: control target
= control target key end

     0   :  { %10 = vsyncpa [#allocation3], 0  ;;  %s6823_s0 = inlined_call_operand.vmem [shape: f32[2,16,8,16], index: 0, kind: input, shape index: {}]   ;;  %s6824_s1 = inlined_call_operand.vmem [shape: f32[4,10,16], index: 1, kind: input, shape index: {}]   ;;  %s6825_s2 = inlined_call_operand.vmem [shape: f32[16,34], index: 2, kind: input, shape index: {}]   ;;  %s6826_s3 = inlined_call_operand.vmem [shape: f32[72,16], index: 3, kind: input, shape index: {}]   ;;  %s6827_s4 = inlined_call_operand.vmem [shape: f32[1,1,16], index: 4, kind: input, shape index: {}]   ;;  %s6828_s5 = inlined_call_operand.hbm [shape: f32[2,16,32,32], index: 5, kind: output, shape index: {}]  }
   0x1   :  { %12 = vsyncpa [#allocation3 + $0x1], 0  ;;  %s4428_s18 = smov 0   ;;  %s4430_s19 = smov 0  }
   0x2   :  { %s4432_s20 = smov 0   ;;  %s4434_s21 = smov 0  }
   0x3   :  { %s4436_s22 = smov 0   ;;  %s4438_s23 = smov 0  }
   0x4   :  { %s4440_s24 = smov 0   ;;  %s4442_s25 = smov 0  }
   0x5 LB: > { %s3894_s26 = sadd.s32 4294967295, %s4379_s25   ;;  %s3895_s27 = sadd.s32 4294967294, %s4379_s25   ;;  %s4379_s25 = sphi %s4442_s25, %s18_s25   ;;  %s4375_s24 = sphi %s4440_s24, %s7220_s24   ;;  %s4371_s23 = sphi %s4438_s23, %s7219_s23   ;;  %s4367_s22 = sphi %s4436_s22, %s7218_s22   ;;  %s4363_s21 = sphi %s4434_s21, %s7217_s21   ;;  %s4359_s20 = sphi %s4432_s20, %s7216_s20   ;;  %s4355_s19 = sphi %s4430_s19, %s7215_s19   ;;  %s4351_s18 = sphi %s4428_s18, %s7214_s18  }
   0x6   : > { %s27_s28 = sadd.s32 1, %s4371_s23  ;;  %s30_s29 = sadd.s32 1, %s4375_s24 }
   0x7   : > { %p28_p0 = scmp.ge.s32.totalorder %s27_s28, 4  ;;  %p164_p1 = scmp.ne.s32.totalorder %s4359_s20, %s4355_s19 }
   0x8   : > { %p165_p2 = scmp.eq.s32.totalorder %s3894_s26, 7  ;;  %p170_p5 = scmp.ne.s32.totalorder %s4355_s19, %s4351_s18 }
   0x9   : > { %s7222_s28 = smov (%p28_p0, %s27_s28), 0  ;;  %s7224_s29 = smov (!%p28_p0, %s30_s29), %s4375_s24 }
   0xa   : > { %s150_s30 = ssub.s32 %s4371_s23, %s7222_s28  ;;  %p4479_p3 = por %p165_p2, %p164_p1 }
   0xb   : > { %p32_p4 = scmp.ge.s32.totalorder %s7224_s29, 2  ;;  %p171_p6 = scmp.eq.s32.totalorder %s3895_s27, 7 }
   0xc   : > { %p3898_p7 = scmp.ge.s32.totalorder %s4379_s25, 1  ;;  %p214_p9 = scmp.lt.s32.totalorder %s4379_s25, 9 }
   0xd   : > { %s7226_s29 = smov (%p32_p4, %s7224_s29), 0  ;;  %p4488_p8 = por %p171_p6, %p170_p5 }
   0xe   : > { %s149_s8 = ssub.s32 %s4375_s24, %s7226_s29  ;;  %s154_s9 = sadd.s32 1, %s4359_s20 }
   0xf   : > { %s151_s10 = sor.u32 %s150_s30, %s149_s8  ;;  %p215_p10 = pnand %p3898_p7, %p214_p9 }
  0x10   : > { %p152_p11 = scmp.eq.s32.totalorder %s151_s10, 0 }
  0x11   : > { %218 = sbr.rel (%p215_p10) target bundleno = 1919 (0x77f), region = 40 }
  0x12   : > { %s4497_s11 = scalar_select %p152_p11, %s4359_s20, %s154_s9  }
  0x18   : > { %v280_v0 = vlaneseq  ;;  %v4381_v1 = vmov 1934713408   ;;  %v4382_v3 = vmov 1983009808   ;;  %p247_p12 = scmp.lt.s32.totalorder %s4367_s22, 1  ;;  %v4383_v7 = vmov 0.0  }
  0x19   : > { %v342_v2 = vunpack.c.l.s4 %v4381_v1  ;;  %v278_v4 = vunpack.c.l.s4 %v4382_v3  ;;  %v624_v8 = vcombine.low %v4383_v7, %v4383_v7  ;;  %s4384_s17 = smov 16   ;;  %s4385_s26 = smov 32   ;;  %vm603_vm0 = vcmask 130048  }
  0x1a   : > { %v281_v5 = vshrl.u32 %v280_v0, 7  ;;  %s248_s12 = scalar_select %p247_p12, %s4367_s22, 1  ;;  %vm606_vm1 = vcmask 261120   ;;  %vm609_vm2 = vcmask 392192   ;;  %vm612_vm3 = vcmask 523264  }
  0x1b   : > { %v343_v6 = vunpack.c.0.s8 %v342_v2  ;;  %v279_v9 = vunpack.c.0.s8 %v278_v4  ;;  %s4386_s27 = smov 48   ;;  %p252_p13 = scmp.lt.s32.totalorder %s4363_s21, 3  ;;  %vm615_vm4 = vcmask 654336   ;;  %vm618_vm5 = vcmask 785408  }
  0x1c   : > { %s3954_s13 = sshll.u32 %s248_s12, 7  ;;  %s4388_s14 = smov 80   ;;  %vm621_vm6 = vcmask 916480   ;;  %vm1594_vm7 = vcmask 1046528   ;;  %vm1763_vm8 = vcmask 1045504   ;;  %vm2554_vm9 = vcmask 64512  }
  0x1d   : > { %v4503_v10 = vsub.s32 %v343_v6, %v281_v5  ;;  %v4505_v11 = vsub.s32 %v279_v9, %v281_v5  ;;  %s4510_s16 = scalar_lea.vmem %s6823_s0, %s3954_s13  ;;  %s4387_s13 = smov 64   ;;  %vm2619_vm10 = vcmask 195584   ;;  %vm2684_vm11 = vcmask 326656  }
  0x1e   : > { %v4261_v19 = vld [vmem:[%s4510_s16] ss:$16 sps:$4 sm:$0xff]   ;;  %v4263_v20 = vld [vmem:[%s4510_s16 + $0x8] ss:$16 sps:$4 sm:$0xff]   ;;  %v4277_v34 = vld [vmem:[%s4510_s16 + $0x4] ss:$16 sps:$4 sm:$0xff]  }
  0x1f   : > { %6903 = vst [vmem:[#allocation5_spill] sm:$0xff] %v4503_v10  ;;  %6904 = vst [vmem:[#allocation6_spill] sm:$0xff] %v4505_v11  ;;  %v4513_v12 = vrot.slane %v624_v8, %v4503_v10  ;;  %v632_v13 = vrot.slane %v624_v8, %v4505_v11  ;;  %v4265_v22 = vld [vmem:[%s4510_s16 + $0x20] ss:$16 sps:$4 sm:$0xff]   ;;  %v4267_v23 = vld [vmem:[%s4510_s16 + $0x28] ss:$16 sps:$4 sm:$0xff]   ;;  %v283_v25 = vrot.slane %v4261_v19, %v4505_v11 }
  0x20   : > { %v4269_v24 = vld [vmem:[%s4510_s16 + $0x40] ss:$16 sps:$4 sm:$0xff]   ;;  %v299_v26 = vrot.slane %v4263_v20, %v4505_v11  ;;  %v4271_v27 = vld [vmem:[%s4510_s16 + $0x48] ss:$16 sps:$4 sm:$0xff]   ;;  %v315_v31 = vrot.slane %v4265_v22, %v4505_v11  ;;  %v331_v32 = vrot.slane %v4267_v23, %v4505_v11  ;;  %v4278_v39 = vld [vmem:[%s4510_s16 + $0xc] ss:$16 sps:$4 sm:$0xff]   ;;  %v290_v43 = vrot.slane %v4277_v34, %v4505_v11 }
  0x21   : > { %v702_v14 = vcombine.high %v4513_v12, %v4383_v7  ;;  %v640_v15 = vcombine.low %v632_v13, %v632_v13  ;;  %v641_v16 = vcombine.high %v632_v13, %v632_v13  ;;  %v4273_v28 = vld [vmem:[%s4510_s16 + $0x60] ss:$16 sps:$4 sm:$0xff]   ;;  %v4275_v29 = vld [vmem:[%s4510_s16 + $0x68] ss:$16 sps:$4 sm:$0xff]   ;;  %v419_v33 = vrot.slane %v4269_v24, %v4505_v11  ;;  %v4279_v48 = vld [vmem:[%s4510_s16 + $0x24] ss:$16 sps:$4 sm:$0xff]  }
  0x22   : > { %v339_v35 = vcombine.low %v283_v25, %v299_v26  ;;  %v435_v36 = vrot.slane %v4271_v27, %v4505_v11  ;;  %v451_v37 = vrot.slane %v4273_v28, %v4505_v11  ;;  %v467_v38 = vrot.slane %v4275_v29, %v4505_v11  ;;  %v4280_v53 = vld [vmem:[%s4510_s16 + $0x2c] ss:$16 sps:$4 sm:$0xff]   ;;  %v4281_v58 = vld [vmem:[%s4510_s16 + $0x44] ss:$16 sps:$4 sm:$0xff]   ;;  %s253_s30 = scalar_select %p252_p13, %s4363_s21, 3 }
  0x23   : > { %710 = vrot.lane.b32.xlu0 %v702_v14, %s4384_s17  ;;  %v4520_v17 = vrot.slane %v640_v15, %v4503_v10  ;;  %v4523_v18 = vrot.slane %v641_v16, %v4503_v10  ;;  %v371_v40 = vcombine.low %v315_v31, %v331_v32  ;;  %v340_v41 = vcombine.high %v283_v25, %v299_v26  ;;  %v4282_v59 = vld [vmem:[%s4510_s16 + $0x4c] ss:$16 sps:$4 sm:$0xff]   ;;  %v4283_v60 = vld [vmem:[%s4510_s16 + $0x64] ss:$16 sps:$4 sm:$0xff]   ;;  %s4389_s15 = smov 96  }
  0x24   : > { %v372_v42 = vcombine.high %v315_v31, %v331_v32  ;;  %v4550_v44 = vrot.slane %v339_v35, %v4503_v10  ;;  %v475_v45 = vcombine.low %v419_v33, %v435_v36  ;;  %v507_v46 = vcombine.low %v451_v37, %v467_v38  ;;  %v4284_v5 = vld [vmem:[%s4510_s16 + $0x6c] ss:$16 sps:$4 sm:$0xff]   ;;  %s3955_s8 = sshll.u32 %s253_s30, 4  ;;  %s4390_s16 = smov 112  }
  0x25   : > { %v673_v21 = vcombine.high %v4520_v17, %v4520_v17  ;;  %v674_v30 = vcombine.low %v4523_v18, %v4523_v18  ;;  %v476_v47 = vcombine.high %v419_v33, %v435_v36  ;;  %v4555_v49 = vrot.slane %v371_v40, %v4503_v10  ;;  %s4606_s12 = scalar_lea.vmem %s6824_s1, %s3955_s8 }
  0x26   : > { %v354_v50 = vrot.slane %v340_v41, %v4503_v10  ;;  %v386_v51 = vrot.slane %v372_v42, %v4503_v10  ;;  %v508_v52 = vcombine.high %v451_v37, %v467_v38  ;;  %v4561_v54 = vrot.slane %v475_v45, %v4503_v10 }
  0x27   : > { %708 = vrot.lane.b32.xlu1 %v673_v21, %s4384_s17  ;;  %v4564_v55 = vrot.slane %v507_v46, %v4503_v10  ;;  %v490_v56 = vrot.slane %v476_v47, %v4503_v10  ;;  %v306_v57 = vrot.slane %v4278_v39, %v4505_v11  ;;  %v404_v61 = vcombine.high %v4550_v44, %v4555_v49 }
  0x28   : > { %v403_v62 = vcombine.low %v4550_v44, %v4555_v49  ;;  %v406_v63 = vcombine.high %v354_v50, %v386_v51  ;;  %v522_v0 = vrot.slane %v508_v52, %v4503_v10  ;;  %v405_v3 = vcombine.low %v354_v50, %v386_v51 }
  0x29   : > { %v539_v1 = vcombine.low %v4561_v54, %v4564_v55  ;;  %v540_v2 = vcombine.high %v4561_v54, %v4564_v55  ;;  %v322_v4 = vrot.slane %v4279_v48, %v4505_v11  ;;  %v338_v9 = vrot.slane %v4280_v53, %v4505_v11 }
  0x2a   : > { %v542_v6 = vcombine.high %v490_v56, %v522_v0  ;;  %v541_v8 = vcombine.low %v490_v56, %v522_v0  ;;  %v355_v13 = vcombine.low %v290_v43, %v306_v57  ;;  %v426_v15 = vrot.slane %v4281_v58, %v4505_v11 }
  0x2b   : > { %716 = vrot.lane.b32.xlu1 %v674_v30, %s4385_s26  ;;  %v4226_v14 = vpack.i.bf16 %v540_v2, %v404_v61  ;;  %v442_v16 = vrot.slane %v4282_v59, %v4505_v11  ;;  %v458_v19 = vrot.slane %v4283_v60, %v4505_v11  ;;  %v387_v23 = vcombine.low %v322_v4, %v338_v9 }
  0x2c   : > { %v4236_v20 = vpack.i.bf16 %v542_v6, %v406_v63  ;;  %v4231_v21 = vpack.i.bf16 %v541_v8, %v405_v3  ;;  %v363_v22 = vrot.slane %v355_v13, %v4503_v10  ;;  %v474_v24 = vrot.slane %v4284_v5, %v4505_v11 }
  0x2d   : > { %4227 = vrot.lane.b32.xlu0 %v4226_v14, %s4384_s17  ;;  %v491_v25 = vcombine.low %v426_v15, %v442_v16  ;;  %v356_v26 = vcombine.high %v290_v43, %v306_v57  ;;  %v388_v27 = vcombine.high %v322_v4, %v338_v9  ;;  %v395_v28 = vrot.slane %v387_v23, %v4503_v10  ;;  %v257_v57 = vld [vmem:[%s4606_s12] sm:$0xff] }
  0x2e   : > { %v492_v29 = vcombine.high %v426_v15, %v442_v16  ;;  %v625_v30 = vcombine.high %v4383_v7, %v4383_v7  ;;  %v523_v32 = vcombine.low %v458_v19, %v474_v24  ;;  %v524_v36 = vcombine.high %v458_v19, %v474_v24  ;;  %4017 = vmatprep.mubr.msk.f32.mxu1 %vm603_vm0, %v257_v57 }
  0x2f   : > { %4237 = vrot.lane.b32.xlu1 %v4236_v20, %s4386_s27  ;;  %v499_v31 = vrot.slane %v491_v25, %v4503_v10  ;;  %v370_v33 = vrot.slane %v356_v26, %v4503_v10  ;;  %v402_v34 = vrot.slane %v388_v27, %v4503_v10  ;;  %v407_v37 = vcombine.low %v363_v22, %v395_v28 }
  0x30   : > { %v506_v35 = vrot.slane %v492_v29, %v4503_v10  ;;  %v531_v38 = vrot.slane %v523_v32, %v4503_v10  ;;  %v408_v39 = vcombine.high %v363_v22, %v395_v28  ;;  %v538_v40 = vrot.slane %v524_v36, %v4503_v10 }
  0x31   : > { %4232 = vrot.lane.b32.xlu0 %v4231_v21, %s4385_s26  ;;  %v639_v41 = vrot.slane %v625_v30, %v4505_v11  ;;  %v409_v45 = vcombine.low %v370_v33, %v402_v34  ;;  %v410_v46 = vcombine.high %v370_v33, %v402_v34  ;;  %v701_v58 = vrot.slane %v625_v30, %v4503_v10 }
  0x32   : > { %v543_v42 = vcombine.low %v499_v31, %v531_v38  ;;  %v544_v43 = vcombine.high %v499_v31, %v531_v38  ;;  %v545_v47 = vcombine.low %v506_v35, %v538_v40  ;;  %v546_v48 = vcombine.high %v506_v35, %v538_v40 }
  0x33   : > { %v656_v56 = vcombine.low %v639_v41, %v639_v41  ;;  %v675_v59 = vcombine.high %v4523_v18, %v4523_v18  ;;  %v657_v60 = vcombine.high %v639_v41, %v639_v41  ;;  %v703_v18 = vcombine.high %v701_v58, %v4383_v7 }
  0x34   : > { %v4241_v50 = vpack.i.bf16 %v543_v42, %v407_v37  ;;  %v4246_v51 = vpack.i.bf16 %v544_v43, %v408_v39  ;;  %v4251_v52 = vpack.i.bf16 %v545_v47, %v409_v45  ;;  %v4256_v53 = vpack.i.bf16 %v546_v48, %v410_v46 }
  0x35   : > { %v664_v61 = vrot.slane %v656_v56, %v4503_v10  ;;  %v671_v2 = vrot.slane %v657_v60, %v4503_v10  ;;  %v672_v38 = vcombine.low %v4520_v17, %v4520_v17  ;;  %v258_v56 = vld [vmem:[%s4606_s12 + $0x8] sm:$0x3]  ;;  %s4391_s12 = smov 24   ;;  %vm2749_vm12 = vcmask 457728  }
  0x36   : > { %4242 = vrot.lane.b32.xlu1 %v4241_v50, %s4387_s13  ;;  %4247 = vrot.lane.b32.xlu0 %v4246_v51, %s4388_s14  ;;  %vm2830_vm13 = vcmask 588800  }
  0x37   : > { %v676_v63 = vcombine.low %v664_v61, %v664_v61  ;;  %v677_v0 = vcombine.high %v664_v61, %v664_v61  ;;  %v678_v3 = vcombine.low %v671_v2, %v671_v2  ;;  %v679_v4 = vcombine.high %v671_v2, %v671_v2 }
  0x38   : > { %v704_v5 = vcombine.high %v664_v61, %v4383_v7  ;;  %v705_v6 = vcombine.high %v671_v2, %v4383_v7 }
  0x3a   : > { %4252 = vrot.lane.b32.xlu1 %v4251_v52, %s4389_s15  ;;  %4257 = vrot.lane.b32.xlu0 %v4256_v53, %s4390_s16 }
  0x3e   : > { %724 = vrot.lane.b32.xlu1 %v675_v59, %s4386_s27  ;;  %718 = vrot.lane.b32.xlu0 %v701_v58, %s4385_s26 }
  0x42   : > { %732 = vrot.lane.b32.xlu0 %v676_v63, %s4387_s13  ;;  %740 = vrot.lane.b32.xlu1 %v677_v0, %s4388_s14 }
  0x46   : > { %748 = vrot.lane.b32.xlu0 %v678_v3, %s4389_s15  ;;  %756 = vrot.lane.b32.xlu1 %v679_v4, %s4390_s16 }
  0x4a   : > { %726 = vrot.lane.b32.xlu0 %v703_v18, %s4386_s27  ;;  %734 = vrot.lane.b32.xlu1 %v664_v61, %s4387_s13 }
  0x4e   : > { %742 = vrot.lane.b32.xlu0 %v704_v5, %s4388_s14  ;;  %750 = vrot.lane.b32.xlu1 %v671_v2, %s4389_s15 }
  0x52   : > { %758 = vrot.lane.b32.xlu0 %v705_v6, %s4390_s16 }
  0x95   : > { %v4633_v9 = vpop.permute.xlu0 %710 }
  0x96   : > { %v763_v0 = vsel %vm603_vm0, %v4513_v12, %v4633_v9 }
  0x99   : > { %v709_v8 = vpop.permute.xlu1 %708 }
  0x9a   : > { %v762_v50 = vsel %vm603_vm0, %v672_v38, %v709_v8 }
  0x9d   : > { %v717_v13 = vpop.permute.xlu1 %716 }
  0x9e   : > { %v764_v17 = vsel %vm606_vm1, %v762_v50, %v717_v13 }
  0x9f   : > { %v4228_v14 = vpop.permute.xlu0 %4227 }
  0xa0   : > { %v4230_v15 = vunpack.i.h.bf16 %v4228_v14  ;;  %v4229_v16 = vunpack.i.l.bf16 %v4228_v14 }
  0xa1   : > { %v4238_v19 = vpop.permute.xlu1 %4237 }
  0xa2   : > { %v605_v23 = vsel %vm603_vm0, %v539_v1, %v4230_v15  ;;  %v604_v7 = vsel %vm603_vm0, %v403_v62, %v4229_v16  ;;  %v4240_v24 = vunpack.i.h.bf16 %v4238_v19  ;;  %v4239_v25 = vunpack.i.l.bf16 %v4238_v19 }
  0xa3   : > { %v4233_v20 = vpop.permute.xlu0 %4232 }
  0xa4   : > { %v4235_v21 = vunpack.i.h.bf16 %v4233_v20  ;;  %v4234_v22 = vunpack.i.l.bf16 %v4233_v20 }
  0xa6   : > { %v607_v26 = vsel %vm606_vm1, %v604_v7, %v4234_v22  ;;  %v608_v27 = vsel %vm606_vm1, %v605_v23, %v4235_v21  ;;  %v1087_v21 = vld [vmem:[%s6825_s2] sm:$0xff]  ;;  %v1088_v22 = vld [vmem:[%s6825_s2 + $0x8] sm:$0xff] }
  0xa7   : > { %v610_v55 = vsel %vm609_vm2, %v607_v26, %v4239_v25  ;;  %v611_v1 = vsel %vm609_vm2, %v608_v27, %v4240_v24  ;;  %v4109_v23 = vpack.c.bf16 %v1088_v22, %v1087_v21 }
  0xa8   : > { %v4243_v28 = vpop.permute.xlu1 %4242  ;;  %v4248_v29 = vpop.permute.xlu0 %4247 }
  0xa9   : > { %v4245_v30 = vunpack.i.h.bf16 %v4243_v28  ;;  %v4244_v54 = vunpack.i.l.bf16 %v4243_v28  ;;  %v4250_v44 = vunpack.i.h.bf16 %v4248_v29  ;;  %v4249_v49 = vunpack.i.l.bf16 %v4248_v29 }
  0xab   : > { %v613_v62 = vsel %vm612_vm3, %v610_v55, %v4244_v54  ;;  %v614_v31 = vsel %vm612_vm3, %v611_v1, %v4245_v30 }
  0xac   : > { %v4253_v32 = vpop.permute.xlu1 %4252  ;;  %v4258_v33 = vpop.permute.xlu0 %4257  ;;  %v616_v39 = vsel %vm615_vm4, %v613_v62, %v4249_v49  ;;  %v617_v40 = vsel %vm615_vm4, %v614_v31, %v4250_v44 }
  0xad   : > { %v4255_v34 = vunpack.i.h.bf16 %v4253_v32  ;;  %v4254_v35 = vunpack.i.l.bf16 %v4253_v32  ;;  %v4260_v36 = vunpack.i.h.bf16 %v4258_v33  ;;  %v4259_v37 = vunpack.i.l.bf16 %v4258_v33 }
  0xaf   : > { %v619_v41 = vsel %vm618_vm5, %v616_v39, %v4254_v35  ;;  %v620_v42 = vsel %vm618_vm5, %v617_v40, %v4255_v34 }
  0xb0   : > { %v725_v43 = vpop.permute.xlu1 %724  ;;  %v719_v45 = vpop.permute.xlu0 %718  ;;  %v622_v46 = vsel %vm621_vm6, %v619_v41, %v4259_v37  ;;  %v623_v47 = vsel %vm621_vm6, %v620_v42, %v4260_v36 }
  0xb1   : > { %v4105_v48 = vpack.c.bf16 %v623_v47, %v622_v46  ;;  %v766_v51 = vsel %vm609_vm2, %v764_v17, %v725_v43  ;;  %v765_v2 = vsel %vm606_vm1, %v763_v0, %v719_v45 }
  0xb3   : > { %4106 = vmatprep.subr.bf16.mxu1 %v4105_v48 }
  0xb4   : > { %v733_v52 = vpop.permute.xlu0 %732  ;;  %4108 = vmatpush3.bf16.msra.mxu1 %v4105_v48  ;;  %v741_v53 = vpop.permute.xlu1 %740 }
  0xb5   : > { %v768_v57 = vsel %vm612_vm3, %v766_v51, %v733_v52  ;;  %4110 = vmatprep.subr.bf16.mxu1 %v4109_v23 }
  0xb6   : > { %v770_v58 = vsel %vm615_vm4, %v768_v57, %v741_v53 }
  0xb7   : > { %4018 = vmatmul.mubr.msk.f32.vlgmr.msra.gmra.mrb[0].mxu1 %vm603_vm0, %v258_v56 }
  0xb8   : > { %v749_v59 = vpop.permute.xlu0 %748  ;;  %v757_v60 = vpop.permute.xlu1 %756  ;;  %4112 = vmatpush3.bf16.msra.mxu1 %v4109_v23 }
  0xb9   : > { %v772_v61 = vsel %vm618_vm5, %v770_v58, %v749_v59 }
  0xba   : > { %v774_v63 = vsel %vm621_vm6, %v772_v61, %v757_v60 }
  0xbc   : > { %v727_v3 = vpop.permute.xlu0 %726  ;;  %v735_v4 = vpop.permute.xlu1 %734 }
  0xbd   : > { %v767_v18 = vsel %vm609_vm2, %v765_v2, %v727_v3 }
  0xbe   : > { %v769_v5 = vsel %vm612_vm3, %v767_v18, %v735_v4 }
  0xc0   : > { %v743_v6 = vpop.permute.xlu0 %742  ;;  %v751_v8 = vpop.permute.xlu1 %750 }
  0xc1   : > { %v771_v13 = vsel %vm615_vm4, %v769_v5, %v743_v6 }
  0xc2   : > { %v773_v14 = vsel %vm618_vm5, %v771_v13, %v751_v8 }
  0xc4   : > { %v759_v15 = vpop.permute.xlu0 %758 }
  0xc5   : > { %v775_v16 = vsel %vm621_vm6, %v773_v14, %v759_v15 }
 0x18a   : > { %v4019_v19 = vpop.f32.mrb[0].mxu1 }
 0x18b   : > { %v4675_v20 = vadd.f32 %v4019_v19, %v775_v16  ;;  %v848_v12 = vpop.f32.mrb[1].mxu1 }
 0x18c   : > { %v849_v9 = vadd.f32 %v848_v12, %v774_v63 }
 0x18d   : > { %861 = vrot.lane.b32.xlu0 %v4675_v20, %s4390_s16 }
 0x18e   : > { %859 = vrot.lane.b32.xlu1 %v849_v9, %s4390_s16  ;;  %s4394_s16 = smov 56  }
 0x191   : > { %867 = vrot.lane.b32.xlu0 %v4675_v20, %s4389_s15 }
 0x192   : > { %865 = vrot.lane.b32.xlu1 %v849_v9, %s4389_s15  ;;  %s4393_s15 = smov 40  }
 0x195   : > { %873 = vrot.lane.b32.xlu0 %v4675_v20, %s4388_s14 }
 0x196   : > { %871 = vrot.lane.b32.xlu1 %v849_v9, %s4388_s14  ;;  %s4392_s14 = smov 8  }
 0x199   : > { %879 = vrot.lane.b32.xlu0 %v4675_v20, %s4387_s13 }
 0x19a   : > { %877 = vrot.lane.b32.xlu1 %v849_v9, %s4387_s13 }
 0x19d   : > { %885 = vrot.lane.b32.xlu0 %v4675_v20, %s4386_s27 }
 0x19e   : > { %883 = vrot.lane.b32.xlu1 %v849_v9, %s4386_s27 }
 0x1a1   : > { %891 = vrot.lane.b32.xlu0 %v4675_v20, %s4385_s26 }
 0x1a2   : > { %889 = vrot.lane.b32.xlu1 %v849_v9, %s4385_s26 }
 0x1a5   : > { %897 = vrot.lane.b32.xlu0 %v4675_v20, %s4384_s17 }
 0x1a6   : > { %895 = vrot.lane.b32.xlu1 %v849_v9, %s4384_s17 }
 0x1ff   : > { %v862_v7 = vpop.permute.xlu0 %861 }
 0x200   : > { %v860_v24 = vpop.permute.xlu1 %859 }
 0x203   : > { %v868_v25 = vpop.permute.xlu0 %867 }
 0x204   : > { %v866_v26 = vpop.permute.xlu1 %865  ;;  %v1037_v3 = vcombine.low %v4675_v20, %v868_v25 }
 0x205   : > { %v901_v44 = vcombine.low %v849_v9, %v866_v26  ;;  %v902_v39 = vcombine.high %v849_v9, %v866_v26 }
 0x206   : > { %v1044_v19 = vrot.slane %v1037_v3, %v4505_v11 }
 0x207   : > { %v874_v27 = vpop.permute.xlu0 %873  ;;  %v909_v33 = vrot.slane %v901_v44, %v4505_v11  ;;  %v916_v51 = vrot.slane %v902_v39, %v4505_v11 }
 0x208   : > { %v872_v28 = vpop.permute.xlu1 %871  ;;  %v1045_v59 = vcombine.low %v862_v7, %v874_v27 }
 0x209   : > { %v917_v1 = vcombine.low %v860_v24, %v872_v28  ;;  %v918_v34 = vcombine.high %v860_v24, %v872_v28 }
 0x20a   : > { %v1052_v8 = vrot.slane %v1045_v59, %v4505_v11 }
 0x20b   : > { %v880_v29 = vpop.permute.xlu0 %879  ;;  %v925_v62 = vrot.slane %v917_v1, %v4505_v11  ;;  %v932_v45 = vrot.slane %v918_v34, %v4505_v11 }
 0x20c   : > { %v878_v30 = vpop.permute.xlu1 %877  ;;  %v1069_v21 = vcombine.low %v1044_v19, %v1052_v8 }
 0x20d   : > { %v965_v40 = vcombine.low %v909_v33, %v925_v62  ;;  %v966_v47 = vcombine.high %v909_v33, %v925_v62  ;;  %v981_v60 = vcombine.low %v916_v51, %v932_v45  ;;  %v982_v13 = vcombine.high %v916_v51, %v932_v45 }
 0x20e   : > { %v1076_v25 = vrot.slane %v1069_v21, %v4503_v10 }
 0x20f   : > { %v886_v54 = vpop.permute.xlu0 %885  ;;  %v973_v52 = vrot.slane %v965_v40, %v4503_v10  ;;  %v980_v2 = vrot.slane %v966_v47, %v4503_v10  ;;  %v989_v15 = vrot.slane %v981_v60, %v4503_v10  ;;  %v996_v22 = vrot.slane %v982_v13, %v4503_v10 }
 0x210   : > { %v884_v55 = vpop.permute.xlu1 %883 }
 0x213   : > { %v892_v31 = vpop.permute.xlu0 %891 }
 0x214   : > { %v890_v49 = vpop.permute.xlu1 %889  ;;  %v1053_v61 = vcombine.low %v880_v29, %v892_v31 }
 0x215   : > { %v933_v32 = vcombine.low %v878_v30, %v890_v49  ;;  %v934_v36 = vcombine.high %v878_v30, %v890_v49 }
 0x216   : > { %v1060_v14 = vrot.slane %v1053_v61, %v4505_v11 }
 0x217   : > { %v941_v41 = vrot.slane %v933_v32, %v4505_v11  ;;  %v898_v46 = vpop.permute.xlu0 %897  ;;  %v948_v48 = vrot.slane %v934_v36, %v4505_v11 }
 0x218   : > { %v896_v35 = vpop.permute.xlu1 %895  ;;  %v1061_v53 = vcombine.low %v886_v54, %v898_v46 }
 0x219   : > { %v949_v37 = vcombine.low %v884_v55, %v896_v35  ;;  %v950_v38 = vcombine.high %v884_v55, %v896_v35 }
 0x21a   : > { %v1068_v4 = vrot.slane %v1061_v53, %v4505_v11 }
 0x21b   : > { %v957_v42 = vrot.slane %v949_v37, %v4505_v11  ;;  %v964_v43 = vrot.slane %v950_v38, %v4505_v11 }
 0x21c   : > { %v1077_v20 = vcombine.low %v1060_v14, %v1068_v4 }
 0x21d   : > { %v997_v50 = vcombine.low %v941_v41, %v957_v42  ;;  %v998_v17 = vcombine.high %v941_v41, %v957_v42  ;;  %v1013_v56 = vcombine.low %v948_v48, %v964_v43  ;;  %v1014_v18 = vcombine.high %v948_v48, %v964_v43 }
 0x21e   : > { %v1084_v7 = vrot.slane %v1077_v20, %v4503_v10 }
 0x21f   : > { %v1005_v57 = vrot.slane %v997_v50, %v4503_v10  ;;  %v1012_v58 = vrot.slane %v998_v17, %v4503_v10  ;;  %v1021_v6 = vrot.slane %v1013_v56, %v4503_v10  ;;  %v1028_v9 = vrot.slane %v1014_v18, %v4503_v10 }
 0x220   : > { %v1085_v27 = vcombine.low %v1076_v25, %v1084_v7  ;;  %v1086_v28 = vcombine.high %v1076_v25, %v1084_v7 }
 0x221   : > { %v1029_v63 = vcombine.low %v973_v52, %v1005_v57  ;;  %v1030_v0 = vcombine.high %v973_v52, %v1005_v57  ;;  %v1031_v5 = vcombine.low %v980_v2, %v1012_v58  ;;  %v1032_v16 = vcombine.high %v980_v2, %v1012_v58 }
 0x222   : > { %v1033_v12 = vcombine.low %v989_v15, %v1021_v6  ;;  %v1034_v23 = vcombine.high %v989_v15, %v1021_v6  ;;  %v1035_v24 = vcombine.low %v996_v22, %v1028_v9  ;;  %v1036_v26 = vcombine.high %v996_v22, %v1028_v9 }
 0x223   : > { %4024 = vmatprep.mubr.msk.f32.mxu1 %vm603_vm0, %v1029_v63 }
 0x224   : > { %4025 = vmatmul.mubr.msk.f32.vlgmr.msra.gmra.mrb[2].mxu1 %vm603_vm0, %v1030_v0 }
 0x225   : > { %4027 = vmatprep.mubr.msk.f32.mxu1 %vm603_vm0, %v1031_v5 }
 0x228   : > { %4028 = vmatmul.mubr.msk.f32.gmra.mrb[4].mxu1 %vm603_vm0, %v1032_v16 }
 0x229   : > { %4030 = vmatprep.mubr.msk.f32.mxu1 %vm603_vm0, %v1033_v12 }
 0x22c   : > { %4031 = vmatmul.mubr.msk.f32.gmra.mrb[6].mxu1 %vm603_vm0, %v1034_v23 }
 0x22d   : > { %4033 = vmatprep.mubr.msk.f32.mxu1 %vm603_vm0, %v1035_v24 }
 0x230   : > { %4034 = vmatmul.mubr.msk.f32.gmra.mrb[8].mxu1 %vm603_vm0, %v1036_v26 }
 0x231   : > { %4036 = vmatprep.mubr.msk.f32.mxu1 %vm603_vm0, %v1085_v27 }
 0x234   : > { %4037 = vmatmul.mubr.msk.f32.gmra.mrb[10].mxu1 %vm603_vm0, %v1086_v28 }
 0x2f7   : > { %v4026_v29 = vpop.f32.mrb[2].mxu1 }
 0x2f8   : > { %1266 = vxpose.xlu0.b32.start.end [1/1] (short) (narrow) %v4026_v29, 40  ;;  %v1185_v30 = vpop.f32.mrb[3].mxu1 }
 0x2f9   : > { %1234 = vxpose.xlu1.b32.start.end [1/1] (short) (narrow) %v1185_v30, 40 }
 0x2fb   : > { %v4029_v54 = vpop.f32.mrb[4].mxu1 }
 0x2fc   : > { %v1195_v55 = vpop.f32.mrb[5].mxu1 }
 0x2ff   : > { %v4032_v1 = vpop.f32.mrb[6].mxu1 }
 0x300   : > { %v1205_v44 = vpop.f32.mrb[7].mxu1 }
 0x303   : > { %v4035_v49 = vpop.f32.mrb[8].mxu1 }
 0x304   : > { %v1215_v62 = vpop.f32.mrb[9].mxu1 }
 0x307   : > { %v4038_v31 = vpop.f32.mrb[10].mxu1 }
 0x308   : > { %v1225_v32 = vpop.f32.mrb[11].mxu1 }
 0x309   : > { %1298 = vxpose.xlu0.b32.start.end [1/1] (short) (narrow) %v1195_v55, 40 }
 0x30a   : > { %1330 = vxpose.xlu1.b32.start.end [1/1] (short) (narrow) %v4029_v54, 40 }
 0x31a   : > { %1362 = vxpose.xlu0.b32.start.end [1/1] (short) (narrow) %v1205_v44, 40 }
 0x31b   : > { %1394 = vxpose.xlu1.b32.start.end [1/1] (short) (narrow) %v4032_v1, 40 }
 0x32b   : > { %1426 = vxpose.xlu0.b32.start.end [1/1] (short) (narrow) %v1215_v62, 40 }
 0x32c   : > { %1458 = vxpose.xlu1.b32.start.end [1/1] (short) (narrow) %v4035_v49, 40 }
 0x33c   : > { %1490 = vxpose.xlu0.b32.start.end [1/1] (short) (narrow) %v1225_v32, 40 }
 0x33d   : > { %1522 = vxpose.xlu1.b32.start.end [1/1] (short) (narrow) %v4038_v31, 40 }
 0x378   : > { %v4737_v33 = vpop.trf.xlu0 }
 0x379   : > { %v4739_v34 = vpop.trf.xlu1  ;;  %1936 = vrot.lane.b32.xlu1 %v4737_v33, %s4391_s12  ;;  %v1604_v48 = vrot.slane %v4737_v33, 1  ;;  %v1773_v17 = vrot.slane %v4737_v33, 2 }
 0x37a   : > { %v1595_v59 = vrot.slane %v4739_v34, 1  ;;  %v1764_v3 = vrot.slane %v4739_v34, 2 }
 0x37c   : > { %v4743_v35 = vpop.trf.xlu0 }
 0x37d   : > { %6905 = vst [vmem:[#allocation7_spill] sm:$0xff] %v4743_v35  ;;  %v4745_v36 = vpop.trf.xlu1  ;;  %1938 = vrot.lane.b32.xlu0 %v4743_v35, %s4391_s12  ;;  %v1605_v50 = vrot.slane %v4743_v35, 1  ;;  %v1774_v51 = vrot.slane %v4743_v35, 2 }
 0x37e   : > { %v1596_v53 = vrot.slane %v4745_v36, 1  ;;  %v1765_v0 = vrot.slane %v4745_v36, 2 }
 0x37f   : > { %v1606_v57 = vsel %vm1594_vm7, %v1604_v48, %v1605_v50  ;;  %v1775_v58 = vsel %vm1763_vm8, %v1773_v17, %v1774_v51 }
 0x380   : > { %v4749_v37 = vpop.trf.xlu0  ;;  %v1597_v61 = vsel %vm1594_vm7, %v1595_v59, %v1596_v53  ;;  %v1766_v5 = vsel %vm1763_vm8, %v1764_v3, %v1765_v0 }
 0x381   : > { %6906 = vst [vmem:[#allocation8_spill] sm:$0xff] %v4749_v37  ;;  %v4751_v38 = vpop.trf.xlu1  ;;  %v1607_v8 = vrot.slane %v4749_v37, 1  ;;  %v1776_v16 = vrot.slane %v4749_v37, 2 }
 0x382   : > { %v6831_v28 = vrot.slane %v4751_v38, 2  ;;  %v6832_v49 = vrot.slane %v4751_v38, 1 }
 0x383   : > { %v1608_v15 = vsel %vm1594_vm7, %v1605_v50, %v1607_v8  ;;  %v1777_v12 = vsel %vm1763_vm8, %v1774_v51, %v1776_v16 }
 0x384   : > { %v4753_v39 = vpop.trf.xlu0  ;;  %v1768_v55 = vsel %vm1763_vm8, %v1765_v0, %v6831_v28  ;;  %v1599_v50 = vsel %vm1594_vm7, %v1596_v53, %v6832_v49 }
 0x385   : > { %6907 = vst [vmem:[#allocation9_spill] sm:$0xff] %v4753_v39  ;;  %v4755_v40 = vpop.trf.xlu1 }
 0x386   : > { %6908 = vst [vmem:[#allocation10_spill] sm:$0xff] %v4755_v40 }
 0x388   : > { %v4757_v41 = vpop.trf.xlu0 }
 0x389   : > { %v4759_v42 = vpop.trf.xlu1 }
 0x38c   : > { %v4761_v43 = vpop.trf.xlu0 }
 0x38d   : > { %6909 = vst [vmem:[#allocation11_spill] sm:$0xff] %v4761_v43  ;;  %v4763_v45 = vpop.trf.xlu1  ;;  %v1613_v62 = vrot.slane %v4761_v43, 1  ;;  %v1782_v51 = vrot.slane %v4761_v43, 2 }
 0x38e   : > { %6910 = vst [vmem:[#allocation12_spill] sm:$0xff] %v4763_v45  ;;  %1952 = vrot.lane.b32.xlu1 %v4763_v45, %s4391_s12  ;;  %2255 = vrot.lane.b32.xlu0 %v4763_v45, %s4386_s27  ;;  %v1622_v23 = vrot.slane %v4763_v45, 1  ;;  %v1791_v27 = vrot.slane %v4763_v45, 2 }
 0x390   : > { %v4769_v46 = vpop.trf.xlu0 }
 0x391   : > { %6911 = vst [vmem:[#allocation13_spill] sm:$0xff] %v4769_v46  ;;  %v4771_v47 = vpop.trf.xlu1  ;;  %v6835_v31 = vrot.slane %v4769_v46, 1 }
 0x392   : > { %6912 = vst [vmem:[#allocation14_spill] sm:$0xff] %v4771_v47  ;;  %1944 = vrot.lane.b32.xlu1 %v4761_v43, %s4391_s12  ;;  %2247 = vrot.lane.b32.xlu0 %v4761_v43, %s4386_s27  ;;  %v1623_v22 = vrot.slane %v4771_v47, 1  ;;  %v1792_v24 = vrot.slane %v4771_v47, 2 }
 0x393   : > { %v1615_v17 = vsel %vm1594_vm7, %v1613_v62, %v6835_v31 }
 0x394   : > { %v4781_v52 = vpop.trf.xlu0  ;;  %v1624_v7 = vsel %vm1594_vm7, %v1622_v23, %v1623_v22  ;;  %v1793_v29 = vsel %vm1763_vm8, %v1791_v27, %v1792_v24 }
 0x395   : > { %6913 = vst [vmem:[#allocation15_spill] sm:$0xff] %v4781_v52  ;;  %v4784_v56 = vpop.trf.xlu1  ;;  %v6848_v45 = vrot.slane %v4781_v52, 2 }
 0x396   : > { %6914 = vst [vmem:[#allocation16_spill] sm:$0xff] %v4784_v56  ;;  %1675 = vrot.lane.b32.xlu1 %v1606_v57, %s4392_s14  ;;  %2147 = vrot.lane.b32.xlu0 %v1775_v58, %s4393_s15  ;;  %v6830_v23 = vrot.slane %v4784_v56, 1  ;;  %v6829_v27 = vrot.slane %v4784_v56, 2 }
 0x398   : > { %v4798_v63 = vpop.trf.xlu0  ;;  %v1795_v62 = vsel %vm1763_vm8, %v1792_v24, %v6829_v27 }
 0x399   : > { %v4791_v60 = vpop.trf.xlu1  ;;  %6916 = vst [vmem:[#allocation18_spill] sm:$0xff] %v4798_v63 }
 0x39a   : > { %6915 = vst [vmem:[#allocation17_spill] sm:$0xff] %v4791_v60  ;;  %1844 = vrot.lane.b32.xlu1 %v1775_v58, %s4384_s17  ;;  %1667 = vrot.lane.b32.xlu0 %v1597_v61, %s4392_s14 }
 0x39c   : > { %v4807_v4 = vpop.trf.xlu0 }
 0x39d   : > { %v4801_v2 = vpop.trf.xlu1 }
 0x39e   : > { %2042 = vrot.lane.b32.xlu1 %v1606_v57, %s4385_s26  ;;  %1954 = vrot.lane.b32.xlu0 %v4771_v47, %s4391_s12  ;;  %v6833_v57 = vrot.slane %v4769_v46, 2 }
 0x3a0   : > { %v4819_v6 = vpop.trf.xlu0  ;;  %v1784_v58 = vsel %vm1763_vm8, %v1782_v51, %v6833_v57 }
 0x3a1   : > { %v4809_v18 = vpop.trf.xlu1  ;;  %6918 = vst [vmem:[#allocation20_spill] sm:$0xff] %v4819_v6 }
 0x3a2   : > { %6917 = vst [vmem:[#allocation19_spill] sm:$0xff] %v4809_v18  ;;  %1836 = vrot.lane.b32.xlu1 %v1766_v5, %s4384_s17  ;;  %2271 = vrot.lane.b32.xlu0 %v4809_v18, %s4386_s27  ;;  %v1640_v27 = vrot.slane %v4809_v18, 1  ;;  %v1809_v11 = vrot.slane %v4809_v18, 2 }
 0x3a4   : > { %v4828_v14 = vpop.trf.xlu0 }
 0x3a5   : > { %v4822_v13 = vpop.trf.xlu1 }
 0x3a6   : > { %1940 = vrot.lane.b32.xlu1 %v4749_v37, %s4391_s12  ;;  %1946 = vrot.lane.b32.xlu0 %v4769_v46, %s4391_s12  ;;  %6919 = vst [vmem:[#allocation21_spill] sm:$0xff] %v4822_v13  ;;  %v2815_v37 = vld [vmem:[%s6826_s3 + $0x8] sm:$0xff] }
 0x3a8   : > { %v4839_v20 = vpop.trf.xlu0 }
 0x3a9   : > { %v4837_v19 = vpop.trf.xlu1 }
 0x3aa   : > { %1968 = vrot.lane.b32.xlu1 %v4809_v18, %s4391_s12  ;;  %2263 = vrot.lane.b32.xlu0 %v4819_v6, %s4386_s27 }
 0x3ac   : > { %v4849_v21 = vpop.trf.xlu0 }
 0x3ad   : > { %v4847_v9 = vpop.trf.xlu1  ;;  %6920 = vst [vmem:[#allocation22_spill] sm:$0xff] %v4849_v21 }
 0x3ae   : > { %2257 = vrot.lane.b32.xlu1 %v4771_v47, %s4386_s27  ;;  %1677 = vrot.lane.b32.xlu0 %v1608_v15, %s4392_s14  ;;  %v6847_v47 = vrot.slane %v4822_v13, 2 }
 0x3b0   : > { %v4862_v26 = vpop.trf.xlu0 }
 0x3b1   : > { %v4860_v25 = vpop.trf.xlu1 }
 0x3b2   : > { %1960 = vrot.lane.b32.xlu1 %v4819_v6, %s4391_s12  ;;  %1846 = vrot.lane.b32.xlu0 %v1777_v12, %s4384_s17 }
 0x3b4   : > { %v4871_v54 = vpop.trf.xlu0 }
 0x3b5   : > { %v4869_v30 = vpop.trf.xlu1  ;;  %6921 = vst [vmem:[#allocation23_spill] sm:$0xff] %v4871_v54 }
 0x3b6   : > { %2249 = vrot.lane.b32.xlu1 %v4769_v46, %s4386_s27  ;;  %2044 = vrot.lane.b32.xlu0 %v1608_v15, %s4385_s26 }
 0x3b8   : > { %v4883_v44 = vpop.trf.xlu0 }
 0x3b9   : > { %v4881_v1 = vpop.trf.xlu1 }
 0x3ba   : > { %1691 = vrot.lane.b32.xlu1 %v1624_v7, %s4392_s14  ;;  %2361 = vrot.lane.b32.xlu0 %v1624_v7, %s4394_s16  ;;  %6922 = vst [vmem:[#allocation24_spill] sm:$0xff] %v4881_v1 }
 0x3bc   : > { %v4893_v48 = vpop.trf.xlu0 }
 0x3bd   : > { %v4891_v32 = vpop.trf.xlu1  ;;  %6924 = vst [vmem:[#allocation26_spill] sm:$0xff] %v4893_v48 }
 0x3be   : > { %1860 = vrot.lane.b32.xlu1 %v1793_v29, %s4384_s17  ;;  %2163 = vrot.lane.b32.xlu0 %v1793_v29, %s4393_s15  ;;  %6923 = vst [vmem:[#allocation25_spill] sm:$0xff] %v4891_v32 }
 0x3c0   : > { %v4914_v59 = vpop.trf.xlu0 }
 0x3c1   : > { %v4912_v53 = vpop.trf.xlu1 }
 0x3c2   : > { %2058 = vrot.lane.b32.xlu1 %v1624_v7, %s4385_s26  ;;  %1838 = vrot.lane.b32.xlu0 %v1768_v55, %s4384_s17  ;;  %6925 = vst [vmem:[#allocation27_spill] sm:$0xff] %v4912_v53  ;;  %v1626_v7 = vsel %vm1594_vm7, %v1623_v22, %v6830_v23  ;;  %v6838_v23 = vrot.slane %v4822_v13, 1 }
 0x3c4   : > { %v4921_v0 = vpop.trf.xlu0  ;;  %v1642_v57 = vsel %vm1594_vm7, %v1640_v27, %v6838_v23  ;;  %v6930_v27 = vrot.slane %v4769_v46, 1 }
 0x3c5   : > { %v4919_v61 = vpop.trf.xlu1 }
 0x3c6   : > { %2149 = vrot.lane.b32.xlu1 %v1777_v12, %s4393_s15  ;;  %1942 = vrot.lane.b32.xlu0 %v4753_v39, %s4391_s12 }
 0x3c8   : > { %v4933_v5 = vpop.trf.xlu0 }
 0x3c9   : > { %v4927_v3 = vpop.trf.xlu1 }
 0x3ca   : > { %2466 = vrot.lane.b32.xlu1 %v1793_v29, %s4387_s13  ;;  %1970 = vrot.lane.b32.xlu0 %v4822_v13, %s4391_s12 }
 0x3cc   : > { %v4940_v12 = vpop.trf.xlu0 }
 0x3cd   : > { %v4938_v15 = vpop.trf.xlu1 }
 0x3ce   : > { %1669 = vrot.lane.b32.xlu1 %v1599_v50, %s4392_s14  ;;  %2353 = vrot.lane.b32.xlu0 %v1615_v17, %s4394_s16 }
 0x3d0   : > { %v4952_v55 = vpop.trf.xlu0 }
 0x3d1   : > { %v4950_v29 = vpop.trf.xlu1 }
 0x3d2   : > { %1683 = vrot.lane.b32.xlu1 %v1615_v17, %s4392_s14  ;;  %2458 = vrot.lane.b32.xlu0 %v1784_v58, %s4387_s13 }
 0x3d4   : > { %v4965_v50 = vpop.trf.xlu0 }
 0x3d5   : > { %v4963_v22 = vpop.trf.xlu1 }
 0x3d6   : > { %1852 = vrot.lane.b32.xlu1 %v1784_v58, %s4384_s17  ;;  %2259 = vrot.lane.b32.xlu0 %v4784_v56, %s4386_s27 }
 0x3d9   : > { %v4971_v51 = vpop.trf.xlu1 }
 0x3da   : > { %1956 = vrot.lane.b32.xlu1 %v4784_v56, %s4391_s12  ;;  %2273 = vrot.lane.b32.xlu0 %v4822_v13, %s4386_s27  ;;  %6926 = vst [vmem:[#allocation28_spill] sm:$0xff] %v4971_v51 }
 0x3de   : > { %1984 = vrot.lane.b32.xlu1 %v4869_v30, %s4391_s12  ;;  %1962 = vrot.lane.b32.xlu0 %v4828_v14, %s4391_s12 }
 0x3e2   : > { %2050 = vrot.lane.b32.xlu1 %v1615_v17, %s4385_s26  ;;  %2251 = vrot.lane.b32.xlu0 %v4781_v52, %s4386_s27  ;;  %v6834_v17 = vrot.slane %v4753_v39, 1 }
 0x3e4   : > { %v1610_v24 = vsel %vm1594_vm7, %v1607_v8, %v6834_v17  ;;  %v6843_v8 = vrot.slane %v4781_v52, 1 }
 0x3e6   : > { %2155 = vrot.lane.b32.xlu1 %v1784_v58, %s4393_s15  ;;  %2265 = vrot.lane.b32.xlu0 %v4828_v14, %s4386_s27  ;;  %v4973_v58 = vpop.trf.xlu0  ;;  %v5012_v23 = vsel %vm1594_vm7, %v6930_v27, %v6843_v8  ;;  %v1811_v27 = vsel %vm1763_vm8, %v1809_v11, %v6847_v47  ;;  %v6932_v8 = vrot.slane %v4769_v46, 2 }
 0x3e7   : > { %6927 = vst [vmem:[#allocation29_spill] sm:$0xff] %v4973_v58 }
 0x3ea   : > { %2287 = vrot.lane.b32.xlu1 %v4869_v30, %s4386_s27  ;;  %1693 = vrot.lane.b32.xlu0 %v1626_v7, %s4392_s14 }
 0x3eb   : > { %v4987_v28 = vpop.permute.xlu1 %1936 }
 0x3ee   : > { %1948 = vrot.lane.b32.xlu1 %v4781_v52, %s4391_s12  ;;  %1862 = vrot.lane.b32.xlu0 %v1795_v62, %s4384_s17 }
 0x3ef   : > { %v4989_v49 = vpop.permute.xlu0 %1938 }
 0x3f2   : > { %1976 = vrot.lane.b32.xlu1 %v4871_v54, %s4391_s12  ;;  %2060 = vrot.lane.b32.xlu0 %v1626_v7, %s4385_s26 }
 0x3f6   : > { %2279 = vrot.lane.b32.xlu1 %v4871_v54, %s4386_s27  ;;  %2363 = vrot.lane.b32.xlu0 %v1626_v7, %s4394_s16  ;;  %v6844_v7 = vrot.slane %v4753_v39, 2 }
 0x3f8   : > { %v1779_v10 = vsel %vm1763_vm8, %v1776_v16, %v6844_v7  ;;  %v5032_v7 = vsel %vm1763_vm8, %v6932_v8, %v6848_v45 }
 0x3fa   : > { %1679 = vrot.lane.b32.xlu1 %v1610_v24, %s4392_s14  ;;  %2165 = vrot.lane.b32.xlu0 %v1795_v62, %s4393_s15 }
 0x3fe   : > { %1707 = vrot.lane.b32.xlu1 %v1642_v57, %s4392_s14  ;;  %2377 = vrot.lane.b32.xlu0 %v1642_v57, %s4394_s16 }
 0x400   : > { %v4998_v17 = vpop.permute.xlu1 %1952  ;;  %v5000_v31 = vpop.permute.xlu0 %2255 }
 0x401   : > { %6928 = vst [vmem:[#allocation30_spill] sm:$0xff] %v4998_v17  ;;  %6929 = vst [vmem:[#allocation31_spill] sm:$0xff] %v5000_v31 }
 0x402   : > { %1848 = vrot.lane.b32.xlu1 %v1779_v10, %s4384_s17  ;;  %1685 = vrot.lane.b32.xlu0 %v5012_v23, %s4392_s14 }
 0x404   : > { %v5020_v17 = vpop.permute.xlu1 %1944  ;;  %v5022_v16 = vpop.permute.xlu0 %2247 }
 0x405   : > { %6931 = vst [vmem:[#allocation32_spill] sm:$0xff] %v5020_v17  ;;  %v1800_v17 = vrot.slane %v4819_v6, 2 }
 0x406   : > { %1876 = vrot.lane.b32.xlu1 %v1811_v27, %s4384_s17  ;;  %1854 = vrot.lane.b32.xlu0 %v5032_v7, %s4384_s17 }
 0x408   : > { %v5037_v18 = vpop.permute.xlu1 %1675  ;;  %v5039_v58 = vpop.permute.xlu0 %2147 }
 0x40a   : > { %2046 = vrot.lane.b32.xlu1 %v1610_v24, %s4385_s26  ;;  %1958 = vrot.lane.b32.xlu0 %v4791_v60, %s4391_s12 }
 0x40c   : > { %v5044_v11 = vpop.permute.xlu1 %1844  ;;  %v5046_v47 = vpop.permute.xlu0 %1667 }
 0x40d   : > { %6933 = vst [vmem:[#allocation33_spill] sm:$0xff] %v5044_v11 }
 0x40e   : > { %2151 = vrot.lane.b32.xlu1 %v1779_v10, %s4393_s15  ;;  %1986 = vrot.lane.b32.xlu0 %v4881_v1, %s4391_s12 }
 0x410   : > { %v5051_v8 = vpop.permute.xlu1 %2042  ;;  %v5053_v45 = vpop.permute.xlu0 %1954 }
 0x411   : > { %6934 = vst [vmem:[#allocation34_spill] sm:$0xff] %v5053_v45  ;;  %v1631_v45 = vrot.slane %v4819_v6, 1  ;;  %v6943_v6 = vrot.slane %v4828_v14, 2 }
 0x412   : > { %2468 = vrot.lane.b32.xlu1 %v1795_v62, %s4387_s13  ;;  %2052 = vrot.lane.b32.xlu0 %v5012_v23, %s4385_s26  ;;  %v6855_v62 = vrot.slane %v4755_v40, 1 }
 0x414   : > { %v5058_v24 = vpop.permute.xlu1 %1836  ;;  %v5060_v46 = vpop.permute.xlu0 %2271 }
 0x415   : > { %6935 = vst [vmem:[#allocation35_spill] sm:$0xff] %v5060_v46  ;;  %v2814_v46 = vld [vmem:[%s6826_s3] sm:$0xff] }
 0x416   : > { %2482 = vrot.lane.b32.xlu1 %v1811_v27, %s4387_s13  ;;  %2460 = vrot.lane.b32.xlu0 %v5032_v7, %s4387_s13  ;;  %v4113_v35 = vpack.c.bf16 %v2815_v37, %v2814_v46  ;;  %v2816_v37 = vld [vmem:[%s6826_s3 + $0x10] sm:$0xff]  ;;  %v2817_v46 = vld [vmem:[%s6826_s3 + $0x18] sm:$0xff] }
 0x417   : > { %v4117_v11 = vpack.c.bf16 %v2817_v46, %v2816_v37  ;;  %v2819_v37 = vld [vmem:[%s6826_s3 + $0x28] sm:$0xff] }
 0x418   : > { %v5065_v10 = vpop.permute.xlu1 %1940  ;;  %v5067_v31 = vpop.permute.xlu0 %1946  ;;  %4114 = vmatprep.subr.bf16.mxu0 %v4113_v35  ;;  %4129 = vmatprep.subr.bf16.mxu1 %v4113_v35 }
 0x419   : > { %6936 = vst [vmem:[#allocation36_spill] sm:$0xff] %v5067_v31  ;;  %4116 = vmatpush3.bf16.msra.mxu0 %v4113_v35  ;;  %4134 = vmatpush3.bf16.msra.mxu1 %v4113_v35  ;;  %v2818_v35 = vld [vmem:[%s6826_s3 + $0x20] sm:$0xff] }
 0x41a   : > { %2074 = vrot.lane.b32.xlu1 %v1642_v57, %s4385_s26  ;;  %2261 = vrot.lane.b32.xlu0 %v4791_v60, %s4386_s27  ;;  %v6939_v57 = vrot.slane %v4828_v14, 1 }
 0x41b   : > { %4118 = vmatprep.subr.bf16.mxu0 %v4117_v11  ;;  %4130 = vmatprep.subr.bf16.mxu1 %v4117_v11 }
 0x41c   : > { %v5080_v43 = vpop.permute.xlu1 %1968  ;;  %v5082_v31 = vpop.permute.xlu0 %2263  ;;  %v5088_v51 = vsel %vm1594_vm7, %v1631_v45, %v6939_v57 }
 0x41d   : > { %6937 = vst [vmem:[#allocation37_spill] sm:$0xff] %v5080_v43  ;;  %6938 = vst [vmem:[#allocation38_spill] sm:$0xff] %v5082_v31  ;;  %v5113_v31 = vsel %vm1763_vm8, %v1800_v17, %v6943_v6  ;;  %4120 = vmatpush3.bf16.msra.mxu0 %v4117_v11  ;;  %v4121_v6 = vpack.c.bf16 %v2819_v37, %v2818_v35  ;;  %4135 = vmatpush3.bf16.msra.mxu1 %v4117_v11  ;;  %v2820_v17 = vld [vmem:[%s6826_s3 + $0x30] sm:$0xff] }
 0x41e   : > { %2179 = vrot.lane.b32.xlu1 %v1811_v27, %s4393_s15  ;;  %2369 = vrot.lane.b32.xlu0 %v5088_v51, %s4394_s16  ;;  %v6942_v27 = vrot.slane %v4751_v38, 1 }
 0x41f   : > { %4122 = vmatprep.subr.bf16.mxu0 %v4121_v6  ;;  %4131 = vmatprep.subr.bf16.mxu1 %v4121_v6 }
 0x420   : > { %v5101_v45 = vpop.permute.xlu1 %2257  ;;  %v5103_v57 = vpop.permute.xlu0 %1677  ;;  %v1601_v43 = vsel %vm1594_vm7, %v6942_v27, %v6855_v62  ;;  %v2821_v62 = vld [vmem:[%s6826_s3 + $0x38] sm:$0xff] }
 0x421   : > { %6940 = vst [vmem:[#allocation39_spill] sm:$0xff] %v5101_v45  ;;  %6941 = vst [vmem:[#allocation40_spill] sm:$0xff] %v5103_v57  ;;  %4124 = vmatpush3.bf16.msra.mxu0 %v4121_v6  ;;  %v4125_v37 = vpack.c.bf16 %v2821_v62, %v2820_v17  ;;  %4136 = vmatpush3.bf16.msra.mxu1 %v4121_v6  ;;  %v2822_v62 = vld [vmem:[%s6826_s3 + $0x40] sm:$0xff]  ;;  %v1611_v6 = vrot.slane %v4757_v41, 1 }
 0x422   : > { %1671 = vrot.lane.b32.xlu1 %v1601_v43, %s4392_s14  ;;  %2171 = vrot.lane.b32.xlu0 %v5113_v31, %s4393_s15  ;;  %v6856_v43 = vrot.slane %v4755_v40, 2 }
 0x423   : > { %4126 = vmatprep.subr.bf16.mxu0 %v4125_v37  ;;  %4132 = vmatprep.subr.bf16.mxu1 %v4125_v37 }
 0x424   : > { %v5124_v46 = vpop.permute.xlu1 %1960  ;;  %v5126_v27 = vpop.permute.xlu0 %1846 }
 0x425   : > { %6944 = vst [vmem:[#allocation41_spill] sm:$0xff] %v5124_v46  ;;  %6945 = vst [vmem:[#allocation42_spill] sm:$0xff] %v5126_v27  ;;  %v6946_v46 = vrot.slane %v4751_v38, 2  ;;  %4128 = vmatpush3.bf16.msra.mxu0 %v4125_v37  ;;  %4137 = vmatpush3.bf16.msra.mxu1 %v4125_v37 }
 0x426   : > { %1699 = vrot.lane.b32.xlu1 %v5088_v51, %s4392_s14  ;;  %2303 = vrot.lane.b32.xlu0 %v4927_v3, %s4386_s27 }
 0x427   : > { %v1770_v45 = vsel %vm1763_vm8, %v6946_v46, %v6856_v43  ;;  %4055 = vmatprep.subr.mxu0 %v2822_v62  ;;  %4133 = vmatprep.subr.mxu1 %v2822_v62  ;;  %v6952_v43 = vrot.slane %v4753_v39, 1 }
 0x428   : > { %v5139_v35 = vpop.permute.xlu1 %2249  ;;  %v5141_v11 = vpop.permute.xlu0 %2044 }
 0x429   : > { %4056 = vmatpush3.msra.mxu0 %v2822_v62  ;;  %4138 = vmatpush3.msra.mxu1 %v2822_v62  ;;  %v2555_v62 = vsel %vm2554_vm9, %v4739_v34, %v5046_v47 }
 0x42a   : > { %1840 = vrot.lane.b32.xlu1 %v1770_v45, %s4384_s17  ;;  %1950 = vrot.lane.b32.xlu0 %v4798_v63, %s4391_s12 }
 0x42c   : > { %v5151_v27 = vpop.permute.xlu1 %1691  ;;  %v5153_v57 = vpop.permute.xlu0 %2361 }
 0x42d   : > { %6947 = vst [vmem:[#allocation43_spill] sm:$0xff] %v5151_v27  ;;  %6948 = vst [vmem:[#allocation44_spill] sm:$0xff] %v5153_v57  ;;  %v6857_v27 = vrot.slane %v4837_v19, 1 }
 0x42e   : > { %1868 = vrot.lane.b32.xlu1 %v5113_v31, %s4384_s17  ;;  %1978 = vrot.lane.b32.xlu0 %v4883_v44, %s4391_s12 }
 0x430   : > { %v5162_v45 = vpop.permute.xlu1 %1860  ;;  %v5164_v46 = vpop.permute.xlu0 %2163 }
 0x431   : > { %6949 = vst [vmem:[#allocation45_spill] sm:$0xff] %v5162_v45  ;;  %6950 = vst [vmem:[#allocation46_spill] sm:$0xff] %v5164_v46  ;;  %v1612_v45 = vsel %vm1594_vm7, %v6952_v43, %v1611_v6  ;;  %v2587_v46 = vsel %vm603_vm0, %v2555_v62, %v5058_v24  ;;  %v1780_v43 = vrot.slane %v4757_v41, 2  ;;  %v6954_v6 = vrot.slane %v4822_v13, 1 }
 0x432   : > { %1972 = vrot.lane.b32.xlu1 %v4837_v19, %s4391_s12  ;;  %2267 = vrot.lane.b32.xlu0 %v4839_v20, %s4386_s27  ;;  %v2620_v47 = vsel %vm2619_vm10, %v2587_v46, %v4987_v28  ;;  %v6956_v62 = vrot.slane %v4753_v39, 2  ;;  %v6858_v28 = vrot.slane %v4837_v19, 2  ;;  %v6866_v39 = vrot.slane %v4839_v20, 1 }
 0x433   : > { %v5197_v34 = vsel %vm1594_vm7, %v6954_v6, %v6857_v27  ;;  %v2652_v24 = vsel %vm606_vm1, %v2620_v47, %v5051_v8 }
 0x434   : > { %v5171_v17 = vpop.permute.xlu1 %2058  ;;  %v5173_v37 = vpop.permute.xlu0 %1838  ;;  %v5214_v6 = vsel %vm1763_vm8, %v6956_v62, %v1780_v43  ;;  %v2685_v46 = vsel %vm2684_vm11, %v2652_v24, %v5039_v58  ;;  %v6957_v43 = vrot.slane %v4822_v13, 2 }
 0x435   : > { %6951 = vst [vmem:[#allocation47_spill] sm:$0xff] %v5171_v17 }
 0x436   : > { %2066 = vrot.lane.b32.xlu1 %v5088_v51, %s4385_s26  ;;  %1681 = vrot.lane.b32.xlu0 %v1612_v45, %s4392_s14  ;;  %v5230_v47 = vsel %vm1763_vm8, %v6957_v43, %v6858_v28  ;;  %v6859_v43 = vrot.slane %v4791_v60, 1 }
 0x438   : > { %v5187_v17 = vpop.permute.xlu1 %2149  ;;  %v5189_v57 = vpop.permute.xlu0 %1942 }
 0x439   : > { %6953 = vst [vmem:[#allocation48_spill] sm:$0xff] %v5189_v57  ;;  %v1771_v57 = vrot.slane %v4759_v42, 2 }
 0x43a   : > { %2355 = vrot.lane.b32.xlu1 %v5012_v23, %s4394_s16  ;;  %1709 = vrot.lane.b32.xlu0 %v5197_v34, %s4392_s14 }
 0x43c   : > { %v5205_v51 = vpop.permute.xlu1 %2466  ;;  %v5207_v41 = vpop.permute.xlu0 %1970 }
 0x43d   : > { %6955 = vst [vmem:[#allocation49_spill] sm:$0xff] %v5205_v51 }
 0x43e   : > { %2157 = vrot.lane.b32.xlu1 %v5032_v7, %s4393_s15  ;;  %1850 = vrot.lane.b32.xlu0 %v5214_v6, %s4384_s17  ;;  %v2717_v7 = vsel %vm609_vm2, %v2685_v46, %v5022_v16  ;;  %v6961_v46 = vrot.slane %v4784_v56, 1 }
 0x440   : > { %v5221_v23 = vpop.permute.xlu1 %1669  ;;  %v2354_v8 = vpop.permute.xlu0 %2353 }
 0x441   : > { %v2750_v58 = vsel %vm2749_vm12, %v2717_v7, %v2354_v8  ;;  %v1628_v8 = vsel %vm1594_vm7, %v6961_v46, %v6859_v43  ;;  %v1827_v7 = vrot.slane %v4869_v30, 2 }
 0x442   : > { %2289 = vrot.lane.b32.xlu1 %v4881_v1, %s4386_s27  ;;  %1878 = vrot.lane.b32.xlu0 %v5230_v47, %s4384_s17 }
 0x444   : > { %v5239_v24 = vpop.permute.xlu1 %1683  ;;  %v2459_v62 = vpop.permute.xlu0 %2458 }
 0x445   : > { %6958 = vst [vmem:[#allocation50_spill] sm:$0xff] %v5239_v24  ;;  %v2782_v27 = vsel %vm612_vm3, %v2750_v58, %v2459_v62  ;;  %v6860_v58 = vrot.slane %v4881_v1, 2  ;;  %v6863_v62 = vrot.slane %v4791_v60, 2 }
 0x446   : > { %2474 = vrot.lane.b32.xlu1 %v5113_v31, %s4387_s13  ;;  %2048 = vrot.lane.b32.xlu0 %v1612_v45, %s4385_s26 }
 0x447   : > { %4057 = vmatprep.mubr.msk.f32.mxu0 %vm2830_vm13, %v2782_v27  ;;  %v5268_v45 = vsel %vm1763_vm8, %v1827_v7, %v6860_v58  ;;  %v1658_v7 = vrot.slane %v4869_v30, 1  ;;  %v6865_v58 = vrot.slane %v4881_v1, 1 }
 0x448   : > { %v5247_v28 = vpop.permute.xlu1 %1852  ;;  %v5249_v16 = vpop.permute.xlu0 %2259 }
 0x449   : > { %6959 = vst [vmem:[#allocation51_spill] sm:$0xff] %v5247_v28  ;;  %6960 = vst [vmem:[#allocation52_spill] sm:$0xff] %v5249_v16  ;;  %v6968_v16 = vrot.slane %v4755_v40, 1 }
 0x44a   : > { %2275 = vrot.lane.b32.xlu1 %v4837_v19, %s4386_s27  ;;  %2365 = vrot.lane.b32.xlu0 %v1628_v8, %s4394_s16 }
 0x44c   : > { %v5261_v31 = vpop.permute.xlu1 %1956  ;;  %v5263_v27 = vpop.permute.xlu0 %2273 }
 0x44d   : > { %6962 = vst [vmem:[#allocation53_spill] sm:$0xff] %v5261_v31  ;;  %6963 = vst [vmem:[#allocation54_spill] sm:$0xff] %v5263_v27  ;;  %v6966_v27 = vrot.slane %v4784_v56, 2  ;;  %v1660_v56 = vsel %vm1594_vm7, %v1658_v7, %v6865_v58 }
 0x44e   : > { %1964 = vrot.lane.b32.xlu1 %v4839_v20, %s4391_s12  ;;  %2498 = vrot.lane.b32.xlu0 %v5268_v45, %s4387_s13 }
 0x44f   : > { %v1797_v31 = vsel %vm1763_vm8, %v6966_v27, %v6863_v62 }
 0x450   : > { %v5275_v46 = vpop.permute.xlu1 %1984  ;;  %v5277_v43 = vpop.permute.xlu0 %1962 }
 0x451   : > { %6964 = vst [vmem:[#allocation55_spill] sm:$0xff] %v5275_v46  ;;  %6965 = vst [vmem:[#allocation56_spill] sm:$0xff] %v5277_v43  ;;  %v1602_v43 = vrot.slane %v4759_v42, 1 }
 0x452   : > { %1992 = vrot.lane.b32.xlu1 %v4933_v5, %s4391_s12  ;;  %2167 = vrot.lane.b32.xlu0 %v1797_v31, %s4393_s15 }
 0x453   : > { %v1603_v51 = vsel %vm1594_vm7, %v6968_v16, %v1602_v43  ;;  %v6974_v16 = vrot.slane %v4755_v40, 2 }
 0x454   : > { %v5289_v13 = vpop.permute.xlu1 %2050  ;;  %v5291_v46 = vpop.permute.xlu0 %2251 }
 0x455   : > { %v1772_v42 = vsel %vm1763_vm8, %v6974_v16, %v1771_v57 }
 0x456   : > { %2253 = vrot.lane.b32.xlu1 %v4798_v63, %s4386_s27  ;;  %2090 = vrot.lane.b32.xlu0 %v1660_v56, %s4385_s26 }
 0x458   : > { %v5300_v27 = vpop.permute.xlu1 %2155  ;;  %v5302_v62 = vpop.permute.xlu0 %2265 }
 0x459   : > { %6967 = vst [vmem:[#allocation57_spill] sm:$0xff] %v5302_v62  ;;  %v6971_v62 = vrot.slane %v4828_v14, 1 }
 0x45a   : > { %2295 = vrot.lane.b32.xlu1 %v4933_v5, %s4386_s27  ;;  %1673 = vrot.lane.b32.xlu0 %v1603_v51, %s4392_s14 }
 0x45b   : > { %v5321_v28 = vsel %vm1594_vm7, %v6971_v62, %v6866_v39 }
 0x45c   : > { %v5311_v7 = vpop.permute.xlu1 %2287  ;;  %v5313_v58 = vpop.permute.xlu0 %1693 }
 0x45d   : > { %6969 = vst [vmem:[#allocation58_spill] sm:$0xff] %v5311_v7  ;;  %6970 = vst [vmem:[#allocation59_spill] sm:$0xff] %v5313_v58  ;;  %v6867_v7 = vrot.slane %v4839_v20, 2  ;;  %v6977_v58 = vrot.slane %v4828_v14, 2 }
 0x45e   : > { %2281 = vrot.lane.b32.xlu1 %v4883_v44, %s4386_s27  ;;  %1701 = vrot.lane.b32.xlu0 %v5321_v28, %s4392_s14 }
 0x460   : > { %v5327_v51 = vpop.permute.xlu1 %1948  ;;  %v5329_v43 = vpop.permute.xlu0 %1862 }
 0x461   : > { %6972 = vst [vmem:[#allocation60_spill] sm:$0xff] %v5327_v51  ;;  %6973 = vst [vmem:[#allocation61_spill] sm:$0xff] %v5329_v43  ;;  %v1804_v43 = vsel %vm1763_vm8, %v6977_v58, %v6867_v7 }
 0x462   : > { %1695 = vrot.lane.b32.xlu1 %v1628_v8, %s4392_s14  ;;  %1842 = vrot.lane.b32.xlu0 %v1772_v42, %s4384_s17 }
 0x464   : > { %v5337_v62 = vpop.permute.xlu1 %1976  ;;  %v5339_v39 = vpop.permute.xlu0 %2060 }
 0x465   : > { %6975 = vst [vmem:[#allocation62_spill] sm:$0xff] %v5337_v62  ;;  %6976 = vst [vmem:[#allocation63_spill] sm:$0xff] %v5339_v39  ;;  %v6868_v39 = vrot.slane %v4798_v63, 1 }
 0x466   : > { %1723 = vrot.lane.b32.xlu1 %v1660_v56, %s4392_s14  ;;  %1870 = vrot.lane.b32.xlu0 %v1804_v43, %s4384_s17 }
 0x468   : > { %v5348_v57 = vpop.permute.xlu1 %2279  ;;  %v5350_v16 = vpop.permute.xlu0 %2363 }
 0x469   : > { %6978 = vst [vmem:[#allocation64_spill] sm:$0xff] %v5348_v57  ;;  %6979 = vst [vmem:[#allocation65_spill] sm:$0xff] %v5350_v16  ;;  %v6984_v57 = vrot.slane %v4781_v52, 1 }
 0x46a   : > { %1864 = vrot.lane.b32.xlu1 %v1797_v31, %s4384_s17  ;;  %1974 = vrot.lane.b32.xlu0 %v4847_v9, %s4391_s12 }
 0x46b   : > { %v5373_v16 = vsel %vm1594_vm7, %v6984_v57, %v6868_v39  ;;  %v1649_v57 = vrot.slane %v4871_v54, 1  ;;  %v6871_v39 = vrot.slane %v4883_v44, 1 }
 0x46c   : > { %v5355_v42 = vpop.permute.xlu1 %1679  ;;  %v5357_v62 = vpop.permute.xlu0 %2165 }
 0x46d   : > { %6980 = vst [vmem:[#allocation66_spill] sm:$0xff] %v5355_v42  ;;  %6981 = vst [vmem:[#allocation67_spill] sm:$0xff] %v5357_v62  ;;  %v6870_v62 = vrot.slane %v4798_v63, 2 }
 0x46e   : > { %1892 = vrot.lane.b32.xlu1 %v5268_v45, %s4384_s17  ;;  %2068 = vrot.lane.b32.xlu0 %v5321_v28, %s4385_s26 }
 0x470   : > { %v5364_v58 = vpop.permute.xlu1 %1707  ;;  %v5366_v7 = vpop.permute.xlu0 %2377 }
 0x471   : > { %6982 = vst [vmem:[#allocation68_spill] sm:$0xff] %v5364_v58  ;;  %6983 = vst [vmem:[#allocation69_spill] sm:$0xff] %v5366_v7  ;;  %v6987_v58 = vrot.slane %v4781_v52, 2  ;;  %v5403_v52 = vsel %vm1594_vm7, %v1649_v57, %v6871_v39  ;;  %v1818_v39 = vrot.slane %v4871_v54, 2 }
 0x472   : > { %2062 = vrot.lane.b32.xlu1 %v1628_v8, %s4385_s26  ;;  %2357 = vrot.lane.b32.xlu0 %v5373_v16, %s4394_s16 }
 0x473   : > { %v5388_v7 = vsel %vm1763_vm8, %v6987_v58, %v6870_v62 }
 0x474   : > { %v5379_v51 = vpop.permute.xlu1 %1848  ;;  %v5381_v42 = vpop.permute.xlu0 %1685 }
 0x475   : > { %6985 = vst [vmem:[#allocation70_spill] sm:$0xff] %v5379_v51  ;;  %6986 = vst [vmem:[#allocation71_spill] sm:$0xff] %v5381_v42  ;;  %v2556_v51 = vsel %vm2554_vm9, %v4745_v36, %v5221_v23  ;;  %v7005_v36 = vrot.slane %v4791_v60, 2 }
 0x476   : > { %2153 = vrot.lane.b32.xlu1 %v5214_v6, %s4393_s15  ;;  %2462 = vrot.lane.b32.xlu0 %v5388_v7, %s4387_s13 }
 0x478   : > { %v5396_v8 = vpop.permute.xlu1 %1876  ;;  %v5398_v42 = vpop.permute.xlu0 %1854 }
 0x479   : > { %6988 = vst [vmem:[#allocation72_spill] sm:$0xff] %v5396_v8  ;;  %6989 = vst [vmem:[#allocation73_spill] sm:$0xff] %v5398_v42 }
 0x47a   : > { %2470 = vrot.lane.b32.xlu1 %v1797_v31, %s4387_s13  ;;  %2082 = vrot.lane.b32.xlu0 %v5403_v52, %s4385_s26 }
 0x47c   : > { %v5408_v58 = vpop.permute.xlu1 %2046  ;;  %v5410_v6 = vpop.permute.xlu0 %1958 }
 0x47d   : > { %6990 = vst [vmem:[#allocation74_spill] sm:$0xff] %v5410_v6  ;;  %v6873_v6 = vrot.slane %v4883_v44, 2 }
 0x47e   : > { %2393 = vrot.lane.b32.xlu1 %v1660_v56, %s4394_s16  ;;  %2476 = vrot.lane.b32.xlu0 %v1804_v43, %s4387_s13 }
 0x480   : > { %v5414_v62 = vpop.permute.xlu1 %2151  ;;  %v5416_v8 = vpop.permute.xlu0 %1986 }
 0x482   : > { %2195 = vrot.lane.b32.xlu1 %v5268_v45, %s4393_s15  ;;  %2173 = vrot.lane.b32.xlu0 %v1804_v43, %s4393_s15  ;;  %v1820_v45 = vsel %vm1763_vm8, %v1818_v39, %v6873_v6 }
 0x484   : > { %v5421_v31 = vpop.permute.xlu1 %2468  ;;  %v5423_v57 = vpop.permute.xlu0 %2052 }
 0x485   : > { %6991 = vst [vmem:[#allocation75_spill] sm:$0xff] %v5421_v31  ;;  %6992 = vst [vmem:[#allocation76_spill] sm:$0xff] %v5423_v57 }
 0x486   : > { %2379 = vrot.lane.b32.xlu1 %v5197_v34, %s4394_s16  ;;  %2305 = vrot.lane.b32.xlu0 %v4938_v15, %s4386_s27 }
 0x488   : > { %v5431_v56 = vpop.permute.xlu1 %2482  ;;  %v2461_v42 = vpop.permute.xlu0 %2460 }
 0x489   : > { %6993 = vst [vmem:[#allocation77_spill] sm:$0xff] %v5431_v56 }
 0x48a   : > { %2484 = vrot.lane.b32.xlu1 %v5230_v47, %s4387_s13  ;;  %2490 = vrot.lane.b32.xlu0 %v1820_v45, %s4387_s13 }
 0x48c   : > { %v5439_v43 = vpop.permute.xlu1 %2074  ;;  %v5441_v54 = vpop.permute.xlu0 %2261 }
 0x48d   : > { %6994 = vst [vmem:[#allocation78_spill] sm:$0xff] %v5439_v43  ;;  %6995 = vst [vmem:[#allocation79_spill] sm:$0xff] %v5441_v54  ;;  %v1629_v43 = vrot.slane %v4801_v2, 1  ;;  %v6874_v54 = vrot.slane %v4891_v32, 1 }
 0x48e   : > { %2076 = vrot.lane.b32.xlu1 %v5197_v34, %s4385_s26  ;;  %1966 = vrot.lane.b32.xlu0 %v4849_v21, %s4391_s12 }
 0x490   : > { %v5447_v56 = vpop.permute.xlu1 %2179  ;;  %v5449_v31 = vpop.permute.xlu0 %2369 }
 0x491   : > { %6996 = vst [vmem:[#allocation80_spill] sm:$0xff] %v5447_v56  ;;  %6997 = vst [vmem:[#allocation81_spill] sm:$0xff] %v5449_v31 }
 0x492   : > { %2181 = vrot.lane.b32.xlu1 %v5230_v47, %s4393_s15  ;;  %1994 = vrot.lane.b32.xlu0 %v4940_v12, %s4391_s12  ;;  %v7000_v47 = vrot.slane %v4791_v60, 1 }
 0x494   : > { %v5455_v39 = vpop.permute.xlu1 %1671  ;;  %v5457_v6 = vpop.permute.xlu0 %2171  ;;  %v5471_v31 = vsel %vm1594_vm7, %v7000_v47, %v1629_v43  ;;  %v7002_v43 = vrot.slane %v4881_v1, 1 }
 0x495   : > { %6998 = vst [vmem:[#allocation82_spill] sm:$0xff] %v5457_v6 }
 0x496   : > { %1687 = vrot.lane.b32.xlu1 %v5373_v16, %s4392_s14  ;;  %2269 = vrot.lane.b32.xlu0 %v4849_v21, %s4386_s27  ;;  %v5491_v47 = vsel %vm1594_vm7, %v7002_v43, %v6874_v54  ;;  %v6877_v43 = vrot.slane %v4891_v32, 2 }
 0x498   : > { %v5464_v34 = vpop.permute.xlu1 %1699  ;;  %v5466_v56 = vpop.permute.xlu0 %2303 }
 0x499   : > { %6999 = vst [vmem:[#allocation83_spill] sm:$0xff] %v5464_v34  ;;  %v1798_v34 = vrot.slane %v4801_v2, 2  ;;  %v2588_v2 = vsel %vm603_vm0, %v2556_v51, %v5173_v37  ;;  %v7008_v51 = vrot.slane %v4881_v1, 2  ;;  %v6881_v1 = vrot.slane %v4893_v48, 1 }
 0x49a   : > { %1715 = vrot.lane.b32.xlu1 %v5403_v52, %s4392_s14  ;;  %1697 = vrot.lane.b32.xlu0 %v5471_v31, %s4392_s14  ;;  %v2621_v54 = vsel %vm2619_vm10, %v2588_v2, %v4989_v49 }
 0x49b   : > { %v1799_v23 = vsel %vm1763_vm8, %v7005_v36, %v1798_v34  ;;  %v5520_v60 = vsel %vm1763_vm8, %v7008_v51, %v6877_v43  ;;  %v2653_v49 = vsel %vm606_vm1, %v2621_v54, %v5141_v11 }
 0x49c   : > { %v5478_v6 = vpop.permute.xlu1 %1840  ;;  %v5480_v57 = vpop.permute.xlu0 %1950  ;;  %v2686_v36 = vsel %vm2684_vm11, %v2653_v49, %v5187_v17  ;;  %v7011_v17 = vrot.slane %v4837_v19, 2 }
 0x49d   : > { %7001 = vst [vmem:[#allocation84_spill] sm:$0xff] %v5480_v57  ;;  %v2718_v43 = vsel %vm609_vm2, %v2686_v36, %v5139_v35 }
 0x49e   : > { %1856 = vrot.lane.b32.xlu1 %v5388_v7, %s4384_s17  ;;  %1725 = vrot.lane.b32.xlu0 %v5491_v47, %s4392_s14 }
 0x4a0   : > { %v5499_v57 = vpop.permute.xlu1 %1868  ;;  %v5501_v24 = vpop.permute.xlu0 %1978 }
 0x4a1   : > { %7003 = vst [vmem:[#allocation85_spill] sm:$0xff] %v5499_v57  ;;  %7004 = vst [vmem:[#allocation86_spill] sm:$0xff] %v5501_v24  ;;  %v6878_v57 = vrot.slane %v4847_v9, 2 }
 0x4a2   : > { %1884 = vrot.lane.b32.xlu1 %v1820_v45, %s4384_s17  ;;  %1866 = vrot.lane.b32.xlu0 %v1799_v23, %s4384_s17 }
 0x4a3   : > { %v5549_v49 = vsel %vm1763_vm8, %v7011_v17, %v6878_v57 }
 0x4a4   : > { %v5511_v40 = vpop.permute.xlu1 %1972  ;;  %v5513_v37 = vpop.permute.xlu0 %2267 }
 0x4a5   : > { %7006 = vst [vmem:[#allocation87_spill] sm:$0xff] %v5511_v40  ;;  %7007 = vst [vmem:[#allocation88_spill] sm:$0xff] %v5513_v37  ;;  %v7025_v37 = vrot.slane %v4883_v44, 2 }
 0x4a6   : > { %1988 = vrot.lane.b32.xlu1 %v4891_v32, %s4391_s12  ;;  %1894 = vrot.lane.b32.xlu0 %v5520_v60, %s4384_s17 }
 0x4a8   : > { %v5528_v34 = vpop.permute.xlu1 %2066  ;;  %v5530_v2 = vpop.permute.xlu0 %1681 }
 0x4a9   : > { %7009 = vst [vmem:[#allocation89_spill] sm:$0xff] %v5528_v34 }
 0x4aa   : > { %2054 = vrot.lane.b32.xlu1 %v5373_v16, %s4385_s26  ;;  %2064 = vrot.lane.b32.xlu0 %v5471_v31, %s4385_s26 }
 0x4ac   : > { %v2356_v51 = vpop.permute.xlu1 %2355  ;;  %v5541_v54 = vpop.permute.xlu0 %1709 }
 0x4ad   : > { %7010 = vst [vmem:[#allocation90_spill] sm:$0xff] %v5541_v54  ;;  %v2751_v11 = vsel %vm2749_vm12, %v2718_v43, %v2356_v51 }
 0x4ae   : > { %2159 = vrot.lane.b32.xlu1 %v5388_v7, %s4393_s15  ;;  %2183 = vrot.lane.b32.xlu0 %v5549_v49, %s4393_s15  ;;  %v2783_v16 = vsel %vm612_vm3, %v2751_v11, %v2461_v42  ;;  %v2344_v11 = vrot.slane %v4927_v3, 1 }
 0x4af   : > { %4058 = vmatmul.mubr.msk.f32.vlgmr.msra.gmra.mrb[0].mxu0 %vm2830_vm13, %v2783_v16 }
 0x4b0   : > { %v5557_v35 = vpop.permute.xlu1 %2157  ;;  %v5559_v43 = vpop.permute.xlu0 %1850 }
 0x4b2   : > { %2187 = vrot.lane.b32.xlu1 %v1820_v45, %s4393_s15  ;;  %2472 = vrot.lane.b32.xlu0 %v1799_v23, %s4387_s13  ;;  %v6880_v45 = vrot.slane %v4938_v15, 1 }
 0x4b4   : > { %v5563_v36 = vpop.permute.xlu1 %2289  ;;  %v5565_v51 = vpop.permute.xlu0 %1878  ;;  %v2346_v57 = vsel %vm1594_vm7, %v2344_v11, %v6880_v45  ;;  %v1789_v45 = vrot.slane %v4807_v4, 2 }
 0x4b5   : > { %7012 = vst [vmem:[#allocation91_spill] sm:$0xff] %v5563_v36  ;;  %7013 = vst [vmem:[#allocation92_spill] sm:$0xff] %v5565_v51  ;;  %v6885_v51 = vrot.slane %v4849_v21, 1 }
 0x4b6   : > { %2371 = vrot.lane.b32.xlu1 %v5321_v28, %s4394_s16  ;;  %2395 = vrot.lane.b32.xlu0 %v5491_v47, %s4394_s16  ;;  %v1620_v28 = vrot.slane %v4807_v4, 1 }
 0x4b8   : > { %v5571_v7 = vpop.permute.xlu1 %2474  ;;  %v5573_v42 = vpop.permute.xlu0 %2048 }
 0x4b9   : > { %7014 = vst [vmem:[#allocation93_spill] sm:$0xff] %v5571_v7 }
 0x4ba   : > { %2291 = vrot.lane.b32.xlu1 %v4891_v32, %s4386_s27  ;;  %2169 = vrot.lane.b32.xlu0 %v1799_v23, %s4393_s15  ;;  %v7019_v23 = vrot.slane %v4798_v63, 1 }
 0x4bc   : > { %v5580_v17 = vpop.permute.xlu1 %2275  ;;  %v5582_v16 = vpop.permute.xlu0 %2365  ;;  %v5598_v40 = vsel %vm1594_vm7, %v7019_v23, %v1620_v28 }
 0x4bd   : > { %7015 = vst [vmem:[#allocation94_spill] sm:$0xff] %v5580_v17  ;;  %7016 = vst [vmem:[#allocation95_spill] sm:$0xff] %v5582_v16  ;;  %v7023_v17 = vrot.slane %v4798_v63, 2 }
 0x4be   : > { %2277 = vrot.lane.b32.xlu1 %v4847_v9, %s4386_s27  ;;  %2409 = vrot.lane.b32.xlu0 %v2346_v57, %s4394_s16 }
 0x4bf   : > { %v1790_v4 = vsel %vm1763_vm8, %v7023_v17, %v1789_v45  ;;  %v6884_v45 = vrot.slane %v4847_v9, 1 }
 0x4c0   : > { %v5591_v36 = vpop.permute.xlu1 %1964  ;;  %v5593_v34 = vpop.permute.xlu0 %2498 }
 0x4c1   : > { %7017 = vst [vmem:[#allocation96_spill] sm:$0xff] %v5591_v36  ;;  %7018 = vst [vmem:[#allocation97_spill] sm:$0xff] %v5593_v34  ;;  %v7021_v34 = vrot.slane %v4883_v44, 1  ;;  %v6883_v36 = vrot.slane %v4893_v48, 2 }
 0x4c2   : > { %2385 = vrot.lane.b32.xlu1 %v5403_v52, %s4394_s16  ;;  %1689 = vrot.lane.b32.xlu0 %v5598_v40, %s4392_s14 }
 0x4c3   : > { %v5615_v28 = vsel %vm1594_vm7, %v7021_v34, %v6881_v1 }
 0x4c4   : > { %v5605_v11 = vpop.permute.xlu1 %1992  ;;  %v5607_v57 = vpop.permute.xlu0 %2167 }
 0x4c5   : > { %7020 = vst [vmem:[#allocation98_spill] sm:$0xff] %v5607_v57 }
 0x4c6   : > { %1980 = vrot.lane.b32.xlu1 %v4893_v48, %s4391_s12  ;;  %1717 = vrot.lane.b32.xlu0 %v5615_v28, %s4392_s14 }
 0x4c8   : > { %v5621_v52 = vpop.permute.xlu1 %2253  ;;  %v5623_v23 = vpop.permute.xlu0 %2090 }
 0x4c9   : > { %7022 = vst [vmem:[#allocation99_spill] sm:$0xff] %v5623_v23  ;;  %v5641_v23 = vsel %vm1763_vm8, %v7025_v37, %v6883_v36 }
 0x4ca   : > { %2283 = vrot.lane.b32.xlu1 %v4893_v48, %s4386_s27  ;;  %1858 = vrot.lane.b32.xlu0 %v1790_v4, %s4384_s17 }
 0x4cc   : > { %v5632_v34 = vpop.permute.xlu1 %2295  ;;  %v5634_v1 = vpop.permute.xlu0 %1673 }
 0x4cd   : > { %7024 = vst [vmem:[#allocation100_spill] sm:$0xff] %v5632_v34  ;;  %v7026_v34 = vrot.slane %v4837_v19, 1 }
 0x4ce   : > { %2297 = vrot.lane.b32.xlu1 %v4940_v12, %s4386_s27  ;;  %1886 = vrot.lane.b32.xlu0 %v5641_v23, %s4384_s17 }
 0x4cf   : > { %v1646_v57 = vsel %vm1594_vm7, %v7026_v34, %v6884_v45  ;;  %v2557_v34 = vsel %vm2554_vm9, %v4751_v38, %v5455_v39 }
 0x4d0   : > { %v5648_v17 = vpop.permute.xlu1 %2281  ;;  %v5650_v63 = vpop.permute.xlu0 %1701  ;;  %v2589_v45 = vsel %vm603_vm0, %v2557_v34, %v5478_v6  ;;  %v7031_v34 = vrot.slane %v4839_v20, 1 }
 0x4d1   : > { %v2622_v54 = vsel %vm2619_vm10, %v2589_v45, %v5065_v10  ;;  %v2138_v10 = vrot.slane %v4933_v5, 2  ;;  %v6887_v45 = vrot.slane %v4940_v12, 2 }
 0x4d2   : > { %1711 = vrot.lane.b32.xlu1 %v1646_v57, %s4392_s14  ;;  %1990 = vrot.lane.b32.xlu0 %v4912_v53, %s4391_s12  ;;  %v2654_v6 = vsel %vm606_vm1, %v2622_v54, %v5408_v58 }
 0x4d3   : > { %v2687_v58 = vsel %vm2684_vm11, %v2654_v6, %v5414_v62 }
 0x4d4   : > { %v5660_v37 = vpop.permute.xlu1 %1695  ;;  %v5662_v36 = vpop.permute.xlu0 %1842 }
 0x4d5   : > { %7027 = vst [vmem:[#allocation101_spill] sm:$0xff] %v5660_v37 }
 0x4d6   : > { %1880 = vrot.lane.b32.xlu1 %v5549_v49, %s4384_s17  ;;  %2056 = vrot.lane.b32.xlu0 %v5598_v40, %s4385_s26 }
 0x4d8   : > { %v5668_v7 = vpop.permute.xlu1 %1723  ;;  %v5670_v24 = vpop.permute.xlu0 %1870 }
 0x4da   : > { %2078 = vrot.lane.b32.xlu1 %v1646_v57, %s4385_s26  ;;  %2464 = vrot.lane.b32.xlu0 %v1790_v4, %s4387_s13 }
 0x4dc   : > { %v5679_v37 = vpop.permute.xlu1 %1864  ;;  %v5681_v16 = vpop.permute.xlu0 %1974 }
 0x4dd   : > { %7028 = vst [vmem:[#allocation102_spill] sm:$0xff] %v5679_v37  ;;  %7029 = vst [vmem:[#allocation103_spill] sm:$0xff] %v5681_v16  ;;  %v1637_v16 = vsel %vm1594_vm7, %v7031_v34, %v6885_v51  ;;  %v2033_v34 = vrot.slane %v4933_v5, 1  ;;  %v6888_v51 = vrot.slane %v4940_v12, 1 }
 0x4de   : > { %2367 = vrot.lane.b32.xlu1 %v5471_v31, %s4394_s16  ;;  %2161 = vrot.lane.b32.xlu0 %v1790_v4, %s4393_s15  ;;  %v2140_v4 = vsel %vm1763_vm8, %v2138_v10, %v6887_v45  ;;  %v2449_v10 = vrot.slane %v4927_v3, 2 }
 0x4df   : > { %v5726_v5 = vsel %vm1594_vm7, %v2033_v34, %v6888_v51  ;;  %v1816_v51 = vrot.slane %v4860_v25, 2 }
 0x4e0   : > { %v5689_v38 = vpop.permute.xlu1 %1892  ;;  %v5691_v39 = vpop.permute.xlu0 %2068 }
 0x4e1   : > { %7030 = vst [vmem:[#allocation104_spill] sm:$0xff] %v5691_v39  ;;  %v2719_v39 = vsel %vm609_vm2, %v2687_v58, %v5291_v46 }
 0x4e2   : > { %2500 = vrot.lane.b32.xlu1 %v5520_v60, %s4387_s13  ;;  %2373 = vrot.lane.b32.xlu0 %v1637_v16, %s4394_s16 }
 0x4e4   : > { %v5705_v31 = vpop.permute.xlu1 %2062  ;;  %v2358_v54 = vpop.permute.xlu0 %2357 }
 0x4e5   : > { %7032 = vst [vmem:[#allocation105_spill] sm:$0xff] %v5705_v31  ;;  %v2752_v37 = vsel %vm2749_vm12, %v2719_v39, %v2358_v54 }
 0x4e6   : > { %2092 = vrot.lane.b32.xlu1 %v5491_v47, %s4385_s26  ;;  %2506 = vrot.lane.b32.xlu0 %v2140_v4, %s4387_s13 }
 0x4e8   : > { %v5720_v62 = vpop.permute.xlu1 %2153  ;;  %v2463_v6 = vpop.permute.xlu0 %2462 }
 0x4e9   : > { %v2784_v31 = vsel %vm612_vm3, %v2752_v37, %v2463_v6  ;;  %v1647_v6 = vrot.slane %v4860_v25, 1 }
 0x4ea   : > { %2197 = vrot.lane.b32.xlu1 %v5520_v60, %s4393_s15  ;;  %2098 = vrot.lane.b32.xlu0 %v5726_v5, %s4385_s26  ;;  %v6886_v60 = vrot.slane %v4938_v15, 2 }
 0x4eb   : > { %4060 = vmatprep.mubr.msk.f32.mxu0 %vm2830_vm13, %v2784_v31 }
 0x4ec   : > { %v5733_v46 = vpop.permute.xlu1 %2470  ;;  %v5735_v47 = vpop.permute.xlu0 %2082 }
 0x4ed   : > { %7033 = vst [vmem:[#allocation106_spill] sm:$0xff] %v5735_v47  ;;  %v7046_v47 = vrot.slane %v4847_v9, 2 }
 0x4ee   : > { %2381 = vrot.lane.b32.xlu1 %v1646_v57, %s4394_s16  ;;  %2203 = vrot.lane.b32.xlu0 %v2140_v4, %s4393_s15  ;;  %v2451_v57 = vsel %vm1763_vm8, %v2449_v10, %v6886_v60  ;;  %v7042_v10 = vrot.slane %v4839_v20, 2 }
 0x4f0   : > { %v5739_v37 = vpop.permute.xlu1 %2393  ;;  %v5741_v39 = vpop.permute.xlu0 %2476 }
 0x4f1   : > { %7034 = vst [vmem:[#allocation107_spill] sm:$0xff] %v5739_v37  ;;  %7035 = vst [vmem:[#allocation108_spill] sm:$0xff] %v5741_v39 }
 0x4f2   : > { %2486 = vrot.lane.b32.xlu1 %v5549_v49, %s4387_s13  ;;  %2387 = vrot.lane.b32.xlu0 %v5615_v28, %s4394_s16  ;;  %v1805_v49 = vrot.slane %v4849_v21, 2 }
 0x4f4   : > { %v5749_v31 = vpop.permute.xlu1 %2195  ;;  %v5751_v58 = vpop.permute.xlu0 %2173 }
 0x4f5   : > { %7036 = vst [vmem:[#allocation109_spill] sm:$0xff] %v5749_v31  ;;  %7037 = vst [vmem:[#allocation110_spill] sm:$0xff] %v5751_v58  ;;  %v6897_v31 = vrot.slane %v4952_v55, 2 }
 0x4f6   : > { %2514 = vrot.lane.b32.xlu1 %v2451_v57, %s4387_s13  ;;  %2492 = vrot.lane.b32.xlu0 %v5641_v23, %s4387_s13  ;;  %v1806_v57 = vsel %vm1763_vm8, %v7042_v10, %v1805_v49 }
 0x4f8   : > { %v5759_v3 = vpop.permute.xlu1 %2379  ;;  %v5761_v54 = vpop.permute.xlu0 %2305 }
 0x4f9   : > { %7038 = vst [vmem:[#allocation111_spill] sm:$0xff] %v5759_v3  ;;  %7039 = vst [vmem:[#allocation112_spill] sm:$0xff] %v5761_v54  ;;  %v7044_v54 = vrot.slane %v4847_v9, 1 }
 0x4fa   : > { %1703 = vrot.lane.b32.xlu1 %v1637_v16, %s4392_s14  ;;  %1982 = vrot.lane.b32.xlu0 %v4914_v59, %s4391_s12 }
 0x4fb   : > { %v5786_v37 = vsel %vm1594_vm7, %v7044_v54, %v1647_v6  ;;  %v6889_v54 = vrot.slane %v4912_v53, 2 }
 0x4fc   : > { %v5767_v4 = vpop.permute.xlu1 %2484  ;;  %v5769_v34 = vpop.permute.xlu0 %2490 }
 0x4fd   : > { %7040 = vst [vmem:[#allocation113_spill] sm:$0xff] %v5767_v4  ;;  %7041 = vst [vmem:[#allocation114_spill] sm:$0xff] %v5769_v34  ;;  %v6890_v4 = vrot.slane %v4912_v53, 1 }
 0x4fe   : > { %1872 = vrot.lane.b32.xlu1 %v1806_v57, %s4384_s17  ;;  %2299 = vrot.lane.b32.xlu0 %v4952_v55, %s4386_s27 }
 0x500   : > { %v5778_v60 = vpop.permute.xlu1 %2076  ;;  %v5780_v45 = vpop.permute.xlu0 %1966 }
 0x501   : > { %7043 = vst [vmem:[#allocation115_spill] sm:$0xff] %v5780_v45  ;;  %v5798_v45 = vsel %vm1763_vm8, %v7046_v47, %v1816_v51 }
 0x502   : > { %2070 = vrot.lane.b32.xlu1 %v1637_v16, %s4385_s26  ;;  %1713 = vrot.lane.b32.xlu0 %v5786_v37, %s4392_s14 }
 0x504   : > { %v5791_v10 = vpop.permute.xlu1 %2181  ;;  %v5793_v34 = vpop.permute.xlu0 %1994 }
 0x505   : > { %7045 = vst [vmem:[#allocation116_spill] sm:$0xff] %v5793_v34 }
 0x506   : > { %2359 = vrot.lane.b32.xlu1 %v5598_v40, %s4394_s16  ;;  %1882 = vrot.lane.b32.xlu0 %v5798_v45, %s4384_s17  ;;  %v7049_v40 = vrot.slane %v4891_v32, 2 }
 0x508   : > { %v5804_v25 = vpop.permute.xlu1 %1687  ;;  %v5806_v16 = vpop.permute.xlu0 %2269  ;;  %v1833_v6 = vsel %vm1763_vm8, %v7049_v40, %v6889_v54  ;;  %v1638_v54 = vrot.slane %v4862_v26, 1 }
 0x509   : > { %7047 = vst [vmem:[#allocation117_spill] sm:$0xff] %v5806_v16 }
 0x50a   : > { %2084 = vrot.lane.b32.xlu1 %v5615_v28, %s4385_s26  ;;  %2080 = vrot.lane.b32.xlu0 %v5786_v37, %s4385_s26 }
 0x50c   : > { %v5813_v51 = vpop.permute.xlu1 %1715  ;;  %v5815_v47 = vpop.permute.xlu0 %1697 }
 0x50d   : > { %7048 = vst [vmem:[#allocation118_spill] sm:$0xff] %v5815_v47  ;;  %v7051_v47 = vrot.slane %v4891_v32, 1 }
 0x50e   : > { %2189 = vrot.lane.b32.xlu1 %v5641_v23, %s4393_s15  ;;  %2502 = vrot.lane.b32.xlu0 %v1833_v6, %s4387_s13 }
 0x50f   : > { %v1664_v58 = vsel %vm1594_vm7, %v7051_v47, %v6890_v4  ;;  %v1807_v47 = vrot.slane %v4862_v26, 2  ;;  %v7055_v4 = vrot.slane %v4849_v21, 1  ;;  %v6892_v26 = vrot.slane %v4914_v59, 2 }
 0x510   : > { %v5826_v28 = vpop.permute.xlu1 %1856  ;;  %v5828_v3 = vpop.permute.xlu0 %1725  ;;  %v6896_v21 = vrot.slane %v4952_v55, 1 }
 0x511   : > { %7050 = vst [vmem:[#allocation119_spill] sm:$0xff] %v5828_v3  ;;  %v5853_v3 = vsel %vm1594_vm7, %v7055_v4, %v1638_v54  ;;  %v7058_v54 = vrot.slane %v4893_v48, 2 }
 0x512   : > { %2293 = vrot.lane.b32.xlu1 %v4912_v53, %s4386_s27  ;;  %2094 = vrot.lane.b32.xlu0 %v1664_v58, %s4385_s26 }
 0x514   : > { %v5838_v40 = vpop.permute.xlu1 %1884  ;;  %v5840_v23 = vpop.permute.xlu0 %1866 }
 0x515   : > { %7052 = vst [vmem:[#allocation120_spill] sm:$0xff] %v5840_v23 }
 0x516   : > { %2478 = vrot.lane.b32.xlu1 %v1806_v57, %s4387_s13  ;;  %2199 = vrot.lane.b32.xlu0 %v1833_v6, %s4393_s15 }
 0x518   : > { %v5845_v16 = vpop.permute.xlu1 %1988  ;;  %v5847_v34 = vpop.permute.xlu0 %1894 }
 0x519   : > { %7053 = vst [vmem:[#allocation121_spill] sm:$0xff] %v5845_v16  ;;  %7054 = vst [vmem:[#allocation122_spill] sm:$0xff] %v5847_v34  ;;  %v5864_v16 = vsel %vm1763_vm8, %v1805_v49, %v1807_v47  ;;  %v6895_v49 = vrot.slane %v4914_v59, 1 }
 0x51a   : > { %2401 = vrot.lane.b32.xlu1 %v5726_v5, %s4394_s16  ;;  %1705 = vrot.lane.b32.xlu0 %v5853_v3, %s4392_s14 }
 0x51c   : > { %v5859_v23 = vpop.permute.xlu1 %2054  ;;  %v5861_v32 = vpop.permute.xlu0 %2064 }
 0x51d   : > { %7056 = vst [vmem:[#allocation123_spill] sm:$0xff] %v5861_v32  ;;  %v5879_v32 = vsel %vm1763_vm8, %v7058_v54, %v6892_v26 }
 0x51e   : > { %2175 = vrot.lane.b32.xlu1 %v1806_v57, %s4393_s15  ;;  %1874 = vrot.lane.b32.xlu0 %v5864_v16, %s4384_s17 }
 0x520   : > { %v5870_v4 = vpop.permute.xlu1 %2159  ;;  %v5872_v5 = vpop.permute.xlu0 %2183 }
 0x521   : > { %7057 = vst [vmem:[#allocation124_spill] sm:$0xff] %v5872_v5  ;;  %v7060_v5 = vrot.slane %v4893_v48, 1 }
 0x522   : > { %1996 = vrot.lane.b32.xlu1 %v4952_v55, %s4391_s12  ;;  %2494 = vrot.lane.b32.xlu0 %v5879_v32, %s4387_s13 }
 0x523   : > { %v1655_v34 = vsel %vm1594_vm7, %v7060_v5, %v6895_v49  ;;  %v7065_v5 = vrot.slane %v4940_v12, 1 }
 0x524   : > { %v5886_v57 = vpop.permute.xlu1 %2187  ;;  %v5888_v47 = vpop.permute.xlu0 %2472 }
 0x525   : > { %7059 = vst [vmem:[#allocation125_spill] sm:$0xff] %v5886_v57  ;;  %v2037_v49 = vsel %vm1594_vm7, %v7065_v5, %v6896_v21 }
 0x526   : > { %2285 = vrot.lane.b32.xlu1 %v4914_v59, %s4386_s27  ;;  %2086 = vrot.lane.b32.xlu0 %v1655_v34, %s4385_s26 }
 0x528   : > { %v5898_v54 = vpop.permute.xlu1 %2371  ;;  %v5900_v26 = vpop.permute.xlu0 %2395 }
 0x529   : > { %7061 = vst [vmem:[#allocation126_spill] sm:$0xff] %v5898_v54  ;;  %7062 = vst [vmem:[#allocation127_spill] sm:$0xff] %v5900_v26  ;;  %v7075_v54 = vrot.slane %v4912_v53, 1 }
 0x52a   : > { %1727 = vrot.lane.b32.xlu1 %v1664_v58, %s4392_s14  ;;  %2480 = vrot.lane.b32.xlu0 %v5864_v16, %s4387_s13 }
 0x52c   : > { %v5906_v57 = vpop.permute.xlu1 %2291  ;;  %v5908_v48 = vpop.permute.xlu0 %2169 }
 0x52d   : > { %7063 = vst [vmem:[#allocation128_spill] sm:$0xff] %v5906_v57  ;;  %7064 = vst [vmem:[#allocation129_spill] sm:$0xff] %v5908_v48  ;;  %v7067_v57 = vrot.slane %v4940_v12, 2 }
 0x52e   : > { %1896 = vrot.lane.b32.xlu1 %v1833_v6, %s4384_s17  ;;  %2403 = vrot.lane.b32.xlu0 %v2037_v49, %s4394_s16 }
 0x52f   : > { %v2142_v48 = vsel %vm1763_vm8, %v7067_v57, %v6897_v31  ;;  %v6898_v31 = vrot.slane %v4950_v29, 1 }
 0x530   : > { %v5918_v26 = vpop.permute.xlu1 %2277  ;;  %v5920_v39 = vpop.permute.xlu0 %2409 }
 0x531   : > { %7066 = vst [vmem:[#allocation130_spill] sm:$0xff] %v5918_v26 }
 0x532   : > { %2185 = vrot.lane.b32.xlu1 %v5798_v45, %s4393_s15  ;;  %2508 = vrot.lane.b32.xlu0 %v2142_v48, %s4387_s13 }
 0x534   : > { %v5930_v5 = vpop.permute.xlu1 %2385  ;;  %v5932_v6 = vpop.permute.xlu0 %1689 }
 0x535   : > { %7068 = vst [vmem:[#allocation131_spill] sm:$0xff] %v5930_v5  ;;  %7069 = vst [vmem:[#allocation132_spill] sm:$0xff] %v5932_v6  ;;  %v1834_v6 = vrot.slane %v4919_v61, 2 }
 0x536   : > { %2397 = vrot.lane.b32.xlu1 %v1664_v58, %s4394_s16  ;;  %2100 = vrot.lane.b32.xlu0 %v2037_v49, %s4385_s26 }
 0x538   : > { %v1981_v21 = vpop.permute.xlu1 %1980  ;;  %v1718_v26 = vpop.permute.xlu0 %1717 }
 0x539   : > { %v2580_v58 = vsel %vm2554_vm9, %v4883_v44, %v1718_v26 }
 0x53a   : > { %2383 = vrot.lane.b32.xlu1 %v5786_v37, %s4394_s16  ;;  %2205 = vrot.lane.b32.xlu0 %v2142_v48, %s4393_s15  ;;  %v1665_v37 = vrot.slane %v4919_v61, 1  ;;  %v6899_v48 = vrot.slane %v4950_v29, 2 }
 0x53c   : > { %v5939_v12 = vpop.permute.xlu1 %2283  ;;  %v5941_v57 = vpop.permute.xlu0 %1858 }
 0x53d   : > { %7070 = vst [vmem:[#allocation133_spill] sm:$0xff] %v5939_v12  ;;  %7071 = vst [vmem:[#allocation134_spill] sm:$0xff] %v5941_v57  ;;  %v7072_v57 = vrot.slane %v4938_v15, 1 }
 0x53e   : > { %2488 = vrot.lane.b32.xlu1 %v5798_v45, %s4387_s13  ;;  %1998 = vrot.lane.b32.xlu0 %v4965_v50, %s4391_s12  ;;  %s3950_s12 = sshll.u32 %s4367_s22, 6 }
 0x53f   : > { %v2348_v45 = vsel %vm1594_vm7, %v7072_v57, %v6898_v31  ;;  %v1666_v57 = vsel %vm1594_vm7, %v7075_v54, %v1665_v37  ;;  %s6715_s22 = sadd.s32 %s4363_s21, %s3950_s12 }
 0x540   : > { %v2298_v49 = vpop.permute.xlu1 %2297  ;;  %v1887_v5 = vpop.permute.xlu0 %1886  ;;  %s3951_s21 = sshll.u32 %s6715_s22, 7 }
 0x541   : > { %v2612_v12 = vsel %vm603_vm0, %v2580_v58, %v1887_v5  ;;  %v7074_v5 = vrot.slane %v4938_v15, 2  ;;  %v7076_v15 = vrot.slane %v4912_v53, 2  ;;  %s6748_s30 = scalar_lea.hbm %s6828_s5, %s3951_s21 }
 0x542   : > { %2411 = vrot.lane.b32.xlu1 %v2348_v45, %s4394_s16  ;;  %2301 = vrot.lane.b32.xlu0 %v4965_v50, %s4386_s27 }
 0x543   : > { %v2453_v58 = vsel %vm1763_vm8, %v7074_v5, %v6899_v48  ;;  %v1835_v5 = vsel %vm1763_vm8, %v7076_v15, %v1834_v6  ;;  %v7077_v48 = vrot.slane %v4914_v59, 1 }
 0x544   : > { %v1712_v44 = vpop.permute.xlu1 %1711  ;;  %v5961_v26 = vpop.permute.xlu0 %1990 }
 0x545   : > { %7073 = vst [vmem:[#allocation135_spill] sm:$0xff] %v5961_v26  ;;  %v2577_v45 = vsel %vm2554_vm9, %v4837_v19, %v1712_v44  ;;  %v1656_v44 = vrot.slane %v4921_v0, 1 }
 0x546   : > { %2516 = vrot.lane.b32.xlu1 %v2453_v58, %s4387_s13  ;;  %1729 = vrot.lane.b32.xlu0 %v1666_v57, %s4392_s14 }
 0x547   : > { %v1657_v53 = vsel %vm1594_vm7, %v7077_v48, %v1656_v44  ;;  %v2572_v44 = vsel %vm2554_vm9, %v4828_v14, %v5650_v63 }
 0x548   : > { %v1881_v31 = vpop.permute.xlu1 %1880  ;;  %v5976_v26 = vpop.permute.xlu0 %2056 }
 0x549   : > { %v2609_v61 = vsel %vm603_vm0, %v2577_v45, %v1881_v31 }
 0x54a   : > { %1719 = vrot.lane.b32.xlu1 %v1655_v34, %s4392_s14  ;;  %1898 = vrot.lane.b32.xlu0 %v1835_v5, %s4384_s17  ;;  %v5985_v54 = vsel %vm2619_vm10, %v2609_v61, %v1981_v21  ;;  %v2645_v61 = vsel %vm2619_vm10, %v2612_v12, %v5416_v8 }
 0x54c   : > { %v5987_v37 = vpop.permute.xlu1 %2078  ;;  %v5989_v58 = vpop.permute.xlu0 %2464 }
 0x54e   : > { %1888 = vrot.lane.b32.xlu1 %v5879_v32, %s4384_s17  ;;  %2399 = vrot.lane.b32.xlu0 %v1666_v57, %s4394_s16 }
 0x550   : > { %v5994_v19 = vpop.permute.xlu1 %2367  ;;  %v5996_v31 = vpop.permute.xlu0 %2161 }
 0x552   : > { %2389 = vrot.lane.b32.xlu1 %v1655_v34, %s4394_s16  ;;  %2096 = vrot.lane.b32.xlu0 %v1666_v57, %s4385_s26  ;;  %v1825_v34 = vrot.slane %v4921_v0, 2 }
 0x554   : > { %v6000_v6 = vpop.permute.xlu1 %2500  ;;  %v6002_v21 = vpop.permute.xlu0 %2373 }
 0x556   : > { %2191 = vrot.lane.b32.xlu1 %v5879_v32, %s4393_s15  ;;  %2201 = vrot.lane.b32.xlu0 %v1835_v5, %s4393_s15  ;;  %v2583_v32 = vsel %vm2554_vm9, %v4869_v30, %v5668_v7  ;;  %v2604_v7 = vsel %vm603_vm0, %v2572_v44, %v5670_v24 }
 0x557   : > { %v2615_v8 = vsel %vm603_vm0, %v2583_v32, %v5689_v38 }
 0x558   : > { %v2093_v45 = vpop.permute.xlu1 %2092  ;;  %v6010_v15 = vpop.permute.xlu0 %2506  ;;  %v2648_v38 = vsel %vm2619_vm10, %v2615_v8, %v5605_v11 }
 0x559   : > { %v2677_v57 = vsel %vm606_vm1, %v2645_v61, %v2093_v45  ;;  %v7078_v61 = vrot.slane %v4914_v59, 2 }
 0x55a   : > { %2375 = vrot.lane.b32.xlu1 %v5853_v3, %s4394_s16  ;;  %1721 = vrot.lane.b32.xlu0 %v1657_v53, %s4392_s14 }
 0x55b   : > { %v6029_v48 = vsel %vm1763_vm8, %v7078_v61, %v1825_v34 }
 0x55c   : > { %v2198_v12 = vpop.permute.xlu1 %2197  ;;  %v2099_v0 = vpop.permute.xlu0 %2098 }
 0x55d   : > { %v2710_v45 = vsel %vm2684_vm11, %v2677_v57, %v2198_v12  ;;  %v2680_v34 = vsel %vm606_vm1, %v2648_v38, %v2099_v0  ;;  %v2038_v12 = vrot.slane %v4965_v50, 1 }
 0x55e   : > { %2072 = vrot.lane.b32.xlu1 %v5853_v3, %s4385_s26  ;;  %1890 = vrot.lane.b32.xlu0 %v6029_v48, %s4384_s17  ;;  %v6039_v30 = vsel %vm609_vm2, %v2710_v45, %v2298_v49  ;;  %v2637_v3 = vsel %vm2619_vm10, %v2604_v7, %v5207_v41  ;;  %v2559_v41 = vsel %vm2554_vm9, %v4737_v33, %v5037_v18  ;;  %v7080_v33 = vrot.slane %v4952_v55, 1 }
 0x55f   : > { %v2669_v24 = vsel %vm606_vm1, %v2637_v3, %v5778_v60 }
 0x560   : > { %v6046_v57 = vpop.permute.xlu1 %2381  ;;  %v2204_v63 = vpop.permute.xlu0 %2203  ;;  %v2702_v11 = vsel %vm2684_vm11, %v2669_v24, %v5791_v10  ;;  %v7079_v10 = vld [vmem:[#allocation33_spill] sm:$0xff]  ;;  %v6085_v18 = vsel %vm1594_vm7, %v7080_v33, %v2038_v12  ;;  %v7083_v24 = vld [vmem:[#allocation10_spill] sm:$0xff] }
 0x561   : > { %v2713_v14 = vsel %vm2684_vm11, %v2680_v34, %v2204_v63  ;;  %v2734_v60 = vsel %vm609_vm2, %v2702_v11, %v5648_v17  ;;  %v2143_v17 = vrot.slane %v4965_v50, 2  ;;  %v2558_v11 = vsel %vm2554_vm9, %v7083_v24, %v5634_v1  ;;  %v7091_v33 = vld [vmem:[#allocation66_spill] sm:$0xff] }
 0x562   : > { %2177 = vrot.lane.b32.xlu1 %v5864_v16, %s4393_s15  ;;  %2391 = vrot.lane.b32.xlu0 %v1657_v53, %s4394_s16  ;;  %v2745_v8 = vsel %vm609_vm2, %v2713_v14, %v5466_v56  ;;  %v2591_v16 = vsel %vm603_vm0, %v2559_v41, %v7079_v10  ;;  %v7082_v14 = vld [vmem:[#allocation28_spill] sm:$0xff]  ;;  %v7087_v10 = vld [vmem:[#allocation50_spill] sm:$0xff]  ;;  %v2349_v1 = vrot.slane %v4963_v22, 1 }
 0x563   : > { %v2778_v45 = vsel %vm2749_vm12, %v2745_v8, %v5920_v39  ;;  %v7081_v39 = vld [vmem:[#allocation32_spill] sm:$0xff]  ;;  %v2351_v3 = vrot.slane %v7082_v14, 1  ;;  %v7094_v24 = vld [vmem:[#allocation70_spill] sm:$0xff] }
 0x564   : > { %v6058_v49 = vpop.permute.xlu1 %2486  ;;  %v2388_v32 = vpop.permute.xlu0 %2387  ;;  %v2624_v7 = vsel %vm2619_vm10, %v2591_v16, %v7081_v39  ;;  %v7085_v41 = vld [vmem:[#allocation40_spill] sm:$0xff]  ;;  %v7088_v16 = vld [vmem:[#allocation11_spill] sm:$0xff] }
 0x565   : > { %v2767_v0 = vsel %vm2749_vm12, %v2734_v60, %v2388_v32  ;;  %v2656_v38 = vsel %vm606_vm1, %v2624_v7, %v5289_v13  ;;  %v7084_v32 = vrot.slane %v4952_v55, 2  ;;  %v7086_v60 = vld [vmem:[#allocation7_spill] sm:$0xff]  ;;  %v7089_v55 = vld [vmem:[#allocation42_spill] sm:$0xff]  ;;  %v7092_v39 = vld [vmem:[#allocation8_spill] sm:$0xff] }
 0x566   : > { %2504 = vrot.lane.b32.xlu1 %v1835_v5, %s4387_s13  ;;  %2309 = vrot.lane.b32.xlu0 %v4963_v22, %s4386_s27  ;;  %v2689_v50 = vsel %vm2684_vm11, %v2656_v38, %v5300_v27  ;;  %v2560_v13 = vsel %vm2554_vm9, %v7086_v60, %v7085_v41  ;;  %v2590_v27 = vsel %vm603_vm0, %v2558_v11, %v5662_v36  ;;  %v7093_v38 = vld [vmem:[#allocation31_spill] sm:$0xff]  ;;  %v7095_v60 = vld [vmem:[#allocation29_spill] sm:$0xff] }
 0x567   : > { %v6107_v8 = vsel %vm1763_vm8, %v7084_v32, %v2143_v17  ;;  %v2561_v7 = vsel %vm2554_vm9, %v7092_v39, %v7091_v33  ;;  %v2721_v36 = vsel %vm609_vm2, %v2689_v50, %v7093_v38  ;;  %v2145_v50 = vrot.slane %v7095_v60, 2  ;;  %v7098_v39 = vld [vmem:[#allocation36_spill] sm:$0xff]  ;;  %v7101_v38 = vld [vmem:[#allocation9_spill] sm:$0xff] }
 0x568   : > { %v2515_v56 = vpop.permute.xlu1 %2514  ;;  %v2493_v5 = vpop.permute.xlu0 %2492 }
 0x569   : > { %v6077_v61 = vsel %vm612_vm3, %v2778_v45, %v2515_v56  ;;  %v6080_v44 = vsel %vm612_vm3, %v2767_v0, %v2493_v5  ;;  %v2563_v0 = vsel %vm2554_vm9, %v7088_v16, %v7087_v10  ;;  %v2592_v56 = vsel %vm603_vm0, %v2560_v13, %v7089_v55  ;;  %v7090_v45 = vld [vmem:[#allocation51_spill] sm:$0xff]  ;;  %v7096_v10 = vld [vmem:[#allocation48_spill] sm:$0xff] }
 0x56a   : > { %2496 = vrot.lane.b32.xlu1 %v6029_v48, %s4387_s13  ;;  %2405 = vrot.lane.b32.xlu0 %v6085_v18, %s4394_s16  ;;  %v2595_v5 = vsel %vm603_vm0, %v2563_v0, %v7090_v45  ;;  %v2040_v13 = vrot.slane %v7095_v60, 1  ;;  %v2623_v16 = vsel %vm2619_vm10, %v2590_v27, %v7096_v10  ;;  %v2352_v55 = vsel %vm1594_vm7, %v2349_v1, %v2351_v3  ;;  %v7097_v45 = vld [vmem:[#allocation30_spill] sm:$0xff]  ;;  %v7100_v27 = vld [vmem:[#allocation13_spill] sm:$0xff] }
 0x56b   : > { %v2628_v33 = vsel %vm2619_vm10, %v2595_v5, %v7097_v45  ;;  %v2562_v3 = vsel %vm2554_vm9, %v7101_v38, %v5530_v2  ;;  %v7103_v5 = vld [vmem:[#allocation44_spill] sm:$0xff]  ;;  %v2655_v45 = vsel %vm606_vm1, %v2623_v16, %v5573_v42  ;;  %v7106_v42 = vrot.slane %v4950_v29, 1 }
 0x56c   : > { %v1704_v34 = vpop.permute.xlu1 %1703  ;;  %v6096_v63 = vpop.permute.xlu0 %1982  ;;  %v2146_v16 = vsel %vm1763_vm8, %v2143_v17, %v2145_v50 }
 0x56d   : > { %v2573_v11 = vsel %vm2554_vm9, %v4839_v20, %v1704_v34  ;;  %v2625_v20 = vsel %vm2619_vm10, %v2592_v56, %v7098_v39  ;;  %v7099_v34 = vld [vmem:[#allocation71_spill] sm:$0xff]  ;;  %v7104_v56 = vld [vmem:[#allocation73_spill] sm:$0xff] }
 0x56e   : > { %2088 = vrot.lane.b32.xlu1 %v1657_v53, %s4385_s26  ;;  %2510 = vrot.lane.b32.xlu0 %v6107_v8, %s4387_s13  ;;  %v2593_v53 = vsel %vm603_vm0, %v2561_v7, %v7094_v24  ;;  %v2564_v7 = vsel %vm2554_vm9, %v7100_v27, %v7099_v34  ;;  %v7102_v24 = vld [vmem:[#allocation60_spill] sm:$0xff] }
 0x56f   : > { %v2596_v60 = vsel %vm603_vm0, %v2564_v7, %v7104_v56  ;;  %v7110_v7 = vld [vmem:[#allocation49_spill] sm:$0xff] }
 0x570   : > { %v1873_v32 = vpop.permute.xlu1 %1872  ;;  %v6134_v41 = vpop.permute.xlu0 %2299 }
 0x571   : > { %v6140_v0 = vsel %vm603_vm0, %v2573_v11, %v1873_v32  ;;  %v2626_v11 = vsel %vm2619_vm10, %v2593_v53, %v7102_v24  ;;  %v2754_v32 = vsel %vm2749_vm12, %v2721_v36, %v7103_v5  ;;  %v2688_v36 = vsel %vm2684_vm11, %v2655_v45, %v5720_v62  ;;  %v7107_v62 = vld [vmem:[#allocation47_spill] sm:$0xff]  ;;  %v7112_v5 = vld [vmem:[#allocation52_spill] sm:$0xff]  ;;  %v7115_v45 = vld [vmem:[#allocation90_spill] sm:$0xff] }
 0x572   : > { %2193 = vrot.lane.b32.xlu1 %v6029_v48, %s4393_s15  ;;  %2415 = vrot.lane.b32.xlu0 %v2352_v55, %s4394_s16  ;;  %v7105_v48 = vld [vmem:[#allocation76_spill] sm:$0xff]  ;;  %v2594_v55 = vsel %vm603_vm0, %v2562_v3, %v5559_v43  ;;  %v2658_v34 = vsel %vm606_vm1, %v2626_v11, %v5859_v23  ;;  %v2660_v27 = vsel %vm606_vm1, %v2628_v33, %v7107_v62  ;;  %v7108_v23 = vld [vmem:[#allocation34_spill] sm:$0xff]  ;;  %v7111_v3 = vld [vmem:[#allocation39_spill] sm:$0xff] }
 0x573   : > { %v2657_v10 = vsel %vm606_vm1, %v2625_v20, %v7105_v48  ;;  %v2041_v20 = vsel %vm1594_vm7, %v2038_v12, %v2040_v13  ;;  %v2691_v43 = vsel %vm2684_vm11, %v2658_v34, %v5870_v4  ;;  %v2629_v12 = vsel %vm2619_vm10, %v2596_v60, %v7108_v23  ;;  %v7109_v13 = vld [vmem:[#allocation84_spill] sm:$0xff]  ;;  %v7120_v23 = vld [vmem:[#allocation95_spill] sm:$0xff] }
 0x574   : > { %v6169_v39 = vpop.permute.xlu1 %2070  ;;  %v1714_v2 = vpop.permute.xlu0 %1713  ;;  %v2690_v53 = vsel %vm2684_vm11, %v2657_v10, %v5557_v35  ;;  %v2350_v35 = vsel %vm1594_vm7, %v7106_v42, %v2349_v1  ;;  %v2627_v4 = vsel %vm2619_vm10, %v2594_v55, %v7109_v13  ;;  %v2786_v38 = vsel %vm612_vm3, %v2754_v32, %v7110_v7 }
 0x575   : > { %v2722_v24 = vsel %vm609_vm2, %v2690_v53, %v7111_v3  ;;  %v2659_v1 = vsel %vm606_vm1, %v2627_v4, %v5976_v26  ;;  %v2578_v17 = vsel %vm2554_vm9, %v4847_v9, %v1714_v2  ;;  %v2720_v33 = vsel %vm609_vm2, %v2688_v36, %v5621_v52  ;;  %v7113_v26 = vld [vmem:[#allocation15_spill] sm:$0xff]  ;;  %v7116_v2 = vld [vmem:[#allocation21_spill] sm:$0xff] }
 0x576   : > { %2307 = vrot.lane.b32.xlu1 %v4950_v29, %s4386_s27  ;;  %2407 = vrot.lane.b32.xlu0 %v2041_v20, %s4394_s16  ;;  %v2723_v56 = vsel %vm609_vm2, %v2691_v43, %v7112_v5  ;;  %v2692_v32 = vsel %vm2684_vm11, %v2659_v1, %v5996_v31  ;;  %v2565_v10 = vsel %vm2554_vm9, %v7113_v26, %v5804_v25  ;;  %v7114_v31 = vld [vmem:[#allocation63_spill] sm:$0xff]  ;;  %v7117_v36 = vld [vmem:[#allocation65_spill] sm:$0xff]  ;;  %s244_s27 = sand.u32 1, %s4355_s19  }
 0x577   : > { %v2661_v55 = vsel %vm606_vm1, %v2629_v12, %v7114_v31  ;;  %v2576_v53 = vsel %vm2554_vm9, %v7116_v2, %v7115_v45  ;;  %v2597_v25 = vsel %vm603_vm0, %v2565_v10, %v5826_v28  ;;  %v2755_v34 = vsel %vm2749_vm12, %v2722_v24, %v7117_v36  ;;  %v7121_v28 = vld [vmem:[#allocation46_spill] sm:$0xff]  ;;  %v7122_v4 = vld [vmem:[#allocation53_spill] sm:$0xff]  ;;  %v7123_v3 = vld [vmem:[#allocation67_spill] sm:$0xff]  ;;  %s6770_s8 = scalar_lea.sflag [#allocation3], %s244_s27 }
 0x578   : > { %v2360_v50 = vpop.permute.xlu1 %2359  ;;  %v1883_v11 = vpop.permute.xlu0 %1882  ;;  %v2756_v12 = vsel %vm2749_vm12, %v2723_v56, %v7120_v23  ;;  %v2693_v13 = vsel %vm2684_vm11, %v2660_v27, %v7121_v28  ;;  %v2630_v7 = vsel %vm2619_vm10, %v2597_v25, %v7122_v4  ;;  %v2694_v24 = vsel %vm2684_vm11, %v2661_v55, %v7123_v3  ;;  %v7128_v26 = vld [vmem:[#allocation105_spill] sm:$0xff]  ;;  %v7133_v36 = vld [vmem:[#allocation126_spill] sm:$0xff]  ;;  %v7136_v23 = vld [vmem:[#allocation99_spill] sm:$0xff] }
 0x579   : > { %v2753_v60 = vsel %vm2749_vm12, %v2720_v33, %v2360_v50  ;;  %v2610_v48 = vsel %vm603_vm0, %v2578_v17, %v1883_v11  ;;  %v7125_v17 = vld [vmem:[#allocation23_spill] sm:$0xff]  ;;  %v7126_v33 = vld [vmem:[#allocation86_spill] sm:$0xff]  ;;  %v2788_v11 = vsel %vm612_vm3, %v2756_v12, %v5733_v46  ;;  %v7129_v10 = vld [vmem:[#allocation81_spill] sm:$0xff] }
 0x57a   : > { %2413 = vrot.lane.b32.xlu1 %v2350_v35, %s4394_s16  ;;  %2512 = vrot.lane.b32.xlu0 %v2146_v16, %s4387_s13  ;;  %v2785_v9 = vsel %vm612_vm3, %v2753_v60, %v5989_v58  ;;  %v6218_v52 = vsel %vm2619_vm10, %v2610_v48, %v6096_v63  ;;  %v7118_v58 = vld [vmem:[#allocation92_spill] sm:$0xff]  ;;  %v7119_v63 = vld [vmem:[#allocation79_spill] sm:$0xff]  ;;  %v2579_v50 = vsel %vm2554_vm9, %v7125_v17, %v5813_v51  ;;  %v2456_v60 = vrot.slane %v7082_v14, 2  ;;  %v7127_v48 = vld [vmem:[#allocation38_spill] sm:$0xff] }
 0x57b   : > { %4061 = vmatmul.mubr.msk.f32.gmra.mrb[2].mxu0 %vm2830_vm13, %v2785_v9  ;;  %v2608_v43 = vsel %vm603_vm0, %v2576_v53, %v7118_v58  ;;  %v2724_v42 = vsel %vm609_vm2, %v2692_v32, %v7119_v63  ;;  %v2611_v5 = vsel %vm603_vm0, %v2579_v50, %v5838_v40  ;;  %v2725_v46 = vsel %vm609_vm2, %v2693_v13, %v7127_v48  ;;  %v7130_v9 = vld [vmem:[#allocation57_spill] sm:$0xff]  ;;  %v7132_v53 = vld [vmem:[#allocation55_spill] sm:$0xff]  ;;  %v7137_v28 = vld [vmem:[#allocation108_spill] sm:$0xff] }
 0x57c   : > { %v2085_v35 = vpop.permute.xlu1 %2084  ;;  %4063 = vmatprep.mubr.msk.f32.mxu0 %vm2830_vm13, %v2786_v38  ;;  %v6235_v62 = vpop.permute.xlu0 %2080  ;;  %v7124_v38 = vld [vmem:[#allocation75_spill] sm:$0xff]  ;;  %v2641_v27 = vsel %vm2619_vm10, %v2608_v43, %v7126_v33  ;;  %v2758_v40 = vsel %vm2749_vm12, %v2725_v46, %v7129_v10  ;;  %v2726_v31 = vsel %vm609_vm2, %v2694_v24, %v7130_v9  ;;  %v7131_v45 = vld [vmem:[#allocation93_spill] sm:$0xff]  ;;  %v2644_v25 = vsel %vm2619_vm10, %v2611_v5, %v7132_v53  ;;  %v7138_v4 = vld [vmem:[#allocation88_spill] sm:$0xff] }
 0x57d   : > { %v2787_v1 = vsel %vm612_vm3, %v2755_v34, %v7124_v38  ;;  %v2673_v56 = vsel %vm606_vm1, %v2641_v27, %v2085_v35  ;;  %v2790_v2 = vsel %vm612_vm3, %v2758_v40, %v7131_v45  ;;  %v2759_v34 = vsel %vm2749_vm12, %v2726_v31, %v7133_v36  ;;  %v7140_v50 = vld [vmem:[#allocation101_spill] sm:$0xff]  ;;  %v7141_v33 = vld [vmem:[#allocation16_spill] sm:$0xff]  ;;  %v7146_v45 = vld [vmem:[#allocation94_spill] sm:$0xff] }
 0x57e   : > { %2102 = vrot.lane.b32.xlu1 %v6085_v18, %s4385_s26  ;;  %2104 = vrot.lane.b32.xlu0 %v2041_v20, %s4385_s26  ;;  %v2757_v18 = vsel %vm2749_vm12, %v2724_v42, %v5994_v19  ;;  %v2454_v20 = vrot.slane %v4963_v22, 2  ;;  %v2662_v19 = vsel %vm606_vm1, %v2630_v7, %v7128_v26  ;;  %v2676_v12 = vsel %vm606_vm1, %v2644_v25, %v7136_v23  ;;  %v7143_v5 = vld [vmem:[#allocation100_spill] sm:$0xff]  ;;  %s4395_s26 = smov [#allocation2]  }
 0x57f   : > { %4064 = vmatmul.mubr.msk.f32.gmra.mrb[4].mxu0 %vm2830_vm13, %v2787_v1  ;;  %v2789_v14 = vsel %vm612_vm3, %v2757_v18, %v5888_v47  ;;  %v2791_v13 = vsel %vm612_vm3, %v2759_v34, %v7137_v28  ;;  %v7139_v1 = vld [vmem:[#allocation109_spill] sm:$0xff]  ;;  %v2569_v27 = vsel %vm2554_vm9, %v7141_v33, %v7140_v50  ;;  %v7144_v48 = vld [vmem:[#allocation96_spill] sm:$0xff] }
 0x580   : > { %v2190_v32 = vpop.permute.xlu1 %2189  ;;  %4066 = vmatprep.mubr.msk.f32.mxu0 %vm2830_vm13, %v2788_v11  ;;  %v6265_v51 = vpop.permute.xlu0 %2502  ;;  %v2457_v35 = vsel %vm1763_vm8, %v2454_v20, %v2456_v60  ;;  %v2709_v17 = vsel %vm2684_vm11, %v2676_v12, %v7139_v1  ;;  %v7142_v11 = vld [vmem:[#allocation102_spill] sm:$0xff]  ;;  %v7150_v50 = vld [vmem:[#allocation24_spill] sm:$0xff] }
 0x581   : > { %v6273_v22 = vsel %vm2684_vm11, %v2673_v56, %v2190_v32  ;;  %v2601_v18 = vsel %vm603_vm0, %v2569_v27, %v7142_v11  ;;  %v7151_v27 = vld [vmem:[#allocation122_spill] sm:$0xff] }
 0x582   : > { %2207 = vrot.lane.b32.xlu1 %v6107_v8, %s4393_s15  ;;  %v6281_v55 = vpop.f32.mrb[0].mxu0  ;;  %2209 = vrot.lane.b32.xlu0 %v2146_v16, %s4393_s15  ;;  %v7134_v8 = vld [vmem:[#allocation98_spill] sm:$0xff]  ;;  %v7135_v16 = vrot.slane %v4950_v29, 2  ;;  %v2634_v46 = vsel %vm2619_vm10, %v2601_v18, %v7144_v48 }
 0x583   : > { %v2993_v58 = vpop.f32.mrb[1].mxu0  ;;  %4067 = vmatmul.mubr.msk.f32.gmra.mrb[6].mxu0 %vm2830_vm13, %v2789_v14  ;;  %v2695_v43 = vsel %vm2684_vm11, %v2662_v19, %v7134_v8  ;;  %v2666_v26 = vsel %vm606_vm1, %v2634_v46, %v6169_v39  ;;  %v7145_v19 = vld [vmem:[#allocation22_spill] sm:$0xff] }
 0x584   : > { %v6295_v63 = vpop.permute.xlu1 %2293  ;;  %4069 = vmatprep.mubr.msk.f32.mxu0 %vm2830_vm13, %v2790_v2  ;;  %v6298_v47 = vpop.permute.xlu0 %2094  ;;  %v2455_v42 = vsel %vm1763_vm8, %v7135_v16, %v2454_v20  ;;  %v2727_v7 = vsel %vm609_vm2, %v2695_v43, %v7138_v4 }
 0x585   : > { %v2760_v29 = vsel %vm2749_vm12, %v2727_v7, %v6002_v21  ;;  %v2741_v21 = vsel %vm609_vm2, %v2709_v17, %v7143_v5 }
 0x586   : > { %2518 = vrot.lane.b32.xlu1 %v2455_v42, %s4387_s13  ;;  %2520 = vrot.lane.b32.xlu0 %v2457_v35, %s4387_s13  ;;  %s3899_s13 = sshll.u32 %s244_s27, 7 }
 0x587   : > { %4070 = vmatmul.mubr.msk.f32.gmra.mrb[8].mxu0 %vm2830_vm13, %v2791_v13  ;;  %s6717_s15 = scalar_lea.vmem [#allocation2], %s3899_s13  ;;  %s4289_s13 = sshll.u32 %s4395_s26, 4  ;;  %s4290_s13 = int_to_ptr.vmem [resolvable:$false] %s4289_s13 }
 0x588   : > { %v2479_v3 = vpop.permute.xlu1 %2478  ;;  %v6315_v24 = vpop.permute.xlu0 %2199  ;;  %s3807_s16 = sshll.u32 %s6717_s15, 4  ;;  %s4291_s12 = scalar_lea.vmem %s4290_s13, 4096  ;;  %s6750_s16 = int_to_ptr.vmem [resolvable:$true] %s3807_s16 }
 0x589   : > { %v2792_v38 = vsel %vm612_vm3, %v2760_v29, %v2479_v3  ;;  %s4285_s17 = scalar_lea.vmem %s6750_s16, 2048  ;;  %p4292_p4 = scmp.lt.s32.totalorder %s6750_s16, %s4290_s13 }
 0x58a   : > { %4072 = vmatprep.mubr.msk.f32.mxu0 %vm2830_vm13, %v2792_v38  ;;  %p4286_p0 = scmp.ne.s32.totalorder %s6750_s16, %s4285_s17  ;;  %p4293_p5 = scmp.lt.s32.totalorder %s4291_s12, %s4285_s17 }
 0x58c   : > { %v2402_v20 = vpop.permute.xlu1 %2401  ;;  %v1706_v56 = vpop.permute.xlu0 %1705  ;;  %p4287_p1 = pnand %p4286_p0, %p4479_p3  ;;  %p4294_p6 = por %p4293_p5, %p4292_p4 }
 0x58d   : > { %v2774_v32 = vsel %vm2749_vm12, %v2741_v21, %v2402_v20  ;;  %v2574_v10 = vsel %vm2554_vm9, %v7145_v19, %v1706_v56  ;;  %v7152_v56 = vld [vmem:[#allocation116_spill] sm:$0xff] }
 0x58e   : > { %v6331_v60 = vsel %vm612_vm3, %v2774_v32, %v6010_v15  ;;  %v7147_v15 = vld [vmem:[#allocation103_spill] sm:$0xff]  ;;  %p4288_p2 = pneg %p4287_p1 }
 0x590   : > { %v2176_v40 = vpop.permute.xlu1 %2175  ;;  %v1875_v9 = vpop.permute.xlu0 %1874  ;;  %p4295_p7 = pnand %p4294_p6, %p4288_p2 }
 0x591   : > { %v2699_v31 = vsel %vm2684_vm11, %v2666_v26, %v2176_v40  ;;  %v2606_v14 = vsel %vm603_vm0, %v2574_v10, %v1875_v9 }
 0x592   : > { %v2731_v2 = vsel %vm609_vm2, %v2699_v31, %v7146_v45  ;;  %v2639_v53 = vsel %vm2619_vm10, %v2606_v14, %v7147_v15  ;;  %v7153_v15 = vld [vmem:[#allocation87_spill] sm:$0xff] }
 0x593   : > { %v2671_v25 = vsel %vm606_vm1, %v2639_v53, %v6235_v62  ;;  %v2764_v39 = vsel %vm2749_vm12, %v2731_v2, %v6046_v57  ;;  %v7148_v62 = vld [vmem:[#allocation25_spill] sm:$0xff]  ;;  %v2638_v53 = vsel %vm2619_vm10, %v6140_v0, %v7153_v15 }
 0x594   : > { %v1997_v36 = vpop.permute.xlu1 %1996  ;;  %v6349_v34 = vpop.permute.xlu0 %2494  ;;  %v6353_v8 = vsel %vm612_vm3, %v2764_v39, %v6058_v49 }
 0x598   : > { %v2286_v43 = vpop.permute.xlu1 %2285  ;;  %v2087_v16 = vpop.permute.xlu0 %2086 }
 0x599   : > { %v6357_v42 = vsel %vm606_vm1, %v5985_v54, %v2087_v16  ;;  %v6372_v54 = vld [vmem:[%s6827_s4] ss:$0 sm:$0xff] }
 0x59a   : > { %v2994_v1 = vadd.f32 %v6372_v54, %v2993_v58  ;;  %v2999_v5 = vadd.f32 %v6281_v55, %v6372_v54 }
 0x59c   : > { %v1728_v35 = vpop.permute.xlu1 %1727  ;;  %v6359_v23 = vpop.permute.xlu0 %2480  ;;  %v3184_v21 = vmul.f32 0.2, %v2994_v1  ;;  %vm3152_vm14 = vcmp.ge.f32.partialorder %v2994_v1, 0.0  ;;  %v3185_v19 = vmul.f32 0.2, %v2999_v5  ;;  %vm3153_vm15 = vcmp.ge.f32.partialorder %v2999_v5, 0.0 }
 0x59d   : > { %v2585_v12 = vsel %vm2554_vm9, %v7148_v62, %v1728_v35  ;;  %v2670_v35 = vsel %vm606_vm1, %v2638_v53, %v5987_v37  ;;  %v7156_v62 = vld [vmem:[#allocation45_spill] sm:$0xff] }
 0x59e   : > { %v3216_v10 = vsel %vm3152_vm14, %v2994_v1, %v3184_v21  ;;  %v3217_v9 = vsel %vm3153_vm15, %v2999_v5, %v3185_v19  ;;  %v7164_v5 = vld [vmem:[#allocation89_spill] sm:$0xff] }
 0x59f   : > { %v7166_v19 = vld [vmem:[#allocation133_spill] sm:$0xff] }
 0x5a0   : > { %v1897_v57 = vpop.permute.xlu1 %1896  ;;  %v2404_v28 = vpop.permute.xlu0 %2403 }
 0x5a1   : > { %v2617_v13 = vsel %vm603_vm0, %v2585_v12, %v1897_v57  ;;  %v2775_v49 = vsel %vm2749_vm12, %v6039_v30, %v2404_v28  ;;  %v7149_v30 = vld [vmem:[#allocation119_spill] sm:$0xff]  ;;  %v7157_v57 = vld [vmem:[#allocation132_spill] sm:$0xff]  ;;  %v7158_v28 = vld [vmem:[#allocation18_spill] sm:$0xff] }
 0x5a2   : > { %v6367_v4 = vsel %vm2619_vm10, %v2617_v13, %v1997_v36  ;;  %v2584_v33 = vsel %vm2554_vm9, %v7150_v50, %v7149_v30  ;;  %v7154_v36 = vld [vmem:[#allocation43_spill] sm:$0xff]  ;;  %v2566_v13 = vsel %vm2554_vm9, %v7158_v28, %v7157_v57  ;;  %v7161_v50 = vld [vmem:[#allocation124_spill] sm:$0xff]  ;;  %v7171_v57 = vld [vmem:[#allocation61_spill] sm:$0xff] }
 0x5a3   : > { %v2616_v11 = vsel %vm603_vm0, %v2584_v33, %v7151_v27  ;;  %v2703_v37 = vsel %vm2684_vm11, %v2670_v35, %v7161_v50  ;;  %v7162_v33 = vld [vmem:[#allocation41_spill] sm:$0xff]  ;;  %v7169_v35 = vld [vmem:[#allocation59_spill] sm:$0xff] }
 0x5a4   : > { %v2186_v7 = vpop.permute.xlu1 %2185  ;;  %v2509_v29 = vpop.permute.xlu0 %2508  ;;  %v2649_v58 = vsel %vm2619_vm10, %v2616_v11, %v7152_v56  ;;  %v7163_v11 = vld [vmem:[#allocation121_spill] sm:$0xff]  ;;  %v7165_v56 = vld [vmem:[#allocation74_spill] sm:$0xff]  ;;  %v7172_v28 = vld [vmem:[#allocation83_spill] sm:$0xff] }
 0x5a5   : > { %v2704_v3 = vsel %vm2684_vm11, %v2671_v25, %v2186_v7  ;;  %v6376_v38 = vsel %vm612_vm3, %v2775_v49, %v2509_v29  ;;  %v7159_v49 = vld [vmem:[#allocation134_spill] sm:$0xff]  ;;  %v7176_v50 = vld [vmem:[#allocation129_spill] sm:$0xff] }
 0x5a6   : > { %v6380_v17 = vsel %vm609_vm2, %v2704_v3, %v2286_v43  ;;  %v7155_v43 = vld [vmem:[#allocation12_spill] sm:$0xff]  ;;  %v2598_v0 = vsel %vm603_vm0, %v2566_v13, %v7159_v49  ;;  %v7160_v7 = vld [vmem:[#allocation26_spill] sm:$0xff] }
 0x5a7   : > { %v2567_v16 = vsel %vm2554_vm9, %v7155_v43, %v7154_v36  ;;  %v7168_v43 = vld [vmem:[#allocation123_spill] sm:$0xff]  ;;  %v7173_v13 = vld [vmem:[#allocation20_spill] sm:$0xff] }
 0x5a8   : > { %v6387_v18 = vpop.permute.xlu1 %2397  ;;  %v2101_v20 = vpop.permute.xlu0 %2100  ;;  %v2599_v12 = vsel %vm603_vm0, %v2567_v16, %v7156_v62  ;;  %v7170_v62 = vld [vmem:[#allocation14_spill] sm:$0xff]  ;;  %v2571_v49 = vsel %vm2554_vm9, %v7173_v13, %v7172_v28  ;;  %v7188_v13 = vld [vmem:[#allocation77_spill] sm:$0xff] }
 0x5a9   : > { %v2681_v32 = vsel %vm606_vm1, %v2649_v58, %v2101_v20  ;;  %v2632_v27 = vsel %vm2619_vm10, %v2599_v12, %v7162_v33  ;;  %v2631_v58 = vsel %vm2619_vm10, %v2598_v0, %v7165_v56  ;;  %v2568_v12 = vsel %vm2554_vm9, %v7170_v62, %v7169_v35  ;;  %v7177_v33 = vld [vmem:[#allocation56_spill] sm:$0xff]  ;;  %v7185_v62 = vld [vmem:[#allocation78_spill] sm:$0xff] }
 0x5aa   : > { %v2664_v21 = vsel %vm606_vm1, %v2632_v27, %v7164_v5  ;;  %v2663_v16 = vsel %vm606_vm1, %v2631_v58, %v7168_v43  ;;  %v7179_v5 = vld [vmem:[#allocation104_spill] sm:$0xff]  ;;  %v7180_v58 = vld [vmem:[#allocation117_spill] sm:$0xff] }
 0x5ac   : > { %v6394_v48 = vpop.permute.xlu1 %2383  ;;  %v2206_v46 = vpop.permute.xlu0 %2205 }
 0x5ad   : > { %v6397_v26 = vsel %vm2684_vm11, %v2681_v32, %v2206_v46 }
 0x5af   : > { %3248 = vxpose.xlu1.b32.start [1/4] (short) (narrow) %v3216_v10, 16  ;;  %v2735_v10 = vsel %vm609_vm2, %v2703_v37, %v7166_v19  ;;  %v2696_v37 = vsel %vm2684_vm11, %v2663_v16, %v7176_v50  ;;  %v7181_v19 = vld [vmem:[#allocation69_spill] sm:$0xff]  ;;  %v7183_v16 = vld [vmem:[#allocation68_spill] sm:$0xff] }
 0x5b0   : > { %v6399_v40 = vpop.permute.xlu1 %2488  ;;  %v6401_v55 = vpop.permute.xlu0 %1998 }
 0x5b3   : > { %3249 = vxpose.xlu1.b32.cont [2/4] (short) (narrow) %v3217_v9, 16 }
 0x5b4   : > { %v6403_v31 = vpop.permute.xlu1 %2411  ;;  %v6405_v14 = vpop.permute.xlu0 %2301 }
 0x5b8   : > { %v6407_v45 = vpop.permute.xlu1 %2516  ;;  %v6409_v2 = vpop.permute.xlu0 %1729 }
 0x5bc   : > { %v1720_v25 = vpop.permute.xlu1 %1719  ;;  %v6414_v39 = vpop.permute.xlu0 %1898 }
 0x5bd   : > { %v2581_v29 = vsel %vm2554_vm9, %v7160_v7, %v1720_v25  ;;  %v7167_v25 = vld [vmem:[#allocation82_spill] sm:$0xff] }
 0x5be   : > { %v2697_v36 = vsel %vm2684_vm11, %v2664_v21, %v7167_v25 }
 0x5c0   : > { %v1889_v3 = vpop.permute.xlu1 %1888  ;;  %v6430_v1 = vpop.permute.xlu0 %2399 }
 0x5c1   : > { %v2613_v30 = vsel %vm603_vm0, %v2581_v29, %v1889_v3  ;;  %v7174_v29 = vld [vmem:[#allocation85_spill] sm:$0xff] }
 0x5c2   : > { %v2646_v20 = vsel %vm2619_vm10, %v2613_v30, %v7163_v11  ;;  %v2603_v3 = vsel %vm603_vm0, %v2571_v49, %v7174_v29  ;;  %v7178_v11 = vld [vmem:[#allocation37_spill] sm:$0xff]  ;;  %v7189_v29 = vld [vmem:[#allocation72_spill] sm:$0xff] }
 0x5c3   : > { %v2678_v32 = vsel %vm606_vm1, %v2646_v20, %v6298_v47  ;;  %v2636_v20 = vsel %vm2619_vm10, %v2603_v3, %v7178_v11 }
 0x5c4   : > { %v2390_v46 = vpop.permute.xlu1 %2389  ;;  %v6447_v9 = vpop.permute.xlu0 %2096  ;;  %v6451_v15 = vsel %vm2684_vm11, %v2678_v32, %v6315_v24  ;;  %v2600_v24 = vsel %vm603_vm0, %v2568_v12, %v7171_v57  ;;  %v2728_v32 = vsel %vm609_vm2, %v2696_v37, %v7180_v58  ;;  %v2668_v12 = vsel %vm606_vm1, %v2636_v20, %v7185_v62  ;;  %v7186_v57 = vld [vmem:[#allocation118_spill] sm:$0xff]  ;;  %v7193_v20 = vld [vmem:[#allocation113_spill] sm:$0xff]  ;;  %v7199_v62 = vld [vmem:[#allocation64_spill] sm:$0xff] }
 0x5c5   : > { %v2768_v53 = vsel %vm2749_vm12, %v2735_v10, %v2390_v46  ;;  %v2633_v27 = vsel %vm2619_vm10, %v2600_v24, %v7177_v33  ;;  %v7187_v24 = vld [vmem:[#allocation17_spill] sm:$0xff]  ;;  %v7195_v58 = vld [vmem:[#allocation62_spill] sm:$0xff] }
 0x5c6   : > { %v2800_v47 = vsel %vm612_vm3, %v2768_v53, %v6349_v34  ;;  %v7175_v34 = vld [vmem:[#allocation35_spill] sm:$0xff]  ;;  %v2665_v21 = vsel %vm606_vm1, %v2633_v27, %v7179_v5  ;;  %v7182_v53 = vld [vmem:[#allocation110_spill] sm:$0xff]  ;;  %v2570_v28 = vsel %vm2554_vm9, %v7187_v24, %v7186_v57 }
 0x5c7   : > { %4084 = vmatprep.mubr.msk.f32.mxu1 %vm2830_vm13, %v2800_v47  ;;  %v2729_v30 = vsel %vm609_vm2, %v2697_v36, %v7175_v34  ;;  %v2698_v25 = vsel %vm2684_vm11, %v2665_v21, %v7182_v53  ;;  %v7184_v47 = vld [vmem:[#allocation19_spill] sm:$0xff]  ;;  %v7194_v21 = vld [vmem:[#allocation80_spill] sm:$0xff]  ;;  %v7197_v53 = vld [vmem:[#allocation106_spill] sm:$0xff] }
 0x5c8   : > { %v2192_v0 = vpop.permute.xlu1 %2191  ;;  %v6469_v7 = vpop.permute.xlu0 %2201  ;;  %v2762_v10 = vsel %vm2749_vm12, %v2729_v30, %v7181_v19  ;;  %v2575_v35 = vsel %vm2554_vm9, %v7184_v47, %v7183_v16  ;;  %v7191_v30 = vld [vmem:[#allocation120_spill] sm:$0xff]  ;;  %v7192_v27 = vld [vmem:[#allocation111_spill] sm:$0xff]  ;;  %v7198_v47 = vld [vmem:[#allocation125_spill] sm:$0xff] }
 0x5c9   : > { %v2794_v49 = vsel %vm612_vm3, %v2762_v10, %v7188_v13  ;;  %v2607_v3 = vsel %vm603_vm0, %v2575_v35, %v7189_v29  ;;  %v2602_v50 = vsel %vm603_vm0, %v2570_v28, %v7191_v30  ;;  %v7196_v19 = vld [vmem:[#allocation115_spill] sm:$0xff]  ;;  %v7201_v13 = vld [vmem:[#allocation130_spill] sm:$0xff] }
 0x5ca   : > { %v2635_v10 = vsel %vm2619_vm10, %v2602_v50, %v7196_v19  ;;  %v7200_v24 = vld [vmem:[#allocation131_spill] sm:$0xff]  ;;  %v2707_v50 = vsel %vm2684_vm11, %v6357_v42, %v2192_v0 }
 0x5cb   : > { %v7208_v19 = vld [vmem:[#allocation127_spill] sm:$0xff] }
 0x5cc   : > { %v2376_v56 = vpop.permute.xlu1 %2375  ;;  %v1722_v46 = vpop.permute.xlu0 %1721 }
 0x5cd   : > { %v2761_v36 = vsel %vm2749_vm12, %v2728_v32, %v2376_v56  ;;  %v2701_v56 = vsel %vm2684_vm11, %v2668_v12, %v7194_v21  ;;  %v2640_v32 = vsel %vm2619_vm10, %v2607_v3, %v7195_v58  ;;  %v7202_v3 = vld [vmem:[#allocation58_spill] sm:$0xff]  ;;  %v7206_v21 = vld [vmem:[#allocation128_spill] sm:$0xff] }
 0x5ce   : > { %v2793_v43 = vsel %vm612_vm3, %v2761_v36, %v6359_v23  ;;  %v7190_v23 = vld [vmem:[#allocation54_spill] sm:$0xff]  ;;  %v2733_v12 = vsel %vm609_vm2, %v2701_v56, %v7199_v62  ;;  %v7209_v62 = vld [vmem:[#allocation135_spill] sm:$0xff] }
 0x5cf   : > { %4073 = vmatmul.mubr.msk.f32.gmra.mrb[10].mxu0 %vm2830_vm13, %v2793_v43  ;;  %v2730_v34 = vsel %vm609_vm2, %v2698_v25, %v7190_v23  ;;  %v2672_v25 = vsel %vm606_vm1, %v2640_v32, %v7197_v53  ;;  %v2766_v28 = vsel %vm2749_vm12, %v2733_v12, %v7200_v24  ;;  %v7207_v32 = vld [vmem:[#allocation97_spill] sm:$0xff]  ;;  %v2743_v24 = vsel %vm609_vm2, %v6451_v15, %v6134_v41 }
 0x5d0   : > { %v2073_v37 = vpop.permute.xlu1 %2072  ;;  %4075 = vmatprep.mubr.msk.f32.mxu0 %vm2830_vm13, %v2794_v49  ;;  %v1891_v33 = vpop.permute.xlu0 %1890  ;;  %v2763_v11 = vsel %vm2749_vm12, %v2730_v34, %v7192_v27  ;;  %v2705_v35 = vsel %vm2684_vm11, %v2672_v25, %v7198_v47 }
 0x5d1   : > { %v2795_v5 = vsel %vm612_vm3, %v2763_v11, %v7193_v20  ;;  %v2667_v36 = vsel %vm606_vm1, %v2635_v10, %v2073_v37  ;;  %v7203_v37 = vld [vmem:[#allocation114_spill] sm:$0xff]  ;;  %v7205_v20 = vld [vmem:[#allocation107_spill] sm:$0xff] }
 0x5d2   : > { %v2798_v27 = vsel %vm612_vm3, %v2766_v28, %v7203_v37 }
 0x5d3   : > { %4076 = vmatmul.mubr.msk.f32.gmra.mrb[12].mxu0 %vm2830_vm13, %v2795_v5 }
 0x5d4   : > { %v2178_v43 = vpop.permute.xlu1 %2177  ;;  %4078 = vmatprep.mubr.msk.f32.mxu0 %vm2830_vm13, %v6353_v8  ;;  %v2392_v16 = vpop.permute.xlu0 %2391  ;;  %v2737_v8 = vsel %vm609_vm2, %v2705_v35, %v7202_v3 }
 0x5d5   : > { %v2700_v57 = vsel %vm2684_vm11, %v2667_v36, %v2178_v43  ;;  %v2770_v5 = vsel %vm2749_vm12, %v2737_v8, %v7205_v20  ;;  %v2769_v42 = vsel %vm2749_vm12, %v6380_v17, %v2392_v16  ;;  %v2582_v36 = vsel %vm2554_vm9, %v4914_v59, %v1722_v46 }
 0x5d6   : > { %v2732_v49 = vsel %vm609_vm2, %v2700_v57, %v7201_v13  ;;  %v2614_v43 = vsel %vm603_vm0, %v2582_v36, %v1891_v33 }
 0x5d7   : > { %v2765_v29 = vsel %vm2749_vm12, %v2732_v49, %v6394_v48  ;;  %v7204_v48 = vld [vmem:[#allocation91_spill] sm:$0xff]  ;;  %v2647_v59 = vsel %vm2619_vm10, %v2614_v43, %v7209_v62 }
 0x5d8   : > { %v2505_v23 = vpop.permute.xlu1 %2504  ;;  %v6539_v34 = vpop.permute.xlu0 %2309  ;;  %v2797_v30 = vsel %vm612_vm3, %v2765_v29, %v6399_v40  ;;  %v2738_v11 = vsel %vm609_vm2, %v6273_v22, %v7204_v48  ;;  %v2739_v40 = vsel %vm609_vm2, %v2707_v50, %v7206_v21  ;;  %v2802_v22 = vsel %vm612_vm3, %v2770_v5, %v7207_v32 }
 0x5d9   : > { %4079 = vmatmul.mubr.msk.f32.gmra.mrb[14].mxu0 %vm2830_vm13, %v2797_v30  ;;  %v2771_v10 = vsel %vm2749_vm12, %v2738_v11, %v7208_v19  ;;  %v2772_v17 = vsel %vm2749_vm12, %v2739_v40, %v6387_v18 }
 0x5da   : > { %4081 = vmatprep.mubr.msk.f32.mxu0 %vm2830_vm13, %v2798_v27  ;;  %v2804_v16 = vsel %vm612_vm3, %v2772_v17, %v6265_v51  ;;  %v2679_v51 = vsel %vm606_vm1, %v2647_v59, %v6447_v9 }
 0x5dc   : > { %v2497_v0 = vpop.permute.xlu1 %2496  ;;  %v2406_v56 = vpop.permute.xlu0 %2405 }
 0x5dd   : > { %v2801_v58 = vsel %vm612_vm3, %v2769_v42, %v2497_v0  ;;  %4082 = vmatmul.mubr.msk.f32.gmra.mrb[16].mxu0 %vm2830_vm13, %v6080_v44  ;;  %v2803_v44 = vsel %vm612_vm3, %v2771_v10, %v6000_v6 }
 0x5de   : > { %4085 = vmatmul.mubr.msk.f32.vlgmr.msra.gmra.mrb[12].mxu1 %vm2830_vm13, %v2801_v58 }
 0x5df   : > { %4087 = vmatprep.mubr.msk.f32.mxu1 %vm2830_vm13, %v2802_v22 }
 0x5e0   : > { %v2089_v53 = vpop.permute.xlu1 %2088  ;;  %v2511_v25 = vpop.permute.xlu0 %2510 }
 0x5e1   : > { %v2675_v18 = vsel %vm606_vm1, %v6218_v52, %v2089_v53 }
 0x5e2   : > { %4088 = vmatmul.mubr.msk.f32.gmra.mrb[14].mxu1 %vm2830_vm13, %v2803_v44 }
 0x5e3   : > { %4090 = vmatprep.mubr.msk.f32.mxu1 %vm2830_vm13, %v2804_v16 }
 0x5e4   : > { %v2194_v47 = vpop.permute.xlu1 %2193  ;;  %v2416_v35 = vpop.permute.xlu0 %2415 }
 0x5e5   : > { %v2708_v46 = vsel %vm2684_vm11, %v2675_v18, %v2194_v47 }
 0x5e6   : > { %v2740_v6 = vsel %vm609_vm2, %v2708_v46, %v6295_v63  ;;  %v2712_v63 = vsel %vm2684_vm11, %v2679_v51, %v6469_v7 }
 0x5e7   : > { %v2773_v33 = vsel %vm2749_vm12, %v2740_v6, %v6430_v1  ;;  %v2776_v1 = vsel %vm2749_vm12, %v2743_v24, %v2406_v56  ;;  %v2744_v49 = vsel %vm609_vm2, %v2712_v63, %v6405_v14 }
 0x5e8   : > { %v2308_v12 = vpop.permute.xlu1 %2307  ;;  %v2408_v57 = vpop.permute.xlu0 %2407  ;;  %v2805_v52 = vsel %vm612_vm3, %v2773_v33, %v2505_v23  ;;  %v2808_v13 = vsel %vm612_vm3, %v2776_v1, %v2511_v25 }
 0x5e9   : > { %4091 = vmatmul.mubr.msk.f32.gmra.mrb[16].mxu1 %vm2830_vm13, %v2805_v52  ;;  %v2777_v15 = vsel %vm2749_vm12, %v2744_v49, %v2408_v57 }
 0x5ea   : > { %4093 = vmatprep.mubr.msk.f32.mxu1 %vm2830_vm13, %v6331_v60  ;;  %v7210_v60 = vld [vmem:[#allocation27_spill] sm:$0xff] }
 0x5eb   : > { %v2586_v41 = vsel %vm2554_vm9, %v7210_v60, %v6409_v2 }
 0x5ec   : > { %v2414_v28 = vpop.permute.xlu1 %2413  ;;  %v2513_v9 = vpop.permute.xlu0 %2512  ;;  %v2618_v7 = vsel %vm603_vm0, %v2586_v41, %v6414_v39 }
 0x5ed   : > { %4094 = vmatmul.mubr.msk.f32.gmra.mrb[18].mxu1 %vm2830_vm13, %v6376_v38  ;;  %v2809_v29 = vsel %vm612_vm3, %v2777_v15, %v2513_v9  ;;  %v7211_v38 = vld [vmem:[#allocation112_spill] sm:$0xff]  ;;  %v2651_v23 = vsel %vm2619_vm10, %v2618_v7, %v6401_v55 }
 0x5ee   : > { %4096 = vmatprep.mubr.msk.f32.mxu1 %vm2830_vm13, %v2808_v13  ;;  %v2746_v14 = vsel %vm609_vm2, %v6397_v26, %v7211_v38 }
 0x5ef   : > { %v2779_v2 = vsel %vm2749_vm12, %v2746_v14, %v6403_v31 }
 0x5f0   : > { %v2103_v3 = vpop.permute.xlu1 %2102  ;;  %v2105_v8 = vpop.permute.xlu0 %2104  ;;  %v2811_v39 = vsel %vm612_vm3, %v2779_v2, %v6407_v45 }
 0x5f1   : > { %4097 = vmatmul.mubr.msk.f32.gmra.mrb[20].mxu1 %vm2830_vm13, %v2809_v29  ;;  %v2682_v30 = vsel %vm606_vm1, %v6367_v4, %v2103_v3  ;;  %v2683_v50 = vsel %vm606_vm1, %v2651_v23, %v2105_v8 }
 0x5f2   : > { %4099 = vmatprep.mubr.msk.f32.mxu1 %vm2830_vm13, %v6077_v61 }
 0x5f4   : > { %v2208_v37 = vpop.permute.xlu1 %2207  ;;  %v2210_v27 = vpop.permute.xlu0 %2209 }
 0x5f5   : > { %v2715_v26 = vsel %vm2684_vm11, %v2682_v30, %v2208_v37  ;;  %v2716_v61 = vsel %vm2684_vm11, %v2683_v50, %v2210_v27  ;;  %4100 = vmatmul.mubr.msk.f32.gmra.mrb[22].mxu1 %vm2830_vm13, %v2811_v39 }
 0x5f6   : > { %v2747_v31 = vsel %vm609_vm2, %v2715_v26, %v2308_v12  ;;  %v2748_v55 = vsel %vm609_vm2, %v2716_v61, %v6539_v34 }
 0x5f7   : > { %v2780_v45 = vsel %vm2749_vm12, %v2747_v31, %v2414_v28  ;;  %v2781_v48 = vsel %vm2749_vm12, %v2748_v55, %v2416_v35 }
 0x5f8   : > { %v2519_v4 = vpop.permute.xlu1 %2518  ;;  %v2521_v11 = vpop.permute.xlu0 %2520 }
 0x5f9   : > { %v2812_v20 = vsel %vm612_vm3, %v2780_v45, %v2519_v4  ;;  %v2813_v5 = vsel %vm612_vm3, %v2781_v48, %v2521_v11 }
 0x5fa   : > { %4102 = vmatprep.mubr.msk.f32.mxu1 %vm2830_vm13, %v2812_v20 }
 0x5fb   : > { %4103 = vmatmul.mubr.msk.f32.gmra.mrb[24].mxu1 %vm2830_vm13, %v2813_v5 }
 0x64e   : > { %v4062_v21 = vpop.f32.mrb[2].mxu0 }
 0x64f   : > { %v3003_v40 = vpop.f32.mrb[3].mxu0  ;;  %v3009_v42 = vadd.f32 %v4062_v21, %v6372_v54 }
 0x650   : > { %v3004_v34 = vadd.f32 %v6372_v54, %v3003_v40 }
 0x651   : > { %v3187_v32 = vmul.f32 0.2, %v3009_v42  ;;  %vm3155_vm2 = vcmp.ge.f32.partialorder %v3009_v42, 0.0 }
 0x652   : > { %vm3154_vm0 = vcmp.ge.f32.partialorder %v3004_v34, 0.0  ;;  %v3186_v0 = vmul.f32 0.2, %v3004_v34  ;;  %v4065_v56 = vpop.f32.mrb[4].mxu0 }
 0x653   : > { %v3013_v58 = vpop.f32.mrb[5].mxu0  ;;  %v3019_v22 = vadd.f32 %v4065_v56, %v6372_v54  ;;  %v3219_v16 = vsel %vm3155_vm2, %v3009_v42, %v3187_v32 }
 0x654   : > { %v3014_v19 = vadd.f32 %v6372_v54, %v3013_v58  ;;  %v3218_v10 = vsel %vm3154_vm0, %v3004_v34, %v3186_v0 }
 0x655   : > { %3250 = vxpose.xlu1.b32.cont [3/4] (short) (narrow) %v3218_v10, 16  ;;  %v3189_v36 = vmul.f32 0.2, %v3019_v22  ;;  %vm3157_vm4 = vcmp.ge.f32.partialorder %v3019_v22, 0.0 }
 0x656   : > { %vm3156_vm3 = vcmp.ge.f32.partialorder %v3014_v19, 0.0  ;;  %v3188_v17 = vmul.f32 0.2, %v3014_v19  ;;  %v4068_v53 = vpop.f32.mrb[6].mxu0 }
 0x657   : > { %v3023_v25 = vpop.f32.mrb[7].mxu0  ;;  %v3029_v35 = vadd.f32 %v4068_v53, %v6372_v54  ;;  %v3221_v59 = vsel %vm3157_vm4, %v3019_v22, %v3189_v36 }
 0x658   : > { %v3024_v44 = vadd.f32 %v6372_v54, %v3023_v25  ;;  %v3220_v43 = vsel %vm3156_vm3, %v3014_v19, %v3188_v17 }
 0x659   : > { %3280 = vxpose.xlu0.b32.start [1/4] (short) (narrow) %v3220_v43, 16  ;;  %3251 = vxpose.xlu1.b32.end [4/4] (short) (narrow) %v3219_v16, 16  ;;  %v3191_v46 = vmul.f32 0.2, %v3029_v35  ;;  %vm3159_vm6 = vcmp.ge.f32.partialorder %v3029_v35, 0.0 }
 0x65a   : > { %v4071_v18 = vpop.f32.mrb[8].mxu0  ;;  %v3190_v62 = vmul.f32 0.2, %v3024_v44  ;;  %vm3158_vm5 = vcmp.ge.f32.partialorder %v3024_v44, 0.0 }
 0x65b   : > { %v3033_v47 = vpop.f32.mrb[9].mxu0  ;;  %v3039_v51 = vadd.f32 %v4071_v18, %v6372_v54  ;;  %v3223_v57 = vsel %vm3159_vm6, %v3029_v35, %v3191_v46 }
 0x65c   : > { %v3034_v6 = vadd.f32 %v6372_v54, %v3033_v47  ;;  %v3222_v33 = vsel %vm3158_vm5, %v3024_v44, %v3190_v62 }
 0x65d   : > { %3281 = vxpose.xlu0.b32.cont [2/4] (short) (narrow) %v3221_v59, 16  ;;  %v3193_v52 = vmul.f32 0.2, %v3039_v51  ;;  %vm3161_vm8 = vcmp.ge.f32.partialorder %v3039_v51, 0.0 }
 0x65e   : > { %v3192_v12 = vmul.f32 0.2, %v3034_v6  ;;  %vm3160_vm7 = vcmp.ge.f32.partialorder %v3034_v6, 0.0 }
 0x65f   : > { %v3225_v63 = vsel %vm3161_vm8, %v3039_v51, %v3193_v52 }
 0x660   : > { %v3224_v24 = vsel %vm3160_vm7, %v3034_v6, %v3192_v12 }
 0x661   : > { %3282 = vxpose.xlu0.b32.cont [3/4] (short) (narrow) %v3222_v33, 16 }
 0x665   : > { %3283 = vxpose.xlu0.b32.end [4/4] (short) (narrow) %v3223_v57, 16 }
 0x669   : > { %3312 = vxpose.xlu0.b32.start [1/4] (short) (narrow) %v3224_v24, 16 }
 0x66d   : > { %3313 = vxpose.xlu0.b32.cont [2/4] (short) (narrow) %v3225_v63, 16 }
 0x6a2   : > { %v4074_v1 = vpop.f32.mrb[10].mxu0 }
 0x6a3   : > { %v3043_v28 = vpop.f32.mrb[11].mxu0  ;;  %v3049_v9 = vadd.f32 %v4074_v1, %v6372_v54 }
 0x6a4   : > { %v3044_v13 = vadd.f32 %v6372_v54, %v3043_v28 }
 0x6a5   : > { %v3195_v15 = vmul.f32 0.2, %v3049_v9  ;;  %vm3163_vm10 = vcmp.ge.f32.partialorder %v3049_v9, 0.0 }
 0x6a6   : > { %v3194_v49 = vmul.f32 0.2, %v3044_v13  ;;  %v6649_v60 = vpop.f32.mrb[12].mxu0  ;;  %vm3162_vm9 = vcmp.ge.f32.partialorder %v3044_v13, 0.0 }
 0x6a7   : > { %v3053_v41 = vpop.f32.mrb[13].mxu0  ;;  %v3227_v3 = vsel %vm3163_vm10, %v3049_v9, %v3195_v15  ;;  %v3059_v46 = vadd.f32 %v6649_v60, %v6372_v54 }
 0x6a8   : > { %v3226_v7 = vsel %vm3162_vm9, %v3044_v13, %v3194_v49  ;;  %v3054_v44 = vadd.f32 %v6372_v54, %v3053_v41 }
 0x6a9   : > { %3314 = vxpose.xlu0.b32.cont [3/4] (short) (narrow) %v3226_v7, 16  ;;  %v3197_v63 = vmul.f32 0.2, %v3059_v46  ;;  %vm3165_vm8 = vcmp.ge.f32.partialorder %v3059_v46, 0.0 }
 0x6aa   : > { %v3196_v6 = vmul.f32 0.2, %v3054_v44  ;;  %vm3164_vm6 = vcmp.ge.f32.partialorder %v3054_v44, 0.0 }
 0x6ab   : > { %v3229_v7 = vsel %vm3165_vm8, %v3059_v46, %v3197_v63 }
 0x6ac   : > { %v6651_v29 = vpop.f32.mrb[14].mxu0  ;;  %v3228_v28 = vsel %vm3164_vm6, %v3054_v44, %v3196_v6 }
 0x6ad   : > { %v6653_v8 = vpop.f32.mrb[15].mxu0  ;;  %3315 = vxpose.xlu0.b32.end [4/4] (short) (narrow) %v3227_v3, 16  ;;  %v3069_v60 = vadd.f32 %v6651_v29, %v6372_v54 }
 0x6ae   : > { %v3064_v1 = vadd.f32 %v6372_v54, %v6653_v8 }
 0x6af   : > { %v3199_v8 = vmul.f32 0.2, %v3069_v60 }
 0x6b0   : > { %v4083_v38 = vpop.f32.mrb[16].mxu0  ;;  %v3198_v41 = vmul.f32 0.2, %v3064_v1  ;;  %vm3166_vm10 = vcmp.ge.f32.partialorder %v3064_v1, 0.0 }
 0x6b1   : > { %v3073_v14 = vpop.f32.mrb[17].mxu0  ;;  %v4086_v2 = vpop.f32.mrb[12].mxu1  ;;  %v3079_v23 = vadd.f32 %v4083_v38, %v6372_v54 }
 0x6b2   : > { %v3074_v39 = vadd.f32 %v6372_v54, %v3073_v14  ;;  %v3083_v30 = vpop.f32.mrb[13].mxu1  ;;  %v3089_v4 = vadd.f32 %v4086_v2, %v6372_v54  ;;  %v3230_v14 = vsel %vm3166_vm10, %v3064_v1, %v3198_v41 }
 0x6b3   : > { %v3201_v27 = vmul.f32 0.2, %v3079_v23  ;;  %v3084_v26 = vadd.f32 %v6372_v54, %v3083_v30  ;;  %vm3169_vm12 = vcmp.ge.f32.partialorder %v3079_v23, 0.0 }
 0x6b4   : > { %v3200_v50 = vmul.f32 0.2, %v3074_v39  ;;  %vm3168_vm11 = vcmp.ge.f32.partialorder %v3074_v39, 0.0  ;;  %v3203_v34 = vmul.f32 0.2, %v3089_v4  ;;  %vm3171_vm0 = vcmp.ge.f32.partialorder %v3089_v4, 0.0 }
 0x6b5   : > { %v4089_v37 = vpop.f32.mrb[14].mxu1  ;;  %v3202_v11 = vmul.f32 0.2, %v3084_v26  ;;  %v3233_v20 = vsel %vm3169_vm12, %v3079_v23, %v3201_v27  ;;  %vm3170_vm14 = vcmp.ge.f32.partialorder %v3084_v26, 0.0 }
 0x6b6   : > { %v3093_v61 = vpop.f32.mrb[15].mxu1  ;;  %v3232_v31 = vsel %vm3168_vm11, %v3074_v39, %v3200_v50  ;;  %v3099_v55 = vadd.f32 %v4089_v37, %v6372_v54  ;;  %v3235_v25 = vsel %vm3171_vm0, %v3089_v4, %v3203_v34  ;;  %vm3167_vm11 = vcmp.ge.f32.partialorder %v3069_v60, 0.0 }
 0x6b7   : > { %v3094_v45 = vadd.f32 %v6372_v54, %v3093_v61  ;;  %3376 = vxpose.xlu0.b32.start [1/4] (short) (narrow) %v3232_v31, 16  ;;  %v3234_v56 = vsel %vm3170_vm14, %v3084_v26, %v3202_v11  ;;  %v3231_v39 = vsel %vm3167_vm11, %v3069_v60, %v3199_v8  ;;  %v7213_v60 = vld [vmem:[#allocation5_spill] sm:$0xff] }
 0x6b8   : > { %v3205_v5 = vmul.f32 0.2, %v3099_v55  ;;  %vm3173_vm15 = vcmp.ge.f32.partialorder %v3099_v55, 0.0 }
 0x6b9   : > { %v3204_v48 = vmul.f32 0.2, %v3094_v45  ;;  %vm3172_vm13 = vcmp.ge.f32.partialorder %v3094_v45, 0.0 }
 0x6ba   : > { %v3237_v32 = vsel %vm3173_vm15, %v3099_v55, %v3205_v5 }
 0x6bb   : > { %3377 = vxpose.xlu0.b32.cont [2/4] (short) (narrow) %v3233_v20, 16  ;;  %v3236_v21 = vsel %vm3172_vm13, %v3094_v45, %v3204_v48 }
 0x6bc   : > { %v4092_v40 = vpop.f32.mrb[16].mxu1  ;;  %3408 = vxpose.xlu1.b32.start [1/4] (short) (narrow) %v3236_v21, 16 }
 0x6bd   : > { %v3103_v42 = vpop.f32.mrb[17].mxu1  ;;  %v3109_v58 = vadd.f32 %v4092_v40, %v6372_v54 }
 0x6be   : > { %v3104_v0 = vadd.f32 %v6372_v54, %v3103_v42 }
 0x6bf   : > { %3378 = vxpose.xlu0.b32.cont [3/4] (short) (narrow) %v3234_v56, 16  ;;  %v3207_v43 = vmul.f32 0.2, %v3109_v58  ;;  %vm3175_vm4 = vcmp.ge.f32.partialorder %v3109_v58, 0.0 }
 0x6c0   : > { %v3206_v22 = vmul.f32 0.2, %v3104_v0  ;;  %v4095_v19 = vpop.f32.mrb[18].mxu1  ;;  %3409 = vxpose.xlu1.b32.cont [2/4] (short) (narrow) %v3237_v32, 16  ;;  %vm3174_vm2 = vcmp.ge.f32.partialorder %v3104_v0, 0.0 }
 0x6c1   : > { %v3113_v10 = vpop.f32.mrb[19].mxu1  ;;  %v3119_v17 = vadd.f32 %v4095_v19, %v6372_v54  ;;  %v3239_v33 = vsel %vm3175_vm4, %v3109_v58, %v3207_v43  ;;  %v7212_v19 = vld [vmem:[#allocation6_spill] sm:$0xff] }
 0x6c2   : > { %v3114_v53 = vadd.f32 %v6372_v54, %v3113_v10  ;;  %v3238_v36 = vsel %vm3174_vm2, %v3104_v0, %v3206_v22 }
 0x6c3   : > { %3379 = vxpose.xlu0.b32.end [4/4] (short) (narrow) %v3235_v25, 16  ;;  %v3209_v35 = vmul.f32 0.2, %v3119_v17  ;;  %vm3177_vm5 = vcmp.ge.f32.partialorder %v3119_v17, 0.0 }
 0x6c4   : > { %v3208_v16 = vmul.f32 0.2, %v3114_v53  ;;  %3410 = vxpose.xlu1.b32.cont [3/4] (short) (narrow) %v3238_v36, 16  ;;  %v4098_v18 = vpop.f32.mrb[20].mxu1  ;;  %vm3176_vm3 = vcmp.ge.f32.partialorder %v3114_v53, 0.0 }
 0x6c5   : > { %v3123_v47 = vpop.f32.mrb[21].mxu1  ;;  %v3129_v57 = vadd.f32 %v4098_v18, %v6372_v54  ;;  %v3241_v24 = vsel %vm3177_vm5, %v3119_v17, %v3209_v35 }
 0x6c6   : > { %v3124_v62 = vadd.f32 %v6372_v54, %v3123_v47  ;;  %v3240_v59 = vsel %vm3176_vm3, %v3114_v53, %v3208_v16 }
 0x6c7   : > { %3440 = vxpose.xlu0.b32.start [1/4] (short) (narrow) %v3240_v59, 16  ;;  %v3211_v9 = vmul.f32 0.2, %v3129_v57  ;;  %vm3179_vm9 = vcmp.ge.f32.partialorder %v3129_v57, 0.0 }
 0x6c8   : > { %3411 = vxpose.xlu1.b32.end [4/4] (short) (narrow) %v3239_v33, 16  ;;  %v4101_v51 = vpop.f32.mrb[22].mxu1  ;;  %v3210_v52 = vmul.f32 0.2, %v3124_v62  ;;  %vm3178_vm7 = vcmp.ge.f32.partialorder %v3124_v62, 0.0 }
 0x6c9   : > { %v3133_v12 = vpop.f32.mrb[23].mxu1  ;;  %v3243_v3 = vsel %vm3179_vm9, %v3129_v57, %v3211_v9  ;;  %v3139_v2 = vadd.f32 %v4101_v51, %v6372_v54 }
 0x6ca   : > { %v3242_v49 = vsel %vm3178_vm7, %v3124_v62, %v3210_v52  ;;  %v3134_v38 = vadd.f32 %v6372_v54, %v3133_v12 }
 0x6cb   : > { %3441 = vxpose.xlu0.b32.cont [2/4] (short) (narrow) %v3241_v24, 16  ;;  %v3213_v29 = vmul.f32 0.2, %v3139_v2  ;;  %vm3181_vm13 = vcmp.ge.f32.partialorder %v3139_v2, 0.0 }
 0x6cc   : > { %3344 = vxpose.xlu1.b32.start [1/4] (short) (narrow) %v3228_v28, 16  ;;  %v3212_v23 = vmul.f32 0.2, %v3134_v38  ;;  %vm3180_vm12 = vcmp.ge.f32.partialorder %v3134_v38, 0.0 }
 0x6cd   : > { %v3245_v26 = vsel %vm3181_vm13, %v3139_v2, %v3213_v29  ;;  %v3264_v4 = vpop.trf.xlu1 }
 0x6ce   : > { %v4104_v13 = vpop.f32.mrb[24].mxu1  ;;  %v3244_v50 = vsel %vm3180_vm12, %v3134_v38, %v3212_v23 }
 0x6cf   : > { %3442 = vxpose.xlu0.b32.cont [3/4] (short) (narrow) %v3242_v49, 16  ;;  %v3143_v15 = vpop.f32.mrb[25].mxu1  ;;  %v3149_v37 = vadd.f32 %v4104_v13, %v6372_v54 }
 0x6d0   : > { %3345 = vxpose.xlu1.b32.cont [2/4] (short) (narrow) %v3229_v7, 16  ;;  %v3144_v30 = vadd.f32 %v6372_v54, %v3143_v15 }
 0x6d1   : > { %v3215_v61 = vmul.f32 0.2, %v3149_v37  ;;  %vm3183_vm15 = vcmp.ge.f32.partialorder %v3149_v37, 0.0  ;;  %v3265_v20 = vpop.trf.xlu1 }
 0x6d2   : > { %v3214_v27 = vmul.f32 0.2, %v3144_v30  ;;  %vm3182_vm14 = vcmp.ge.f32.partialorder %v3144_v30, 0.0 }
 0x6d3   : > { %3443 = vxpose.xlu0.b32.end [4/4] (short) (narrow) %v3243_v3, 16  ;;  %v3247_v55 = vsel %vm3183_vm15, %v3149_v37, %v3215_v61 }
 0x6d4   : > { %3346 = vxpose.xlu1.b32.cont [3/4] (short) (narrow) %v3230_v14, 16  ;;  %v3246_v31 = vsel %vm3182_vm14, %v3144_v30, %v3214_v27 }
 0x6d8   : > { %3347 = vxpose.xlu1.b32.end [4/4] (short) (narrow) %v3231_v39, 16 }
 0x6d9   : > { %v3296_v45 = vpop.trf.xlu0 }
 0x6dc   : > { %3472 = vxpose.xlu1.b32.start [1/4] (short) (narrow) %v3244_v50, 16 }
 0x6dd   : > { %v3297_v48 = vpop.trf.xlu0 }
 0x6e0   : > { %3473 = vxpose.xlu1.b32.cont [2/4] (short) (narrow) %v3245_v26, 16 }
 0x6e4   : > { %3474 = vxpose.xlu1.b32.cont [3/4] (short) (narrow) %v3246_v31, 16 }
 0x6e8   : > { %3475 = vxpose.xlu1.b32.end [4/4] (short) (narrow) %v3247_v55, 16 }
 0x721   : > { %v3328_v11 = vpop.trf.xlu0 }
 0x722   : > { %v3504_v32 = vcombine.low %v3264_v4, %v3328_v11  ;;  %v3505_v22 = vcombine.high %v3264_v4, %v3328_v11 }
 0x724   : > { %v3512_v36 = vrot.slane %v3504_v32, %v7212_v19  ;;  %v3519_v44 = vrot.slane %v3505_v22, %v7212_v19 }
 0x725   : > { %v3329_v5 = vpop.trf.xlu0 }
 0x726   : > { %v3640_v43 = vcombine.low %v3265_v20, %v3329_v5  ;;  %v3641_v16 = vcombine.high %v3265_v20, %v3329_v5 }
 0x728   : > { %v3648_v52 = vrot.slane %v3640_v43, %v7212_v19  ;;  %v6686_v24 = vrot.slane %v3641_v16, %v7212_v19 }
 0x737   : > { %v3392_v40 = vpop.trf.xlu0 }
 0x73b   : > { %v3393_v54 = vpop.trf.xlu0 }
 0x73c   : > { %v3424_v21 = vpop.trf.xlu1 }
 0x740   : > { %v6678_v42 = vpop.trf.xlu1 }
 0x747   : > { %v3456_v0 = vpop.trf.xlu0 }
 0x748   : > { %v3536_v47 = vcombine.low %v3392_v40, %v3456_v0  ;;  %v3537_v35 = vcombine.high %v3392_v40, %v3456_v0 }
 0x74a   : > { %v3544_v9 = vrot.slane %v3536_v47, %v7212_v19  ;;  %v3551_v13 = vrot.slane %v3537_v35, %v7212_v19 }
 0x74b   : > { %v3457_v53 = vpop.trf.xlu0 }
 0x74c   : > { %v3360_v34 = vpop.trf.xlu1  ;;  %v3672_v62 = vcombine.low %v3393_v54, %v3457_v53  ;;  %v3673_v46 = vcombine.high %v3393_v54, %v3457_v53 }
 0x74d   : > { %v3520_v56 = vcombine.low %v3296_v45, %v3360_v34  ;;  %v3521_v58 = vcombine.high %v3296_v45, %v3360_v34 }
 0x74e   : > { %v3680_v49 = vrot.slane %v3672_v62, %v7212_v19  ;;  %v3687_v15 = vrot.slane %v3673_v46, %v7212_v19 }
 0x74f   : > { %v3528_v10 = vrot.slane %v3520_v56, %v7212_v19  ;;  %v3535_v25 = vrot.slane %v3521_v58, %v7212_v19 }
 0x750   : > { %v3361_v17 = vpop.trf.xlu1 }
 0x751   : > { %v3656_v18 = vcombine.low %v3297_v48, %v3361_v17  ;;  %v3568_v59 = vcombine.low %v3512_v36, %v3528_v10  ;;  %v3569_v6 = vcombine.high %v3512_v36, %v3528_v10  ;;  %v3584_v33 = vcombine.low %v3519_v44, %v3535_v25 }
 0x752   : > { %v3585_v51 = vcombine.high %v3519_v44, %v3535_v25  ;;  %v3657_v12 = vcombine.high %v3297_v48, %v3361_v17 }
 0x753   : > { %v3664_v28 = vrot.slane %v3656_v18, %v7212_v19  ;;  %v3576_v41 = vrot.slane %v3568_v59, %v7213_v60  ;;  %v3583_v8 = vrot.slane %v3569_v6, %v7213_v60  ;;  %v3592_v38 = vrot.slane %v3584_v33, %v7213_v60 }
 0x754   : > { %v3599_v14 = vrot.slane %v3585_v51, %v7213_v60  ;;  %v3671_v2 = vrot.slane %v3657_v12, %v7212_v19 }
 0x755   : > { %v3704_v37 = vcombine.low %v3648_v52, %v3664_v28  ;;  %v3705_v27 = vcombine.high %v3648_v52, %v3664_v28 }
 0x756   : > { %v3720_v4 = vcombine.low %v6686_v24, %v3671_v2  ;;  %v3721_v11 = vcombine.high %v6686_v24, %v3671_v2 }
 0x757   : > { %v3712_v17 = vrot.slane %v3704_v37, %v7213_v60  ;;  %v3719_v53 = vrot.slane %v3705_v27, %v7213_v60 }
 0x758   : > { %v3728_v16 = vrot.slane %v3720_v4, %v7213_v60  ;;  %v3735_v18 = vrot.slane %v3721_v11, %v7213_v60 }
 0x75c   : > { %v3488_v57 = vpop.trf.xlu1 }
 0x75d   : > { %v3552_v63 = vcombine.low %v3424_v21, %v3488_v57  ;;  %v3553_v1 = vcombine.high %v3424_v21, %v3488_v57 }
 0x75f   : > { %v3560_v7 = vrot.slane %v3552_v63, %v7212_v19  ;;  %v3567_v3 = vrot.slane %v3553_v1, %v7212_v19 }
 0x760   : > { %v3489_v23 = vpop.trf.xlu1 }
 0x761   : > { %v3600_v39 = vcombine.low %v3544_v9, %v3560_v7  ;;  %v3601_v29 = vcombine.high %v3544_v9, %v3560_v7  ;;  %v3616_v30 = vcombine.low %v3551_v13, %v3567_v3  ;;  %v3617_v50 = vcombine.high %v3551_v13, %v3567_v3 }
 0x762   : > { %v3688_v26 = vcombine.low %v6678_v42, %v3489_v23  ;;  %v3689_v61 = vcombine.high %v6678_v42, %v3489_v23 }
 0x763   : > { %v3608_v31 = vrot.slane %v3600_v39, %v7213_v60  ;;  %v3615_v55 = vrot.slane %v3601_v29, %v7213_v60  ;;  %v3624_v45 = vrot.slane %v3616_v30, %v7213_v60  ;;  %v3631_v48 = vrot.slane %v3617_v50, %v7213_v60 }
 0x764   : > { %v3696_v20 = vrot.slane %v3688_v26, %v7212_v19  ;;  %v3703_v5 = vrot.slane %v3689_v61, %v7212_v19 }
 0x765   : > { %v3632_v21 = vcombine.low %v3576_v41, %v3608_v31  ;;  %v3633_v40 = vcombine.high %v3576_v41, %v3608_v31  ;;  %v3634_v42 = vcombine.low %v3583_v8, %v3615_v55  ;;  %v3635_v54 = vcombine.high %v3583_v8, %v3615_v55 }
 0x766   : > { %v3636_v34 = vcombine.low %v3592_v38, %v3624_v45  ;;  %v3637_v0 = vcombine.high %v3592_v38, %v3624_v45  ;;  %v3638_v56 = vcombine.low %v3599_v14, %v3631_v48  ;;  %v3639_v58 = vcombine.high %v3599_v14, %v3631_v48 }
 0x767   : > { %3776 = vst.msk [vmem:[%s6717_s15] sm:$0xff] %vm606_vm1, %v3632_v21  ;;  %3777 = vst.msk [vmem:[%s6717_s15 + $0x8] sm:$0xff] %vm606_vm1, %v3633_v40  ;;  %v3736_v32 = vcombine.low %v3680_v49, %v3696_v20  ;;  %v3737_v22 = vcombine.high %v3680_v49, %v3696_v20  ;;  %v3752_v19 = vcombine.low %v3687_v15, %v3703_v5 }
 0x768   : > { %3778 = vst.msk [vmem:[%s6717_s15 + $0x10] sm:$0xff] %vm606_vm1, %v3634_v42  ;;  %3779 = vst.msk [vmem:[%s6717_s15 + $0x18] sm:$0xff] %vm606_vm1, %v3635_v54  ;;  %v3753_v10 = vcombine.high %v3687_v15, %v3703_v5 }
 0x769   : > { %3780 = vst.msk [vmem:[%s6717_s15 + $0x20] sm:$0xff] %vm606_vm1, %v3636_v34  ;;  %3781 = vst.msk [vmem:[%s6717_s15 + $0x28] sm:$0xff] %vm606_vm1, %v3637_v0  ;;  %v3744_v25 = vrot.slane %v3736_v32, %v7213_v60  ;;  %v3751_v36 = vrot.slane %v3737_v22, %v7213_v60  ;;  %v3760_v44 = vrot.slane %v3752_v19, %v7213_v60 }
 0x76a   : > { %3782 = vst.msk [vmem:[%s6717_s15 + $0x30] sm:$0xff] %vm606_vm1, %v3638_v56  ;;  %3783 = vst.msk [vmem:[%s6717_s15 + $0x38] sm:$0xff] %vm606_vm1, %v3639_v58  ;;  %v3767_v43 = vrot.slane %v3753_v10, %v7213_v60 }
 0x76b   : > { %v3768_v47 = vcombine.low %v3712_v17, %v3744_v25  ;;  %v3769_v35 = vcombine.high %v3712_v17, %v3744_v25  ;;  %v3770_v62 = vcombine.low %v3719_v53, %v3751_v36  ;;  %v3771_v59 = vcombine.high %v3719_v53, %v3751_v36 }
 0x76c   : > { %v3772_v46 = vcombine.low %v3728_v16, %v3760_v44  ;;  %v3773_v6 = vcombine.high %v3728_v16, %v3760_v44  ;;  %v3774_v33 = vcombine.low %v3735_v18, %v3767_v43  ;;  %v3775_v51 = vcombine.high %v3735_v18, %v3767_v43 }
 0x76d   : > { %3784 = vst.msk [vmem:[%s6717_s15 + $0x40] sm:$0xff] %vm606_vm1, %v3768_v47  ;;  %3785 = vst.msk [vmem:[%s6717_s15 + $0x48] sm:$0xff] %vm606_vm1, %v3769_v35 }
 0x76e   : > { %3786 = vst.msk [vmem:[%s6717_s15 + $0x50] sm:$0xff] %vm606_vm1, %v3770_v62  ;;  %3787 = vst.msk [vmem:[%s6717_s15 + $0x58] sm:$0xff] %vm606_vm1, %v3771_v59 }
 0x76f   : > { %3788 = vst.msk [vmem:[%s6717_s15 + $0x60] sm:$0xff] %vm606_vm1, %v3772_v46  ;;  %3789 = vst.msk [vmem:[%s6717_s15 + $0x68] sm:$0xff] %vm606_vm1, %v3773_v6 }
 0x770   : > { %3790 = vst.msk [vmem:[%s6717_s15 + $0x70] sm:$0xff] %vm606_vm1, %v3774_v33  ;;  %3791 = vst.msk [vmem:[%s6717_s15 + $0x78] sm:$0xff] %vm606_vm1, %v3775_v51 }
 0x771   : > { %4298 = shalt.err (!%p4295_p7)
}
 0x772   : > { %s4299_s27 = scalar_lea.hbm %s6748_s30, 2048  ;;  %s4303_s21 = scalar_lea.hbm %s6828_s5, 16384 }
 0x773   : > { %p4300_p9 = scmp.ne.s32.totalorder %s6748_s30, %s4299_s27  ;;  %p4304_p12 = scmp.lt.u32.totalorder %s6748_s30, %s6828_s5 }
 0x774   : > { %p4305_p13 = scmp.lt.u32.totalorder %s4303_s21, %s4299_s27  ;;  %p4307_p1 = scmp.lt.u32.totalorder %s4299_s27, %s6748_s30 }
 0x775   : > { %p4301_p10 = pnand %p4300_p9, %p4479_p3 }
 0x776   : > { %p4306_p0 = por %p4305_p13, %p4304_p12 }
 0x777   : > { %p4302_p11 = pneg %p4301_p10 }
 0x778   : > { %p4308_p2 = por %p4307_p1, %p4306_p0 }
 0x77a   : > { %p4309_p4 = pnand %p4308_p2, %p4302_p11 }
 0x77c   : > { %4312 = shalt.err (!%p4309_p4)
}
 0x77d   : > { %s4396_s17 = smov 128   ;;  %s4397_s26 = smov 512  }
 0x77e   : > { %4139 = dma.vmem_to_hbm [thread:$0]  (%p4479_p3), %s6750_s16, 2048, %s6748_s30, %s6770_s8, %s4396_s17, %s4397_s26, %s4392_s14  }
 0x77f PF: > { %p4145_p5 = scmp.ge.s32.totalorder %s4379_s25, 2  ;;  %s3822_s13 = sand.u32 1, %s4351_s18  }
 0x780   : > { %s3823_s12 = scalar_lea.sflag [#allocation3], %s3822_s13 }
 0x781   : > { %p4142_p6 = pnand %p4145_p5, %p4488_p8 }
 0x783   : > { %4346 = dma.done.wait (!%p4142_p6), %s3823_s12, 2048  }
 0x784   : > { %4348 = vsyncadd (!%p4142_p6), %s3823_s12, 4294965248  ;;  %s18_s25 = sadd.s32 1, %s4379_s25   ;;  %s7214_s18 = smov %s4355_s19 }
 0x785   : > { %p15_p7 = scmp.ge.s32.totalorder %s18_s25, 10   ;;  %s7215_s19 = smov %s4359_s20 }
 0x786   : > { %s7216_s20 = smov %s4497_s11  ;;  %s7217_s21 = smov %s4371_s23 }
 0x787   : > { %s7218_s22 = smov %s4375_s24  ;;  %s7219_s23 = smov %s7222_s28 }
 0x788   : > { %s7220_s24 = smov %s7226_s29  ;;  %17 = sbr.rel (!%p15_p7) target bundleno = 5 (0x5), region = 78 }
 0x78f   :  { %3828 = vsyncpa [#allocation3], 1 }
 0x790   :  { %3830 = vsyncpa [#allocation3 + $0x1], 1 }

</bundles_post_ra>
